<compile_context>
chip_gen: v7x
topology: tpu7x:2x2x1
jax: 0.10.0
libtpu: 0.0.40
codegen_flags: <defaults>
</compile_context>

<pallas_src>
import jax
import jax.numpy as jnp
from jax import lax
from jax.experimental import pallas as pl
from jax.experimental.pallas import tpu as pltpu

EPS = 1e-5


# --------------------------- VMEM budget / tiling ---------------------------
def _vmem_budget():
    """Per-generation VMEM sizing: v7x has 64 MiB physical, v5e/v6e 128 MiB."""
    cap = 64 * 1024 * 1024
    try:
        cap = int(pltpu.get_tpu_info().vmem_capacity_bytes)
    except Exception:
        pass
    limit = min(cap * 3 // 4, 112 * 1024 * 1024)    # compiler vmem_limit_bytes
    budget = min(cap * 3 // 10, 48 * 1024 * 1024)   # target per-step working set
    return limit, budget


def _pick_tile_h(H, W, C, budget):
    """Largest divisor of H whose estimated per-step VMEM working set fits."""
    def est(th):
        e = th * W * C                      # output-tile elements
        halo = (th + 2) * W * C
        b = 2 * e * 2                       # mid input rows, bf16, double-buffered
        b += 2 * e * 2                      # raw conv output, bf16, double-buffered
        b += 4 * W * C * 2                  # top/bot halo rows, double-buffered
        b += 2 * 3 * (3 * C) * C * 2        # weight taps, double-buffered
        b += halo * (2 + 4 + 2)             # window bf16 + f32 affine temp + W-padded copy
        b += halo * 3 * 2 * 2               # K=3C slab (bf16) + one sliced patch copy
        b += e * 4 * 2                      # f32 accumulator + dot result temp
        return b

    best = 1                                # TH=1 always compiles (tiny tiles)
    for d in range(1, H + 1):
        if H % d == 0 and est(d) <= budget:
            best = d
    return best


# ------------------- pass A: conv (+ fused affine/ReLU) + stats -------------
def _conv_kernel(TH, W, C, fused):
    M = TH * W

    def kernel(*refs):
        if fused:
            top_ref, mid_ref, bot_ref, w_ref, sc_ref, sh_ref, y_ref, st_ref = refs
        else:
            top_ref, mid_ref, bot_ref, w_ref, y_ref, st_ref = refs
        h = pl.program_id(1)
        last = pl.num_programs(1) - 1

        def prep(v):
            # fused BN1 scale/shift + ReLU applied on-the-fly to conv2's input
            if fused:
                v = jnp.maximum(v.astype(jnp.float32) * sc_ref[0, 0, 0]
                                + sh_ref[0, 0, 0], 0.0).astype(jnp.bfloat16)
            return v

        top = prep(top_ref[0])                                # (1, W, C)
        mid = prep(mid_ref[0])                                # (TH, W, C)
        bot = prep(bot_ref[0])                                # (1, W, C)
        # out-of-image halo rows are zero AFTER the affine => correct "SAME"
        # zero padding of the (normalized, ReLU'd) conv input.
        top = jnp.where(h > 0, top, 0.0)
        bot = jnp.where(h < last, bot, 0.0)
        win = jnp.concatenate([top, mid, bot], axis=0)        # (TH+2, W, C)

        # zero-pad W once; build the K=3*C lane-concatenated slab ONCE (hoisted
        # out of the ky loop); 3 MXU matmuls accumulated in a local f32 value.
        zc = jnp.zeros((TH + 2, 1, C), win.dtype)
        xt = jnp.concatenate([zc, win, zc], axis=1)           # (TH+2, W+2, C)
        slab = jnp.concatenate(
            [xt[:, 0:W], xt[:, 1:1 + W], xt[:, 2:2 + W]], axis=-1)  # (TH+2, W, 3C)

        acc = jnp.zeros((M, C), jnp.float32)
        for ky in range(3):
            patch = slab[ky:ky + TH].reshape(M, 3 * C)        # bf16, K = 3*C
            acc = acc + jnp.dot(patch, w_ref[ky],
                                preferred_element_type=jnp.float32)

        y_ref[...] = acc.reshape(1, TH, W, C).astype(y_ref.dtype)

        # per-tile (sum, centered sum-of-squares) in f32 for a well-conditioned
        # BN statistics combine on the host side.
        s0 = jnp.sum(acc, axis=0, keepdims=True)              # (1, C)
        mu = s0 * (1.0 / M)
        m2 = jnp.sum((acc - mu) ** 2, axis=0, keepdims=True)  # (1, C)
        st_ref[...] = jnp.concatenate([s0, m2], axis=0).reshape(1, 1, 2, C)

    return kernel


def conv_bn_stats(x, w_taps, scale, shift, TH, vmem_limit):
    """3x3 'SAME' conv (+ optional fused per-channel scale/shift/ReLU on the
    input) producing the raw bf16 conv output and per-tile BN partial stats."""
    N, H, W, C = x.shape
    nTH = H // TH
    fused = scale is not None

    top_spec = pl.BlockSpec((1, 1, W, C),
                            lambda n, h: (n, jnp.maximum(h * TH - 1, 0), 0, 0))
    mid_spec = pl.BlockSpec((1, TH, W, C), lambda n, h: (n, h, 0, 0))
    bot_spec = pl.BlockSpec((1, 1, W, C),
                            lambda n, h: (n, jnp.minimum((h + 1) * TH, H - 1), 0, 0))
    w_spec = pl.BlockSpec((3, 3 * C, C), lambda n, h: (0, 0, 0))

    in_specs = [top_spec, mid_spec, bot_spec, w_spec]
    args = [x, x, x, w_taps]
    if fused:
        vec_spec = pl.BlockSpec((1, 1, 1, C), lambda n, h: (0, 0, 0, 0))
        in_specs += [vec_spec, vec_spec]
        args += [scale, shift]

    return pl.pallas_call(
        _conv_kernel(TH, W, C, fused),
        out_shape=(jax.ShapeDtypeStruct((N, H, W, C), jnp.bfloat16),   # raw conv
                   jax.ShapeDtypeStruct((N, nTH, 2, C), jnp.float32)),  # partial stats
        grid=(N, nTH),
        in_specs=in_specs,
        out_specs=(pl.BlockSpec((1, TH, W, C), lambda n, h: (n, h, 0, 0)),
                   pl.BlockSpec((1, 1, 2, C), lambda n, h: (n, h, 0, 0))),
        compiler_params=pltpu.CompilerParams(
            dimension_semantics=("parallel", "parallel"),
            vmem_limit_bytes=vmem_limit),
    )(*args)


# --------------------- pass B: BN2 normalize + residual ---------------------
def _norm_res_kernel(y_ref, sc_ref, sh_ref, r_ref, o_ref):
    v = y_ref[...].astype(jnp.float32) * sc_ref[...] + sh_ref[...]   # folded BN
    o_ref[...] = (v + r_ref[...]).astype(o_ref.dtype)


def norm_residual(y, scale, shift, res, TH, vmem_limit):
    N, H, W, C = y.shape
    nTH = H // TH
    tile = pl.BlockSpec((1, TH, W, C), lambda n, h: (n, h, 0, 0))
    vec = pl.BlockSpec((1, 1, 1, C), lambda n, h: (0, 0, 0, 0))
    return pl.pallas_call(
        _norm_res_kernel,
        out_shape=jax.ShapeDtypeStruct((N, H, W, C), jnp.float32),
        grid=(N, nTH),
        in_specs=[tile, vec, vec, tile],
        out_specs=tile,
        compiler_params=pltpu.CompilerParams(
            dimension_semantics=("parallel", "parallel"),
            vmem_limit_bytes=vmem_limit),
    )(y, scale, shift, res)


# --------------------------------- glue -------------------------------------
def _w_to_taps(w_oihw):
    """PyTorch (Cout, Cin, 3, 3) -> (3[ky], 3*Cin (kx-major), Cout) in bf16."""
    cout, cin = w_oihw.shape[0], w_oihw.shape[1]
    wt = jnp.transpose(w_oihw, (2, 3, 1, 0)).reshape(3, 3 * cin, cout)
    return wt.astype(jnp.bfloat16)


def _bn_fold(stats, gamma, beta, total, tile_cnt):
    """Combine per-tile (sum, centered M2) and fold BN into scale/shift."""
    sums = stats[:, :, 0, :].astype(jnp.float32)         # (N, nTH, C)
    m2s = stats[:, :, 1, :].astype(jnp.float32)
    mean = jnp.sum(sums, axis=(0, 1)) / total
    tmean = sums / tile_cnt
    var = (jnp.sum(m2s, axis=(0, 1))
           + tile_cnt * jnp.sum((tmean - mean) ** 2, axis=(0, 1))) / total
    var = jnp.maximum(var, 0.0)                          # biased batch variance
    scale = gamma * lax.rsqrt(var + EPS)
    shift = beta - mean * scale
    c = gamma.shape[0]
    return scale.reshape(1, 1, 1, c), shift.reshape(1, 1, 1, c)


@jax.jit
def residual_block(x_nchw, params):
    # TODO(synk): accept/return NHWC directly to drop these two transposes.
    x = jnp.transpose(x_nchw, (0, 2, 3, 1)).astype(jnp.float32)   # NCHW -> NHWC
    N, H, W, C = x.shape
    vmem_limit, budget = _vmem_budget()
    TH = _pick_tile_h(H, W, C, budget)
    total = float(N * H * W)
    tile_cnt = float(TH * W)
    xb = x.astype(jnp.bfloat16)

    # conv1 + BN1 stats.  Conv biases dropped: a per-channel constant added
    # before train-mode (batch-stat) BN is exactly cancelled by the mean.
    y1, st1 = conv_bn_stats(xb, _w_to_taps(params["w1"]), None, None, TH, vmem_limit)
    sc1, sh1 = _bn_fold(st1, params["g1"], params["beta1"], total, tile_cnt)

    # BN1 + ReLU fused into conv2's input path (no normalized intermediate in HBM)
    y2, st2 = conv_bn_stats(y1, _w_to_taps(params["w2"]), sc1, sh1, TH, vmem_limit)
    sc2, sh2 = _bn_fold(st2, params["g2"], params["beta2"], total, tile_cnt)

    # BN2 normalize + residual add
    o = norm_residual(y2, sc2, sh2, x, TH, vmem_limit)
    return jnp.transpose(o, (0, 3, 1, 2))                          # NHWC -> NCHW


# ---------------------------- pure-JAX reference ----------------------------
def residual_block_ref(x_nchw, params):
    x = jnp.transpose(x_nchw, (0, 2, 3, 1))

    def conv(h, w_oihw, b):
        w_hwio = jnp.transpose(w_oihw, (2, 3, 1, 0))
        y = lax.conv_general_dilated(h, w_hwio, (1, 1), "SAME",
                                     dimension_numbers=("NHWC", "HWIO", "NHWC"),
                                     precision=lax.Precision.HIGHEST)
        return y + b

    def bn(h, g, bt):
        m = jnp.mean(h, axis=(0, 1, 2), keepdims=True)
        v = jnp.mean((h - m) ** 2, axis=(0, 1, 2), keepdims=True)
        return (h - m) / jnp.sqrt(v + EPS) * g + bt

    h = jax.nn.relu(bn(conv(x, params["w1"], params["b1"]),
                       params["g1"], params["beta1"]))
    o = bn(conv(h, params["w2"], params["b2"]),
           params["g2"], params["beta2"]) + x
    return jnp.transpose(o, (0, 3, 1, 2))


if __name__ == "__main__":
    C = 256                      # fixed by the module definition
    N, H, W = 2, 8, 8            # small spatial / batch for the demo

    key = jax.random.PRNGKey(0)
    ks = jax.random.split(key, 9)
    params = {
        "w1": jax.random.normal(ks[0], (C, C, 3, 3), jnp.float32) * 0.02,
        "b1": jax.random.normal(ks[1], (C,), jnp.float32) * 0.02,
        "g1": 1.0 + 0.1 * jax.random.normal(ks[2], (C,), jnp.float32),
        "beta1": 0.1 * jax.random.normal(ks[3], (C,), jnp.float32),
        "w2": jax.random.normal(ks[4], (C, C, 3, 3), jnp.float32) * 0.02,
        "b2": jax.random.normal(ks[5], (C,), jnp.float32) * 0.02,
        "g2": 1.0 + 0.1 * jax.random.normal(ks[6], (C,), jnp.float32),
        "beta2": 0.1 * jax.random.normal(ks[7], (C,), jnp.float32),
    }
    x = jax.random.normal(ks[8], (N, C, H, W), jnp.float32)

    out = jax.block_until_ready(residual_block(x, params))
    ref = jax.block_until_ready(residual_block_ref(x, params))

    assert out.shape == (N, C, H, W)
    err = float(jnp.max(jnp.abs(out - ref)))
    # bf16 MXU operands / bf16 raw-conv intermediates with f32 accumulation and
    # f32 BN statistics -> error stays well inside 5e-2 at these scales.
    assert jnp.allclose(out, ref, atol=5e-2, rtol=5e-2), f"max abs err = {err}"

    print("KERNEL_OK")
</pallas_src>

<mosaic_0001>
module attributes {stable_mosaic.version = 11 : i64} {
  func.func @kernel(%arg0: i32, %arg1: i32, %arg2: memref<1x1x8x256xbf16, #tpu.memory_space<vmem>>, %arg3: memref<1x8x8x256xbf16, #tpu.memory_space<vmem>>, %arg4: memref<1x1x8x256xbf16, #tpu.memory_space<vmem>>, %arg5: memref<3x768x256xbf16, #tpu.memory_space<vmem>>, %arg6: memref<1x8x8x256xbf16, #tpu.memory_space<vmem>>, %arg7: memref<1x1x2x256xf32, #tpu.memory_space<vmem>>) attributes {dimension_semantics = [#tpu.dimension_semantics<parallel>, #tpu.dimension_semantics<parallel>], iteration_bounds = array<i64: 2, 1>, scalar_prefetch = 0 : i64, scratch_operands = 0 : i64, tpu.core_type = #tpu.core_type<tc>, window_params = [{transform_indices = @transform_0, window_bounds = array<i64: 1, 1, 8, 256>}, {transform_indices = @transform_1, window_bounds = array<i64: 1, 8, 8, 256>}, {transform_indices = @transform_2, window_bounds = array<i64: 1, 1, 8, 256>}, {pipeline_mode = #tpu.pipeline_mode<synchronous>, transform_indices = @transform_3, window_bounds = array<i64: 3, 768, 256>}, {transform_indices = @transform_4, window_bounds = array<i64: 1, 8, 8, 256>}, {transform_indices = @transform_5, window_bounds = array<i64: 1, 1, 2, 256>}]} {
    %c0 = arith.constant 0 : index
    %c0_0 = arith.constant 0 : index
    %c0_1 = arith.constant 0 : index
    %c0_2 = arith.constant 0 : index
    %0 = vector.load %arg2[%c0, %c0_0, %c0_1, %c0_2] : memref<1x1x8x256xbf16, #tpu.memory_space<vmem>>, vector<1x1x8x256xbf16>
    %1 = vector.shape_cast %0 : vector<1x1x8x256xbf16> to vector<1x8x256xbf16>
    %c0_3 = arith.constant 0 : index
    %c0_4 = arith.constant 0 : index
    %c0_5 = arith.constant 0 : index
    %c0_6 = arith.constant 0 : index
    %2 = vector.load %arg3[%c0_3, %c0_4, %c0_5, %c0_6] : memref<1x8x8x256xbf16, #tpu.memory_space<vmem>>, vector<1x8x8x256xbf16>
    %3 = vector.shape_cast %2 : vector<1x8x8x256xbf16> to vector<8x8x256xbf16>
    %c0_7 = arith.constant 0 : index
    %c0_8 = arith.constant 0 : index
    %c0_9 = arith.constant 0 : index
    %c0_10 = arith.constant 0 : index
    %4 = vector.load %arg4[%c0_7, %c0_8, %c0_9, %c0_10] : memref<1x1x8x256xbf16, #tpu.memory_space<vmem>>, vector<1x1x8x256xbf16>
    %5 = vector.shape_cast %4 : vector<1x1x8x256xbf16> to vector<1x8x256xbf16>
    %c0_i32 = arith.constant 0 : i32
    %6 = arith.cmpi sgt, %arg1, %c0_i32 : i32
    %cst = arith.constant 0.000000e+00 : f32
    %7 = arith.truncf %cst : f32 to bf16
    %8 = vector.broadcast %7 : bf16 to vector<1x8x256xbf16>
    %9 = arith.select %6, %1, %8 : vector<1x8x256xbf16>
    %c0_i32_11 = arith.constant 0 : i32
    %10 = arith.cmpi slt, %arg1, %c0_i32_11 : i32
    %cst_12 = arith.constant 0.000000e+00 : f32
    %11 = arith.truncf %cst_12 : f32 to bf16
    %12 = vector.broadcast %11 : bf16 to vector<1x8x256xbf16>
    %13 = arith.select %10, %5, %12 : vector<1x8x256xbf16>
    %14 = tpu.concatenate %9, %3, %13 in 0 : vector<1x8x256xbf16>, vector<8x8x256xbf16>, vector<1x8x256xbf16> -> vector<10x8x256xbf16>
    %cst_13 = arith.constant 0.000000e+00 : bf16
    %15 = vector.broadcast %cst_13 : bf16 to vector<10x1x256xbf16>
    %16 = tpu.concatenate %15, %14, %15 in 1 : vector<10x1x256xbf16>, vector<10x8x256xbf16>, vector<10x1x256xbf16> -> vector<10x10x256xbf16>
    %17 = vector.extract_strided_slice %16 {offsets = [0, 0, 0], sizes = [10, 8, 256], strides = [1, 1, 1]} : vector<10x10x256xbf16> to vector<10x8x256xbf16>
    %18 = vector.extract_strided_slice %16 {offsets = [0, 1, 0], sizes = [10, 8, 256], strides = [1, 1, 1]} : vector<10x10x256xbf16> to vector<10x8x256xbf16>
    %19 = vector.extract_strided_slice %16 {offsets = [0, 2, 0], sizes = [10, 8, 256], strides = [1, 1, 1]} : vector<10x10x256xbf16> to vector<10x8x256xbf16>
    %20 = tpu.concatenate %17, %18, %19 in 2 : vector<10x8x256xbf16>, vector<10x8x256xbf16>, vector<10x8x256xbf16> -> vector<10x8x768xbf16>
    %cst_14 = arith.constant 0.000000e+00 : f32
    %21 = vector.broadcast %cst_14 : f32 to vector<64x256xf32>
    %22 = vector.extract_strided_slice %20 {offsets = [0, 0, 0], sizes = [8, 8, 768], strides = [1, 1, 1]} : vector<10x8x768xbf16> to vector<8x8x768xbf16>
    %23 = vector.shape_cast %22 : vector<8x8x768xbf16> to vector<64x768xbf16>
    %c0_15 = arith.constant 0 : index
    %c0_16 = arith.constant 0 : index
    %c0_17 = arith.constant 0 : index
    %24 = vector.load %arg5[%c0_15, %c0_16, %c0_17] : memref<3x768x256xbf16, #tpu.memory_space<vmem>>, vector<1x768x256xbf16>
    %25 = vector.shape_cast %24 : vector<1x768x256xbf16> to vector<768x256xbf16>
    %cst_18 = arith.constant dense<0.000000e+00> : vector<64x256xf32>
    %26 = tpu.matmul %23, %25, %cst_18 {dimension_numbers = #tpu.dot_dimension_numbers<[1], [0], [0], [1], [0, 0, 1, 1], [], []>} : vector<64x768xbf16>, vector<768x256xbf16>, vector<64x256xf32> -> vector<64x256xf32>
    %27 = arith.addf %21, %26 : vector<64x256xf32>
    %28 = vector.extract_strided_slice %20 {offsets = [1, 0, 0], sizes = [8, 8, 768], strides = [1, 1, 1]} : vector<10x8x768xbf16> to vector<8x8x768xbf16>
    %29 = vector.shape_cast %28 : vector<8x8x768xbf16> to vector<64x768xbf16>
    %c1 = arith.constant 1 : index
    %c0_19 = arith.constant 0 : index
    %c0_20 = arith.constant 0 : index
    %30 = vector.load %arg5[%c1, %c0_19, %c0_20] : memref<3x768x256xbf16, #tpu.memory_space<vmem>>, vector<1x768x256xbf16>
    %31 = vector.shape_cast %30 : vector<1x768x256xbf16> to vector<768x256xbf16>
    %cst_21 = arith.constant dense<0.000000e+00> : vector<64x256xf32>
    %32 = tpu.matmul %29, %31, %cst_21 {dimension_numbers = #tpu.dot_dimension_numbers<[1], [0], [0], [1], [0, 0, 1, 1], [], []>} : vector<64x768xbf16>, vector<768x256xbf16>, vector<64x256xf32> -> vector<64x256xf32>
    %33 = arith.addf %27, %32 : vector<64x256xf32>
    %34 = vector.extract_strided_slice %20 {offsets = [2, 0, 0], sizes = [8, 8, 768], strides = [1, 1, 1]} : vector<10x8x768xbf16> to vector<8x8x768xbf16>
    %35 = vector.shape_cast %34 : vector<8x8x768xbf16> to vector<64x768xbf16>
    %c2 = arith.constant 2 : index
    %c0_22 = arith.constant 0 : index
    %c0_23 = arith.constant 0 : index
    %36 = vector.load %arg5[%c2, %c0_22, %c0_23] : memref<3x768x256xbf16, #tpu.memory_space<vmem>>, vector<1x768x256xbf16>
    %37 = vector.shape_cast %36 : vector<1x768x256xbf16> to vector<768x256xbf16>
    %cst_24 = arith.constant dense<0.000000e+00> : vector<64x256xf32>
    %38 = tpu.matmul %35, %37, %cst_24 {dimension_numbers = #tpu.dot_dimension_numbers<[1], [0], [0], [1], [0, 0, 1, 1], [], []>} : vector<64x768xbf16>, vector<768x256xbf16>, vector<64x256xf32> -> vector<64x256xf32>
    %39 = arith.addf %33, %38 : vector<64x256xf32>
    %40 = vector.shape_cast %39 : vector<64x256xf32> to vector<1x8x8x256xf32>
    %41 = arith.truncf %40 : vector<1x8x8x256xf32> to vector<1x8x8x256xbf16>
    %c0_25 = arith.constant 0 : index
    %c0_26 = arith.constant 0 : index
    %c0_27 = arith.constant 0 : index
    %c0_28 = arith.constant 0 : index
    %42 = vector.load %arg6[%c0_25, %c0_26, %c0_27, %c0_28] : memref<1x8x8x256xbf16, #tpu.memory_space<vmem>>, vector<1x8x8x256xbf16>
    tpu.vector_store %arg6[%c0_25, %c0_26, %c0_27, %c0_28], %41 {strides = array<i32>} : memref<1x8x8x256xbf16, #tpu.memory_space<vmem>>, vector<1x8x8x256xbf16>,
    %cst_29 = arith.constant dense<0.000000e+00> : vector<256xf32>
    %43 = vector.multi_reduction <add>, %39, %cst_29 [0] : vector<64x256xf32> to vector<256xf32>
    %44 = vector.shape_cast %43 : vector<256xf32> to vector<1x256xf32>
    %cst_30 = arith.constant 1.562500e-02 : f32
    %45 = vector.broadcast %cst_30 : f32 to vector<1x256xf32>
    %46 = arith.mulf %44, %45 : vector<1x256xf32>
    %47 = vector.broadcast %46 : vector<1x256xf32> to vector<64x256xf32>
    %48 = arith.subf %39, %47 : vector<64x256xf32>
    %49 = arith.mulf %48, %48 : vector<64x256xf32>
    %cst_31 = arith.constant dense<0.000000e+00> : vector<256xf32>
    %50 = vector.multi_reduction <add>, %49, %cst_31 [0] : vector<64x256xf32> to vector<256xf32>
    %51 = vector.shape_cast %50 : vector<256xf32> to vector<1x256xf32>
    %52 = tpu.concatenate %44, %51 in 0 : vector<1x256xf32>, vector<1x256xf32> -> vector<2x256xf32>
    %53 = vector.shape_cast %52 : vector<2x256xf32> to vector<1x1x2x256xf32>
    %c0_32 = arith.constant 0 : index
    %c0_33 = arith.constant 0 : index
    %c0_34 = arith.constant 0 : index
    %c0_35 = arith.constant 0 : index
    %54 = vector.load %arg7[%c0_32, %c0_33, %c0_34, %c0_35] : memref<1x1x2x256xf32, #tpu.memory_space<vmem>>, vector<1x1x2x256xf32>
    tpu.vector_store %arg7[%c0_32, %c0_33, %c0_34, %c0_35], %53 {strides = array<i32>} : memref<1x1x2x256xf32, #tpu.memory_space<vmem>>, vector<1x1x2x256xf32>,
    return
  }
  func.func @transform_0(%arg0: i32, %arg1: i32) -> (i32, i32, i32, i32) {
    %c8_i32 = arith.constant 8 : i32
    %0 = arith.muli %arg1, %c8_i32 : i32
    %c1_i32 = arith.constant 1 : i32
    %1 = arith.subi %0, %c1_i32 : i32
    %c0_i32 = arith.constant 0 : i32
    %2 = arith.maxsi %1, %c0_i32 : i32
    %c0_i32_0 = arith.constant 0 : i32
    %c0_i32_1 = arith.constant 0 : i32
    %c0_i32_2 = arith.constant 0 : i32
    return %arg0, %2, %c0_i32_0, %c0_i32_1 : i32, i32, i32, i32
  }
  func.func @transform_1(%arg0: i32, %arg1: i32) -> (i32, i32, i32, i32) {
    %c0_i32 = arith.constant 0 : i32
    %c0_i32_0 = arith.constant 0 : i32
    %c0_i32_1 = arith.constant 0 : i32
    return %arg0, %arg1, %c0_i32, %c0_i32_0 : i32, i32, i32, i32
  }
  func.func @transform_2(%arg0: i32, %arg1: i32) -> (i32, i32, i32, i32) {
    %c1_i32 = arith.constant 1 : i32
    %0 = arith.addi %arg1, %c1_i32 : i32
    %c8_i32 = arith.constant 8 : i32
    %1 = arith.muli %0, %c8_i32 : i32
    %c7_i32 = arith.constant 7 : i32
    %2 = arith.minsi %1, %c7_i32 : i32
    %c0_i32 = arith.constant 0 : i32
    %c0_i32_0 = arith.constant 0 : i32
    %c0_i32_1 = arith.constant 0 : i32
    return %arg0, %2, %c0_i32, %c0_i32_0 : i32, i32, i32, i32
  }
  func.func @transform_3(%arg0: i32, %arg1: i32) -> (i32, i32, i32) {
    %c0_i32 = arith.constant 0 : i32
    %c0_i32_0 = arith.constant 0 : i32
    %c0_i32_1 = arith.constant 0 : i32
    %c0_i32_2 = arith.constant 0 : i32
    return %c0_i32, %c0_i32_0, %c0_i32_1 : i32, i32, i32
  }
  func.func @transform_4(%arg0: i32, %arg1: i32) -> (i32, i32, i32, i32) {
    %c0_i32 = arith.constant 0 : i32
    %c0_i32_0 = arith.constant 0 : i32
    %c0_i32_1 = arith.constant 0 : i32
    return %arg0, %arg1, %c0_i32, %c0_i32_0 : i32, i32, i32, i32
  }
  func.func @transform_5(%arg0: i32, %arg1: i32) -> (i32, i32, i32, i32) {
    %c0_i32 = arith.constant 0 : i32
    %c0_i32_0 = arith.constant 0 : i32
    %c0_i32_1 = arith.constant 0 : i32
    return %arg0, %arg1, %c0_i32, %c0_i32_0 : i32, i32, i32, i32
  }
}

module attributes {stable_mosaic.version = 11 : i64} {
  func.func @kernel(%arg0: i32, %arg1: i32, %arg2: memref<1x1x8x256xbf16, #tpu.memory_space<vmem>>, %arg3: memref<1x8x8x256xbf16, #tpu.memory_space<vmem>>, %arg4: memref<1x1x8x256xbf16, #tpu.memory_space<vmem>>, %arg5: memref<3x768x256xbf16, #tpu.memory_space<vmem>>, %arg6: memref<1x1x1x256xf32, #tpu.memory_space<vmem>>, %arg7: memref<1x1x1x256xf32, #tpu.memory_space<vmem>>, %arg8: memref<1x8x8x256xbf16, #tpu.memory_space<vmem>>, %arg9: memref<1x1x2x256xf32, #tpu.memory_space<vmem>>) attributes {dimension_semantics = [#tpu.dimension_semantics<parallel>, #tpu.dimension_semantics<parallel>], iteration_bounds = array<i64: 2, 1>, scalar_prefetch = 0 : i64, scratch_operands = 0 : i64, tpu.core_type = #tpu.core_type<tc>, window_params = [{transform_indices = @transform_0, window_bounds = array<i64: 1, 1, 8, 256>}, {transform_indices = @transform_1, window_bounds = array<i64: 1, 8, 8, 256>}, {transform_indices = @transform_2, window_bounds = array<i64: 1, 1, 8, 256>}, {pipeline_mode = #tpu.pipeline_mode<synchronous>, transform_indices = @transform_3, window_bounds = array<i64: 3, 768, 256>}, {pipeline_mode = #tpu.pipeline_mode<synchronous>, transform_indices = @transform_4, window_bounds = array<i64: 1, 1, 1, 256>}, {pipeline_mode = #tpu.pipeline_mode<synchronous>, transform_indices = @transform_5, window_bounds = array<i64: 1, 1, 1, 256>}, {transform_indices = @transform_6, window_bounds = array<i64: 1, 8, 8, 256>}, {transform_indices = @transform_7, window_bounds = array<i64: 1, 1, 2, 256>}]} {
    %c0 = arith.constant 0 : index
    %c0_0 = arith.constant 0 : index
    %c0_1 = arith.constant 0 : index
    %c0_2 = arith.constant 0 : index
    %0 = vector.load %arg2[%c0, %c0_0, %c0_1, %c0_2] : memref<1x1x8x256xbf16, #tpu.memory_space<vmem>>, vector<1x1x8x256xbf16>
    %1 = vector.shape_cast %0 : vector<1x1x8x256xbf16> to vector<1x8x256xbf16>
    %2 = arith.extf %1 : vector<1x8x256xbf16> to vector<1x8x256xf32>
    %c0_3 = arith.constant 0 : index
    %c0_4 = arith.constant 0 : index
    %c0_5 = arith.constant 0 : index
    %c0_6 = arith.constant 0 : index
    %3 = vector.load %arg6[%c0_3, %c0_4, %c0_5, %c0_6] : memref<1x1x1x256xf32, #tpu.memory_space<vmem>>, vector<1x1x1x256xf32>
    %4 = vector.shape_cast %3 : vector<1x1x1x256xf32> to vector<256xf32>
    %5 = vector.shape_cast %4 : vector<256xf32> to vector<1x1x256xf32>
    %6 = vector.broadcast %5 : vector<1x1x256xf32> to vector<1x8x256xf32>
    %7 = arith.mulf %2, %6 : vector<1x8x256xf32>
    %c0_7 = arith.constant 0 : index
    %c0_8 = arith.constant 0 : index
    %c0_9 = arith.constant 0 : index
    %c0_10 = arith.constant 0 : index
    %8 = vector.load %arg7[%c0_7, %c0_8, %c0_9, %c0_10] : memref<1x1x1x256xf32, #tpu.memory_space<vmem>>, vector<1x1x1x256xf32>
    %9 = vector.shape_cast %8 : vector<1x1x1x256xf32> to vector<256xf32>
    %10 = vector.shape_cast %9 : vector<256xf32> to vector<1x1x256xf32>
    %11 = vector.broadcast %10 : vector<1x1x256xf32> to vector<1x8x256xf32>
    %12 = arith.addf %7, %11 : vector<1x8x256xf32>
    %cst = arith.constant 0.000000e+00 : f32
    %13 = vector.broadcast %cst : f32 to vector<1x8x256xf32>
    %14 = arith.maximumf %12, %13 : vector<1x8x256xf32>
    %15 = arith.truncf %14 : vector<1x8x256xf32> to vector<1x8x256xbf16>
    %c0_11 = arith.constant 0 : index
    %c0_12 = arith.constant 0 : index
    %c0_13 = arith.constant 0 : index
    %c0_14 = arith.constant 0 : index
    %16 = vector.load %arg3[%c0_11, %c0_12, %c0_13, %c0_14] : memref<1x8x8x256xbf16, #tpu.memory_space<vmem>>, vector<1x8x8x256xbf16>
    %17 = vector.shape_cast %16 : vector<1x8x8x256xbf16> to vector<8x8x256xbf16>
    %18 = arith.extf %17 : vector<8x8x256xbf16> to vector<8x8x256xf32>
    %c0_15 = arith.constant 0 : index
    %c0_16 = arith.constant 0 : index
    %c0_17 = arith.constant 0 : index
    %c0_18 = arith.constant 0 : index
    %19 = vector.load %arg6[%c0_15, %c0_16, %c0_17, %c0_18] : memref<1x1x1x256xf32, #tpu.memory_space<vmem>>, vector<1x1x1x256xf32>
    %20 = vector.shape_cast %19 : vector<1x1x1x256xf32> to vector<256xf32>
    %21 = vector.shape_cast %20 : vector<256xf32> to vector<1x1x256xf32>
    %22 = vector.broadcast %21 : vector<1x1x256xf32> to vector<8x8x256xf32>
    %23 = arith.mulf %18, %22 : vector<8x8x256xf32>
    %c0_19 = arith.constant 0 : index
    %c0_20 = arith.constant 0 : index
    %c0_21 = arith.constant 0 : index
    %c0_22 = arith.constant 0 : index
    %24 = vector.load %arg7[%c0_19, %c0_20, %c0_21, %c0_22] : memref<1x1x1x256xf32, #tpu.memory_space<vmem>>, vector<1x1x1x256xf32>
    %25 = vector.shape_cast %24 : vector<1x1x1x256xf32> to vector<256xf32>
    %26 = vector.shape_cast %25 : vector<256xf32> to vector<1x1x256xf32>
    %27 = vector.broadcast %26 : vector<1x1x256xf32> to vector<8x8x256xf32>
    %28 = arith.addf %23, %27 : vector<8x8x256xf32>
    %cst_23 = arith.constant 0.000000e+00 : f32
    %29 = vector.broadcast %cst_23 : f32 to vector<8x8x256xf32>
    %30 = arith.maximumf %28, %29 : vector<8x8x256xf32>
    %31 = arith.truncf %30 : vector<8x8x256xf32> to vector<8x8x256xbf16>
    %c0_24 = arith.constant 0 : index
    %c0_25 = arith.constant 0 : index
    %c0_26 = arith.constant 0 : index
    %c0_27 = arith.constant 0 : index
    %32 = vector.load %arg4[%c0_24, %c0_25, %c0_26, %c0_27] : memref<1x1x8x256xbf16, #tpu.memory_space<vmem>>, vector<1x1x8x256xbf16>
    %33 = vector.shape_cast %32 : vector<1x1x8x256xbf16> to vector<1x8x256xbf16>
    %34 = arith.extf %33 : vector<1x8x256xbf16> to vector<1x8x256xf32>
    %c0_28 = arith.constant 0 : index
    %c0_29 = arith.constant 0 : index
    %c0_30 = arith.constant 0 : index
    %c0_31 = arith.constant 0 : index
    %35 = vector.load %arg6[%c0_28, %c0_29, %c0_30, %c0_31] : memref<1x1x1x256xf32, #tpu.memory_space<vmem>>, vector<1x1x1x256xf32>
    %36 = vector.shape_cast %35 : vector<1x1x1x256xf32> to vector<256xf32>
    %37 = vector.shape_cast %36 : vector<256xf32> to vector<1x1x256xf32>
    %38 = vector.broadcast %37 : vector<1x1x256xf32> to vector<1x8x256xf32>
    %39 = arith.mulf %34, %38 : vector<1x8x256xf32>
    %c0_32 = arith.constant 0 : index
    %c0_33 = arith.constant 0 : index
    %c0_34 = arith.constant 0 : index
    %c0_35 = arith.constant 0 : index
    %40 = vector.load %arg7[%c0_32, %c0_33, %c0_34, %c0_35] : memref<1x1x1x256xf32, #tpu.memory_space<vmem>>, vector<1x1x1x256xf32>
    %41 = vector.shape_cast %40 : vector<1x1x1x256xf32> to vector<256xf32>
    %42 = vector.shape_cast %41 : vector<256xf32> to vector<1x1x256xf32>
    %43 = vector.broadcast %42 : vector<1x1x256xf32> to vector<1x8x256xf32>
    %44 = arith.addf %39, %43 : vector<1x8x256xf32>
    %cst_36 = arith.constant 0.000000e+00 : f32
    %45 = vector.broadcast %cst_36 : f32 to vector<1x8x256xf32>
    %46 = arith.maximumf %44, %45 : vector<1x8x256xf32>
    %47 = arith.truncf %46 : vector<1x8x256xf32> to vector<1x8x256xbf16>
    %c0_i32 = arith.constant 0 : i32
    %48 = arith.cmpi sgt, %arg1, %c0_i32 : i32
    %cst_37 = arith.constant 0.000000e+00 : f32
    %49 = arith.truncf %cst_37 : f32 to bf16
    %50 = vector.broadcast %49 : bf16 to vector<1x8x256xbf16>
    %51 = arith.select %48, %15, %50 : vector<1x8x256xbf16>
    %c0_i32_38 = arith.constant 0 : i32
    %52 = arith.cmpi slt, %arg1, %c0_i32_38 : i32
    %cst_39 = arith.constant 0.000000e+00 : f32
    %53 = arith.truncf %cst_39 : f32 to bf16
    %54 = vector.broadcast %53 : bf16 to vector<1x8x256xbf16>
    %55 = arith.select %52, %47, %54 : vector<1x8x256xbf16>
    %56 = tpu.concatenate %51, %31, %55 in 0 : vector<1x8x256xbf16>, vector<8x8x256xbf16>, vector<1x8x256xbf16> -> vector<10x8x256xbf16>
    %cst_40 = arith.constant 0.000000e+00 : bf16
    %57 = vector.broadcast %cst_40 : bf16 to vector<10x1x256xbf16>
    %58 = tpu.concatenate %57, %56, %57 in 1 : vector<10x1x256xbf16>, vector<10x8x256xbf16>, vector<10x1x256xbf16> -> vector<10x10x256xbf16>
    %59 = vector.extract_strided_slice %58 {offsets = [0, 0, 0], sizes = [10, 8, 256], strides = [1, 1, 1]} : vector<10x10x256xbf16> to vector<10x8x256xbf16>
    %60 = vector.extract_strided_slice %58 {offsets = [0, 1, 0], sizes = [10, 8, 256], strides = [1, 1, 1]} : vector<10x10x256xbf16> to vector<10x8x256xbf16>
    %61 = vector.extract_strided_slice %58 {offsets = [0, 2, 0], sizes = [10, 8, 256], strides = [1, 1, 1]} : vector<10x10x256xbf16> to vector<10x8x256xbf16>
    %62 = tpu.concatenate %59, %60, %61 in 2 : vector<10x8x256xbf16>, vector<10x8x256xbf16>, vector<10x8x256xbf16> -> vector<10x8x768xbf16>
    %cst_41 = arith.constant 0.000000e+00 : f32
    %63 = vector.broadcast %cst_41 : f32 to vector<64x256xf32>
    %64 = vector.extract_strided_slice %62 {offsets = [0, 0, 0], sizes = [8, 8, 768], strides = [1, 1, 1]} : vector<10x8x768xbf16> to vector<8x8x768xbf16>
    %65 = vector.shape_cast %64 : vector<8x8x768xbf16> to vector<64x768xbf16>
    %c0_42 = arith.constant 0 : index
    %c0_43 = arith.constant 0 : index
    %c0_44 = arith.constant 0 : index
    %66 = vector.load %arg5[%c0_42, %c0_43, %c0_44] : memref<3x768x256xbf16, #tpu.memory_space<vmem>>, vector<1x768x256xbf16>
    %67 = vector.shape_cast %66 : vector<1x768x256xbf16> to vector<768x256xbf16>
    %cst_45 = arith.constant dense<0.000000e+00> : vector<64x256xf32>
    %68 = tpu.matmul %65, %67, %cst_45 {dimension_numbers = #tpu.dot_dimension_numbers<[1], [0], [0], [1], [0, 0, 1, 1], [], []>} : vector<64x768xbf16>, vector<768x256xbf16>, vector<64x256xf32> -> vector<64x256xf32>
    %69 = arith.addf %63, %68 : vector<64x256xf32>
    %70 = vector.extract_strided_slice %62 {offsets = [1, 0, 0], sizes = [8, 8, 768], strides = [1, 1, 1]} : vector<10x8x768xbf16> to vector<8x8x768xbf16>
    %71 = vector.shape_cast %70 : vector<8x8x768xbf16> to vector<64x768xbf16>
    %c1 = arith.constant 1 : index
    %c0_46 = arith.constant 0 : index
    %c0_47 = arith.constant 0 : index
    %72 = vector.load %arg5[%c1, %c0_46, %c0_47] : memref<3x768x256xbf16, #tpu.memory_space<vmem>>, vector<1x768x256xbf16>
    %73 = vector.shape_cast %72 : vector<1x768x256xbf16> to vector<768x256xbf16>
    %cst_48 = arith.constant dense<0.000000e+00> : vector<64x256xf32>
    %74 = tpu.matmul %71, %73, %cst_48 {dimension_numbers = #tpu.dot_dimension_numbers<[1], [0], [0], [1], [0, 0, 1, 1], [], []>} : vector<64x768xbf16>, vector<768x256xbf16>, vector<64x256xf32> -> vector<64x256xf32>
    %75 = arith.addf %69, %74 : vector<64x256xf32>
    %76 = vector.extract_strided_slice %62 {offsets = [2, 0, 0], sizes = [8, 8, 768], strides = [1, 1, 1]} : vector<10x8x768xbf16> to vector<8x8x768xbf16>
    %77 = vector.shape_cast %76 : vector<8x8x768xbf16> to vector<64x768xbf16>
    %c2 = arith.constant 2 : index
    %c0_49 = arith.constant 0 : index
    %c0_50 = arith.constant 0 : index
    %78 = vector.load %arg5[%c2, %c0_49, %c0_50] : memref<3x768x256xbf16, #tpu.memory_space<vmem>>, vector<1x768x256xbf16>
    %79 = vector.shape_cast %78 : vector<1x768x256xbf16> to vector<768x256xbf16>
    %cst_51 = arith.constant dense<0.000000e+00> : vector<64x256xf32>
    %80 = tpu.matmul %77, %79, %cst_51 {dimension_numbers = #tpu.dot_dimension_numbers<[1], [0], [0], [1], [0, 0, 1, 1], [], []>} : vector<64x768xbf16>, vector<768x256xbf16>, vector<64x256xf32> -> vector<64x256xf32>
    %81 = arith.addf %75, %80 : vector<64x256xf32>
    %82 = vector.shape_cast %81 : vector<64x256xf32> to vector<1x8x8x256xf32>
    %83 = arith.truncf %82 : vector<1x8x8x256xf32> to vector<1x8x8x256xbf16>
    %c0_52 = arith.constant 0 : index
    %c0_53 = arith.constant 0 : index
    %c0_54 = arith.constant 0 : index
    %c0_55 = arith.constant 0 : index
    %84 = vector.load %arg8[%c0_52, %c0_53, %c0_54, %c0_55] : memref<1x8x8x256xbf16, #tpu.memory_space<vmem>>, vector<1x8x8x256xbf16>
    tpu.vector_store %arg8[%c0_52, %c0_53, %c0_54, %c0_55], %83 {strides = array<i32>} : memref<1x8x8x256xbf16, #tpu.memory_space<vmem>>, vector<1x8x8x256xbf16>,
    %cst_56 = arith.constant dense<0.000000e+00> : vector<256xf32>
    %85 = vector.multi_reduction <add>, %81, %cst_56 [0] : vector<64x256xf32> to vector<256xf32>
    %86 = vector.shape_cast %85 : vector<256xf32> to vector<1x256xf32>
    %cst_57 = arith.constant 1.562500e-02 : f32
    %87 = vector.broadcast %cst_57 : f32 to vector<1x256xf32>
    %88 = arith.mulf %86, %87 : vector<1x256xf32>
    %89 = vector.broadcast %88 : vector<1x256xf32> to vector<64x256xf32>
    %90 = arith.subf %81, %89 : vector<64x256xf32>
    %91 = arith.mulf %90, %90 : vector<64x256xf32>
    %cst_58 = arith.constant dense<0.000000e+00> : vector<256xf32>
    %92 = vector.multi_reduction <add>, %91, %cst_58 [0] : vector<64x256xf32> to vector<256xf32>
    %93 = vector.shape_cast %92 : vector<256xf32> to vector<1x256xf32>
    %94 = tpu.concatenate %86, %93 in 0 : vector<1x256xf32>, vector<1x256xf32> -> vector<2x256xf32>
    %95 = vector.shape_cast %94 : vector<2x256xf32> to vector<1x1x2x256xf32>
    %c0_59 = arith.constant 0 : index
    %c0_60 = arith.constant 0 : index
    %c0_61 = arith.constant 0 : index
    %c0_62 = arith.constant 0 : index
    %96 = vector.load %arg9[%c0_59, %c0_60, %c0_61, %c0_62] : memref<1x1x2x256xf32, #tpu.memory_space<vmem>>, vector<1x1x2x256xf32>
    tpu.vector_store %arg9[%c0_59, %c0_60, %c0_61, %c0_62], %95 {strides = array<i32>} : memref<1x1x2x256xf32, #tpu.memory_space<vmem>>, vector<1x1x2x256xf32>,
    return
  }
  func.func @transform_0(%arg0: i32, %arg1: i32) -> (i32, i32, i32, i32) {
    %c8_i32 = arith.constant 8 : i32
    %0 = arith.muli %arg1, %c8_i32 : i32
    %c1_i32 = arith.constant 1 : i32
    %1 = arith.subi %0, %c1_i32 : i32
    %c0_i32 = arith.constant 0 : i32
    %2 = arith.maxsi %1, %c0_i32 : i32
    %c0_i32_0 = arith.constant 0 : i32
    %c0_i32_1 = arith.constant 0 : i32
    %c0_i32_2 = arith.constant 0 : i32
    return %arg0, %2, %c0_i32_0, %c0_i32_1 : i32, i32, i32, i32
  }
  func.func @transform_1(%arg0: i32, %arg1: i32) -> (i32, i32, i32, i32) {
    %c0_i32 = arith.constant 0 : i32
    %c0_i32_0 = arith.constant 0 : i32
    %c0_i32_1 = arith.constant 0 : i32
    return %arg0, %arg1, %c0_i32, %c0_i32_0 : i32, i32, i32, i32
  }
  func.func @transform_2(%arg0: i32, %arg1: i32) -> (i32, i32, i32, i32) {
    %c1_i32 = arith.constant 1 : i32
    %0 = arith.addi %arg1, %c1_i32 : i32
    %c8_i32 = arith.constant 8 : i32
    %1 = arith.muli %0, %c8_i32 : i32
    %c7_i32 = arith.constant 7 : i32
    %2 = arith.minsi %1, %c7_i32 : i32
    %c0_i32 = arith.constant 0 : i32
    %c0_i32_0 = arith.constant 0 : i32
    %c0_i32_1 = arith.constant 0 : i32
    return %arg0, %2, %c0_i32, %c0_i32_0 : i32, i32, i32, i32
  }
  func.func @transform_3(%arg0: i32, %arg1: i32) -> (i32, i32, i32) {
    %c0_i32 = arith.constant 0 : i32
    %c0_i32_0 = arith.constant 0 : i32
    %c0_i32_1 = arith.constant 0 : i32
    %c0_i32_2 = arith.constant 0 : i32
    return %c0_i32, %c0_i32_0, %c0_i32_1 : i32, i32, i32
  }
  func.func @transform_4(%arg0: i32, %arg1: i32) -> (i32, i32, i32, i32) {
    %c0_i32 = arith.constant 0 : i32
    %c0_i32_0 = arith.constant 0 : i32
    %c0_i32_1 = arith.constant 0 : i32
    %c0_i32_2 = arith.constant 0 : i32
    %c0_i32_3 = arith.constant 0 : i32
    return %c0_i32, %c0_i32_0, %c0_i32_1, %c0_i32_2 : i32, i32, i32, i32
  }
  func.func @transform_5(%arg0: i32, %arg1: i32) -> (i32, i32, i32, i32) {
    %c0_i32 = arith.constant 0 : i32
    %c0_i32_0 = arith.constant 0 : i32
    %c0_i32_1 = arith.constant 0 : i32
    %c0_i32_2 = arith.constant 0 : i32
    %c0_i32_3 = arith.constant 0 : i32
    return %c0_i32, %c0_i32_0, %c0_i32_1, %c0_i32_2 : i32, i32, i32, i32
  }
  func.func @transform_6(%arg0: i32, %arg1: i32) -> (i32, i32, i32, i32) {
    %c0_i32 = arith.constant 0 : i32
    %c0_i32_0 = arith.constant 0 : i32
    %c0_i32_1 = arith.constant 0 : i32
    return %arg0, %arg1, %c0_i32, %c0_i32_0 : i32, i32, i32, i32
  }
  func.func @transform_7(%arg0: i32, %arg1: i32) -> (i32, i32, i32, i32) {
    %c0_i32 = arith.constant 0 : i32
    %c0_i32_0 = arith.constant 0 : i32
    %c0_i32_1 = arith.constant 0 : i32
    return %arg0, %arg1, %c0_i32, %c0_i32_0 : i32, i32, i32, i32
  }
}

module attributes {stable_mosaic.version = 11 : i64} {
  func.func @_norm_res_kernel(%arg0: i32, %arg1: i32, %arg2: memref<1x8x8x256xbf16, #tpu.memory_space<vmem>>, %arg3: memref<1x1x1x256xf32, #tpu.memory_space<vmem>>, %arg4: memref<1x1x1x256xf32, #tpu.memory_space<vmem>>, %arg5: memref<1x8x8x256xf32, #tpu.memory_space<vmem>>, %arg6: memref<1x8x8x256xf32, #tpu.memory_space<vmem>>) attributes {dimension_semantics = [#tpu.dimension_semantics<parallel>, #tpu.dimension_semantics<parallel>], iteration_bounds = array<i64: 2, 1>, scalar_prefetch = 0 : i64, scratch_operands = 0 : i64, tpu.core_type = #tpu.core_type<tc>, window_params = [{transform_indices = @transform_0, window_bounds = array<i64: 1, 8, 8, 256>}, {pipeline_mode = #tpu.pipeline_mode<synchronous>, transform_indices = @transform_1, window_bounds = array<i64: 1, 1, 1, 256>}, {pipeline_mode = #tpu.pipeline_mode<synchronous>, transform_indices = @transform_2, window_bounds = array<i64: 1, 1, 1, 256>}, {transform_indices = @transform_3, window_bounds = array<i64: 1, 8, 8, 256>}, {transform_indices = @transform_4, window_bounds = array<i64: 1, 8, 8, 256>}]} {
    %c0 = arith.constant 0 : index
    %c0_0 = arith.constant 0 : index
    %c0_1 = arith.constant 0 : index
    %c0_2 = arith.constant 0 : index
    %0 = vector.load %arg2[%c0, %c0_0, %c0_1, %c0_2] : memref<1x8x8x256xbf16, #tpu.memory_space<vmem>>, vector<1x8x8x256xbf16>
    %1 = arith.extf %0 : vector<1x8x8x256xbf16> to vector<1x8x8x256xf32>
    %c0_3 = arith.constant 0 : index
    %c0_4 = arith.constant 0 : index
    %c0_5 = arith.constant 0 : index
    %c0_6 = arith.constant 0 : index
    %2 = vector.load %arg3[%c0_3, %c0_4, %c0_5, %c0_6] : memref<1x1x1x256xf32, #tpu.memory_space<vmem>>, vector<1x1x1x256xf32>
    %3 = vector.broadcast %2 : vector<1x1x1x256xf32> to vector<1x8x8x256xf32>
    %4 = arith.mulf %1, %3 : vector<1x8x8x256xf32>
    %c0_7 = arith.constant 0 : index
    %c0_8 = arith.constant 0 : index
    %c0_9 = arith.constant 0 : index
    %c0_10 = arith.constant 0 : index
    %5 = vector.load %arg4[%c0_7, %c0_8, %c0_9, %c0_10] : memref<1x1x1x256xf32, #tpu.memory_space<vmem>>, vector<1x1x1x256xf32>
    %6 = vector.broadcast %5 : vector<1x1x1x256xf32> to vector<1x8x8x256xf32>
    %7 = arith.addf %4, %6 : vector<1x8x8x256xf32>
    %c0_11 = arith.constant 0 : index
    %c0_12 = arith.constant 0 : index
    %c0_13 = arith.constant 0 : index
    %c0_14 = arith.constant 0 : index
    %8 = vector.load %arg5[%c0_11, %c0_12, %c0_13, %c0_14] : memref<1x8x8x256xf32, #tpu.memory_space<vmem>>, vector<1x8x8x256xf32>
    %9 = arith.addf %7, %8 : vector<1x8x8x256xf32>
    %c0_15 = arith.constant 0 : index
    %c0_16 = arith.constant 0 : index
    %c0_17 = arith.constant 0 : index
    %c0_18 = arith.constant 0 : index
    %10 = vector.load %arg6[%c0_15, %c0_16, %c0_17, %c0_18] : memref<1x8x8x256xf32, #tpu.memory_space<vmem>>, vector<1x8x8x256xf32>
    tpu.vector_store %arg6[%c0_15, %c0_16, %c0_17, %c0_18], %9 {strides = array<i32>} : memref<1x8x8x256xf32, #tpu.memory_space<vmem>>, vector<1x8x8x256xf32>,
    return
  }
  func.func @transform_0(%arg0: i32, %arg1: i32) -> (i32, i32, i32, i32) {
    %c0_i32 = arith.constant 0 : i32
    %c0_i32_0 = arith.constant 0 : i32
    %c0_i32_1 = arith.constant 0 : i32
    return %arg0, %arg1, %c0_i32, %c0_i32_0 : i32, i32, i32, i32
  }
  func.func @transform_1(%arg0: i32, %arg1: i32) -> (i32, i32, i32, i32) {
    %c0_i32 = arith.constant 0 : i32
    %c0_i32_0 = arith.constant 0 : i32
    %c0_i32_1 = arith.constant 0 : i32
    %c0_i32_2 = arith.constant 0 : i32
    %c0_i32_3 = arith.constant 0 : i32
    return %c0_i32, %c0_i32_0, %c0_i32_1, %c0_i32_2 : i32, i32, i32, i32
  }
  func.func @transform_2(%arg0: i32, %arg1: i32) -> (i32, i32, i32, i32) {
    %c0_i32 = arith.constant 0 : i32
    %c0_i32_0 = arith.constant 0 : i32
    %c0_i32_1 = arith.constant 0 : i32
    %c0_i32_2 = arith.constant 0 : i32
    %c0_i32_3 = arith.constant 0 : i32
    return %c0_i32, %c0_i32_0, %c0_i32_1, %c0_i32_2 : i32, i32, i32, i32
  }
  func.func @transform_3(%arg0: i32, %arg1: i32) -> (i32, i32, i32, i32) {
    %c0_i32 = arith.constant 0 : i32
    %c0_i32_0 = arith.constant 0 : i32
    %c0_i32_1 = arith.constant 0 : i32
    return %arg0, %arg1, %c0_i32, %c0_i32_0 : i32, i32, i32, i32
  }
  func.func @transform_4(%arg0: i32, %arg1: i32) -> (i32, i32, i32, i32) {
    %c0_i32 = arith.constant 0 : i32
    %c0_i32_0 = arith.constant 0 : i32
    %c0_i32_1 = arith.constant 0 : i32
    return %arg0, %arg1, %c0_i32, %c0_i32_0 : i32, i32, i32, i32
  }
}

</mosaic_0001>

<bundles_post_ra>
// kernel: residual_block.5
= control target key start
LH: loop header
LB: loop body
LE: loop exit
PB: predicated region body
PF: predicated region fallthrough
CT: control target
= control target key end

     0   :  { %9 = vsyncpa [#allocation3], 0  ;;  %s918_s0 = inlined_call_operand.vmem [shape: bf16[2,8,8,256], index: 0, kind: input, shape index: {}]   ;;  %s919_s1 = inlined_call_operand.vmem [shape: f32[1,1,1,256], index: 1, kind: input, shape index: {}]   ;;  %s920_s2 = inlined_call_operand.vmem [shape: f32[1,1,1,256], index: 2, kind: input, shape index: {}]   ;;  %s921_s3 = inlined_call_operand.vmem [shape: f32[2,8,8,256], index: 3, kind: input, shape index: {}]   ;;  %s922_s4 = inlined_call_operand.hbm [shape: f32[2,8,8,256], index: 4, kind: output, shape index: {}]  }
   0x1   :  { %11 = vsyncpa [#allocation3 + $0x1], 0  ;;  %s700_s15 = smov 0   ;;  %s702_s16 = smov 0  }
   0x2   :  { %s704_s17 = smov 0   ;;  %s706_s18 = smov 0  }
   0x3   :  { %s708_s19 = smov 0   ;;  %s710_s20 = smov 0  }
   0x4 LB: > { %s517_s21 = sadd.s32 4294967295, %s670_s20   ;;  %s518_s22 = sadd.s32 4294967294, %s670_s20   ;;  %s670_s20 = sphi %s710_s20, %s17_s20   ;;  %s666_s19 = sphi %s708_s19, %s929_s19   ;;  %s662_s18 = sphi %s706_s18, %s928_s18   ;;  %s658_s17 = sphi %s704_s17, %s927_s17   ;;  %s654_s16 = sphi %s702_s16, %s926_s16   ;;  %s650_s15 = sphi %s700_s15, %s925_s15  }
   0x5   : > { %s29_s23 = sadd.s32 1, %s666_s19  ;;  %s136_s24 = sadd.s32 1, %s658_s17 }
   0x6   : > { %p31_p0 = scmp.ge.s32.totalorder %s29_s23, 2  ;;  %p146_p1 = scmp.ne.s32.totalorder %s658_s17, %s654_s16 }
   0x7   : > { %p147_p2 = scmp.eq.s32.totalorder %s517_s21, 1  ;;  %p152_p3 = scmp.ne.s32.totalorder %s654_s16, %s650_s15 }
   0x8   : > { %s931_s23 = smov (%p31_p0, %s29_s23), 0  ;;  %p153_p5 = scmp.eq.s32.totalorder %s518_s22, 1 }
   0x9   : > { %p740_p4 = por %p147_p2, %p146_p1  ;;  %s131_s26 = ssub.s32 %s666_s19, %s931_s23 }
   0xa   : > { %p521_p6 = scmp.ge.s32.totalorder %s670_s20, 1  ;;  %p134_p7 = scmp.eq.s32.totalorder %s131_s26, 0 }
   0xb   : > { %p747_p8 = por %p153_p5, %p152_p3  ;;  %p205_p9 = scmp.lt.s32.totalorder %s670_s20, 3 }
   0xc   : > { %s753_s28 = scalar_select %p134_p7, %s658_s17, %s136_s24  }
   0xd   : > { %p206_p10 = pnand %p521_p6, %p205_p9 }
   0xe   : > { %p247_p11 = scmp.lt.s32.totalorder (!%p206_p10), %s662_s18, 1  ;;  %v295_v0 = vlaneseq (!%p206_p10)  ;;  %v293_v2 = vld [vmem:[%s919_s1] sm:$0x3] (!%p206_p10)  ;;  %s243_s13 = sand.u32 (!%p206_p10), 1, %s654_s16  }
   0xf   : > { %209 = sbr.rel (%p206_p10) target bundleno = 61 (0x3d), region = 36  ;;  %v321_v5 = vld [vmem:[%s920_s2] sm:$0x3] (!%p206_p10)  ;;  %s787_s24 = sshll.u32 (!%p206_p10), %s243_s13, 7 }
  0x10   : > { %v296_v1 = vshrl.u32 (!%p206_p10), %v295_v0, 7  ;;  %s818_s26 = scalar_lea.vmem (!%p206_p10), [#allocation2], %s787_s24  ;;  %s672_s9 = smov (!%p206_p10), [#allocation2]  }
  0x11   : > { %s414_s30 = sshll.u32 (!%p206_p10), %s818_s26, 4  ;;  %s596_s10 = sshll.u32 (!%p206_p10), %s672_s9, 4  ;;  %s862_s30 = int_to_ptr.vmem [resolvable:$true] %s414_s30  ;;  %s597_s10 = int_to_ptr.vmem [resolvable:$false] %s596_s10 }
  0x12   : > { %v297_v3 = vsub.s32 (!%p206_p10), 0, %v296_v1  ;;  %v301_v4 = vsub.s32 (!%p206_p10), 1, %v296_v1  ;;  %s592_s8 = scalar_lea.vmem (!%p206_p10), %s862_s30, 2048  ;;  %s598_s11 = scalar_lea.vmem (!%p206_p10), %s597_s10, 4096 }
  0x13   : > { %p593_p12 = scmp.ne.s32.totalorder (!%p206_p10), %s862_s30, %s592_s8  ;;  %p599_p1 = scmp.lt.s32.totalorder (!%p206_p10), %s862_s30, %s597_s10 }
  0x14   : > { %v768_v6 = vrot.slane (!%p206_p10), %v293_v2, %v297_v3  ;;  %v770_v7 = vrot.slane (!%p206_p10), %v293_v2, %v301_v4  ;;  %v779_v10 = vrot.slane (!%p206_p10), %v321_v5, %v297_v3  ;;  %v781_v12 = vrot.slane (!%p206_p10), %v321_v5, %v301_v4  ;;  %p600_p2 = scmp.lt.s32.totalorder (!%p206_p10), %s598_s11, %s592_s8 }
  0x15   : > { %p594_p13 = pnand (!%p206_p10), %p593_p12, %p740_p4 }
  0x16   : > { %s248_s29 = scalar_select %p247_p11, %s662_s18, 1 }
  0x17   : > { %p595_p0 = pneg %p594_p13  ;;  %p601_p3 = por %p600_p2, %p599_p1 }
  0x18   : > { %s532_s6 = sshll.u32 %s248_s29, 6  ;;  %s533_s7 = sshll.u32 %s248_s29, 7 }
  0x19   : > { %s766_s12 = scalar_lea.vmem %s918_s0, %s532_s6  ;;  %s777_s22 = scalar_lea.vmem %s921_s3, %s533_s7 }
  0x1a   : > { %v269_v8 = vld [vmem:[%s766_s12] sm:$0xff]  ;;  %v270_v13 = vld [vmem:[%s766_s12 + $0x8] sm:$0xff]  ;;  %v271_v16 = vld [vmem:[%s766_s12 + $0x10] sm:$0xff]  ;;  %s534_s29 = sshll.u32 %s662_s18, 11  ;;  %s872_s7 = scalar_lea.sflag [#allocation3], %s243_s13 }
  0x1b   : > { %v277_v9 = vunpack.c.l.bf16 %v269_v8  ;;  %v278_v11 = vunpack.c.h.bf16 %v269_v8  ;;  %v279_v14 = vunpack.c.l.bf16 %v270_v13  ;;  %v280_v15 = vunpack.c.h.bf16 %v270_v13  ;;  %v272_v21 = vld [vmem:[%s766_s12 + $0x18] sm:$0xff]  ;;  %v349_v22 = vld [vmem:[%s777_s22] sm:$0xff]  ;;  %v350_v23 = vld [vmem:[%s777_s22 + $0x8] sm:$0xff]  ;;  %s860_s6 = scalar_lea.hbm %s922_s4, %s534_s29  ;;  %p602_p5 = pnand %p601_p3, %p595_p0 }
  0x1c   : > { %v281_v19 = vunpack.c.l.bf16 %v271_v16  ;;  %v282_v20 = vunpack.c.h.bf16 %v271_v16  ;;  %v283_v26 = vunpack.c.l.bf16 %v272_v21  ;;  %v284_v27 = vunpack.c.h.bf16 %v272_v21  ;;  %v351_v30 = vld [vmem:[%s777_s22 + $0x10] sm:$0xff]  ;;  %v352_v31 = vld [vmem:[%s777_s22 + $0x18] sm:$0xff]  ;;  %v353_v36 = vld [vmem:[%s777_s22 + $0x20] sm:$0xff] }
  0x1d   : > { %v305_v17 = vmul.f32 %v768_v6, %v277_v9  ;;  %v306_v18 = vmul.f32 %v770_v7, %v278_v11  ;;  %v307_v24 = vmul.f32 %v768_v6, %v279_v14  ;;  %v308_v25 = vmul.f32 %v770_v7, %v280_v15  ;;  %v354_v37 = vld [vmem:[%s777_s22 + $0x28] sm:$0xff]  ;;  %v273_v40 = vld [vmem:[%s766_s12 + $0x20] sm:$0xff]  ;;  %v355_v45 = vld [vmem:[%s777_s22 + $0x30] sm:$0xff] }
  0x1e   : > { %v309_v32 = vmul.f32 %v768_v6, %v281_v19  ;;  %v310_v33 = vmul.f32 %v770_v7, %v282_v20  ;;  %v311_v38 = vmul.f32 %v768_v6, %v283_v26  ;;  %v312_v39 = vmul.f32 %v770_v7, %v284_v27  ;;  %v356_v46 = vld [vmem:[%s777_s22 + $0x38] sm:$0xff]  ;;  %v274_v47 = vld [vmem:[%s766_s12 + $0x28] sm:$0xff]  ;;  %v275_v52 = vld [vmem:[%s766_s12 + $0x30] sm:$0xff] }
  0x1f   : > { %v333_v28 = vadd.f32 %v779_v10, %v305_v17  ;;  %v334_v29 = vadd.f32 %v781_v12, %v306_v18  ;;  %v335_v34 = vadd.f32 %v779_v10, %v307_v24  ;;  %v336_v35 = vadd.f32 %v781_v12, %v308_v25  ;;  %v276_v57 = vld [vmem:[%s766_s12 + $0x38] sm:$0xff]  ;;  %v357_v2 = vld [vmem:[%s777_s22 + $0x40] sm:$0xff]  ;;  %v358_v3 = vld [vmem:[%s777_s22 + $0x48] sm:$0xff] }
  0x20   : > { %v337_v43 = vadd.f32 %v779_v10, %v309_v32  ;;  %v338_v44 = vadd.f32 %v781_v12, %v310_v33  ;;  %v339_v50 = vadd.f32 %v779_v10, %v311_v38  ;;  %v340_v51 = vadd.f32 %v781_v12, %v312_v39  ;;  %v359_v14 = vld [vmem:[%s777_s22 + $0x50] sm:$0xff]  ;;  %v360_v15 = vld [vmem:[%s777_s22 + $0x58] sm:$0xff]  ;;  %v361_v20 = vld [vmem:[%s777_s22 + $0x60] sm:$0xff] }
  0x21   : > { %v365_v41 = vadd.f32 %v349_v22, %v333_v28  ;;  %v366_v42 = vadd.f32 %v350_v23, %v334_v29  ;;  %v367_v48 = vadd.f32 %v351_v30, %v335_v34  ;;  %v368_v49 = vadd.f32 %v352_v31, %v336_v35  ;;  %v362_v21 = vld [vmem:[%s777_s22 + $0x68] sm:$0xff]  ;;  %v363_v28 = vld [vmem:[%s777_s22 + $0x70] sm:$0xff]  ;;  %v364_v29 = vld [vmem:[%s777_s22 + $0x78] sm:$0xff] }
  0x22   : > { %v369_v53 = vadd.f32 %v353_v36, %v337_v43  ;;  %v370_v54 = vadd.f32 %v354_v37, %v338_v44  ;;  %v285_v55 = vunpack.c.l.bf16 %v273_v40  ;;  %v286_v56 = vunpack.c.h.bf16 %v273_v40 }
  0x23   : > { %381 = vst [vmem:[%s818_s26] sm:$0xff] %v365_v41  ;;  %382 = vst [vmem:[%s818_s26 + $0x8] sm:$0xff] %v366_v42  ;;  %v371_v58 = vadd.f32 %v355_v45, %v339_v50  ;;  %v372_v59 = vadd.f32 %v356_v46, %v340_v51  ;;  %v287_v60 = vunpack.c.l.bf16 %v274_v47  ;;  %v288_v61 = vunpack.c.h.bf16 %v274_v47 }
  0x24   : > { %383 = vst [vmem:[%s818_s26 + $0x10] sm:$0xff] %v367_v48  ;;  %384 = vst [vmem:[%s818_s26 + $0x18] sm:$0xff] %v368_v49  ;;  %v313_v62 = vmul.f32 %v768_v6, %v285_v55  ;;  %v314_v63 = vmul.f32 %v770_v7, %v286_v56  ;;  %v289_v0 = vunpack.c.l.bf16 %v275_v52  ;;  %v290_v1 = vunpack.c.h.bf16 %v275_v52 }
  0x25   : > { %385 = vst [vmem:[%s818_s26 + $0x20] sm:$0xff] %v369_v53  ;;  %386 = vst [vmem:[%s818_s26 + $0x28] sm:$0xff] %v370_v54  ;;  %v315_v4 = vmul.f32 %v768_v6, %v287_v60  ;;  %v316_v5 = vmul.f32 %v770_v7, %v288_v61  ;;  %v291_v8 = vunpack.c.l.bf16 %v276_v57  ;;  %v292_v9 = vunpack.c.h.bf16 %v276_v57 }
  0x26   : > { %387 = vst [vmem:[%s818_s26 + $0x30] sm:$0xff] %v371_v58  ;;  %388 = vst [vmem:[%s818_s26 + $0x38] sm:$0xff] %v372_v59  ;;  %v341_v11 = vadd.f32 %v779_v10, %v313_v62  ;;  %v342_v13 = vadd.f32 %v781_v12, %v314_v63  ;;  %v317_v16 = vmul.f32 %v768_v6, %v289_v0 }
  0x27   : > { %v318_v17 = vmul.f32 %v770_v7, %v290_v1  ;;  %v343_v18 = vadd.f32 %v779_v10, %v315_v4  ;;  %v344_v19 = vadd.f32 %v781_v12, %v316_v5  ;;  %v319_v22 = vmul.f32 %v768_v6, %v291_v8 }
  0x28   : > { %v320_v23 = vmul.f32 %v770_v7, %v292_v9  ;;  %v373_v24 = vadd.f32 %v357_v2, %v341_v11  ;;  %v374_v25 = vadd.f32 %v358_v3, %v342_v13  ;;  %v345_v26 = vadd.f32 %v779_v10, %v317_v16 }
  0x29   : > { %v346_v27 = vadd.f32 %v781_v12, %v318_v17  ;;  %v375_v30 = vadd.f32 %v359_v14, %v343_v18  ;;  %v376_v31 = vadd.f32 %v360_v15, %v344_v19  ;;  %v347_v6 = vadd.f32 %v779_v10, %v319_v22 }
  0x2a   : > { %v348_v7 = vadd.f32 %v781_v12, %v320_v23  ;;  %389 = vst [vmem:[%s818_s26 + $0x40] sm:$0xff] %v373_v24  ;;  %390 = vst [vmem:[%s818_s26 + $0x48] sm:$0xff] %v374_v25  ;;  %v377_v32 = vadd.f32 %v361_v20, %v345_v26 }
  0x2b   : > { %v378_v33 = vadd.f32 %v362_v21, %v346_v27  ;;  %391 = vst [vmem:[%s818_s26 + $0x50] sm:$0xff] %v375_v30  ;;  %392 = vst [vmem:[%s818_s26 + $0x58] sm:$0xff] %v376_v31  ;;  %v379_v10 = vadd.f32 %v363_v28, %v347_v6 }
  0x2c   : > { %v380_v34 = vadd.f32 %v364_v29, %v348_v7  ;;  %393 = vst [vmem:[%s818_s26 + $0x60] sm:$0xff] %v377_v32 }
  0x2d   : > { %394 = vst [vmem:[%s818_s26 + $0x68] sm:$0xff] %v378_v33  ;;  %395 = vst [vmem:[%s818_s26 + $0x70] sm:$0xff] %v379_v10 }
  0x2e   : > { %396 = vst [vmem:[%s818_s26 + $0x78] sm:$0xff] %v380_v34 }
  0x2f   : > { %605 = shalt.err (!%p602_p5)
}
  0x30   : > { %s606_s12 = scalar_lea.hbm %s860_s6, 2048  ;;  %s610_s21 = scalar_lea.hbm %s922_s4, 4096 }
  0x31   : > { %p607_p6 = scmp.ne.s32.totalorder %s860_s6, %s606_s12  ;;  %p611_p10 = scmp.lt.u32.totalorder %s860_s6, %s922_s4 }
  0x32   : > { %p612_p11 = scmp.lt.u32.totalorder %s610_s21, %s606_s12  ;;  %p614_p13 = scmp.lt.u32.totalorder %s606_s12, %s860_s6 }
  0x33   : > { %p608_p7 = pnand %p607_p6, %p740_p4 }
  0x34   : > { %p613_p12 = por %p612_p11, %p611_p10 }
  0x35   : > { %p609_p9 = pneg %p608_p7 }
  0x36   : > { %p615_p0 = por %p614_p13, %p613_p12 }
  0x38   : > { %p616_p1 = pnand %p615_p0, %p609_p9 }
  0x3a   : > { %619 = shalt.err (!%p616_p1)
}
  0x3b   : > { %s673_s26 = smov 256   ;;  %s674_s29 = smov 16  }
  0x3c   : > { %535 = dma.vmem_to_hbm [thread:$0]  (%p740_p4), %s862_s30, 2048, %s860_s6, %s872_s7, %s673_s26, %s673_s26, %s674_s29  }
  0x3d PF: > { %p541_p2 = scmp.ge.s32.totalorder %s670_s20, 2  ;;  %s429_s18 = sand.u32 1, %s650_s15  }
  0x3e   : > { %s430_s5 = scalar_lea.sflag [#allocation3], %s429_s18 }
  0x3f   : > { %p538_p3 = pnand %p541_p2, %p747_p8 }
  0x41   : > { %645 = dma.done.wait (!%p538_p3), %s430_s5, 2048  }
  0x42   : > { %647 = vsyncadd (!%p538_p3), %s430_s5, 4294965248  ;;  %s17_s20 = sadd.s32 1, %s670_s20   ;;  %s925_s15 = smov %s654_s16 }
  0x43   : > { %p14_p5 = scmp.ge.s32.totalorder %s17_s20, 4   ;;  %s926_s16 = smov %s658_s17 }
  0x44   : > { %s927_s17 = smov %s753_s28  ;;  %s928_s18 = smov %s666_s19 }
  0x45   : > { %s929_s19 = smov %s931_s23  ;;  %16 = sbr.rel (!%p14_p5) target bundleno = 4 (0x4), region = 74 }
  0x4c   :  { %435 = vsyncpa [#allocation3], 1 }
  0x4d   :  { %437 = vsyncpa [#allocation3 + $0x1], 1 }

// kernel: residual_block.3
= control target key start
LH: loop header
LB: loop body
LE: loop exit
PB: predicated region body
PF: predicated region fallthrough
CT: control target
= control target key end

     0   :  { %s5090_s18 = smov 0   ;;  %s5092_s19 = smov 0   ;;  %s6510_s0 = inlined_call_operand.vmem [shape: bf16[2,8,8,256], index: 0, kind: input, shape index: {}, may-alias: {0,1,2}]   ;;  %s6511_s1 = inlined_call_operand.vmem [shape: bf16[2,8,8,256], index: 1, kind: input, shape index: {}, may-alias: {0,1,2}]   ;;  %s6512_s2 = inlined_call_operand.vmem [shape: bf16[2,8,8,256], index: 2, kind: input, shape index: {}, may-alias: {0,1,2}]   ;;  %s6513_s3 = inlined_call_operand.vmem [shape: bf16[3,768,256], index: 3, kind: input, shape index: {}]   ;;  %s6514_s4 = inlined_call_operand.vmem [shape: bf16[2,8,8,256], index: 4, kind: output, shape index: {0}]   ;;  %s6515_s5 = inlined_call_operand.vmem [shape: f32[2,1,2,256], index: 5, kind: output, shape index: {1}]  }
   0x1   :  { %s5094_s0 = smov 0  }
   0x2 LB: > { %s28_s2 = sadd.s32 1, %s5053_s19  ;;  %p3812_p0 = scmp.ge.s32.totalorder %s5057_s0, 1  ;;  %s5057_s0 = sphi %s5094_s0, %s16_s0   ;;  %s5053_s19 = sphi %s5092_s19, %s6523_s19   ;;  %s5049_s18 = sphi %s5090_s18, %s6522_s18  }
   0x3   : > { %p30_p1 = scmp.ge.s32.totalorder %s28_s2, 2  ;;  %p278_p2 = scmp.lt.s32.totalorder %s5057_s0, 3 }
   0x5   : > { %s6525_s2 = smov (%p30_p1, %s28_s2), 0  ;;  %p279_p3 = pnand %p3812_p0, %p278_p2 }
   0x6   : > { %v4587_v0 = vld [vmem:[%s6513_s3 + $0x304] ss:$8 sps:$4 sm:$0xff] (!%p279_p3)   ;;  %v4591_v2 = vld [vmem:[%s6513_s3 + $0x300] ss:$8 sps:$4 sm:$0xff] (!%p279_p3)   ;;  %v4593_v4 = vld [vmem:[%s6513_s3 + $0x314] ss:$8 sps:$4 sm:$0xff] (!%p279_p3)  }
   0x7   : > { %282 = sbr.rel (%p279_p3) target bundleno = 613 (0x265), region = 36  ;;  %v4589_v1 = vld [vmem:[%s6513_s3 + $0x104] ss:$8 sps:$4 sm:$0xff] (!%p279_p3)   ;;  %1648 = vmatprep.subr.bf16.mxu1 (!%p279_p3), %v4587_v0  ;;  %v4592_v3 = vld [vmem:[%s6513_s3 + $0x100] ss:$8 sps:$4 sm:$0xff] (!%p279_p3)   ;;  %p369_p4 = scmp.lt.s32.totalorder (!%p279_p3), %s5049_s18, 1 }
   0x8   : > { %2468 = vmatprep.subr.bf16.mxu0 (!%p279_p3), %v4589_v1  ;;  %1649 = vmatpush1.bf16.msra.mxu1 (!%p279_p3), %v4591_v2  ;;  %v4595_v5 = vld [vmem:[%s6513_s3 + $0x114] ss:$8 sps:$4 sm:$0xff] (!%p279_p3)   ;;  %v4597_v6 = vld [vmem:[%s6513_s3 + $0x310] ss:$8 sps:$4 sm:$0xff] (!%p279_p3)   ;;  %v4599_v8 = vld [vmem:[%s6513_s3 + $0x324] ss:$8 sps:$4 sm:$0xff] (!%p279_p3)  }
   0x9   : > { %2469 = vmatpush1.bf16.msra.mxu0 (!%p279_p3), %v4592_v3  ;;  %1650 = vmatprep.subr.bf16.mxu1 (!%p279_p3), %v4593_v4  ;;  %v4598_v7 = vld [vmem:[%s6513_s3 + $0x110] ss:$8 sps:$4 sm:$0xff] (!%p279_p3)   ;;  %v4601_v9 = vld [vmem:[%s6513_s3 + $0x124] ss:$8 sps:$4 sm:$0xff] (!%p279_p3)   ;;  %v4603_v10 = vld [vmem:[%s6513_s3 + $0x320] ss:$8 sps:$4 sm:$0xff] (!%p279_p3)  }
   0xa   : > { %2470 = vmatprep.subr.bf16.mxu0 (!%p279_p3), %v4595_v5  ;;  %v4604_v11 = vld [vmem:[%s6513_s3 + $0x120] ss:$8 sps:$4 sm:$0xff] (!%p279_p3)   ;;  %v4605_v12 = vld [vmem:[%s6513_s3 + $0x334] ss:$8 sps:$4 sm:$0xff] (!%p279_p3)   ;;  %v4609_v14 = vld [vmem:[%s6513_s3 + $0x330] ss:$8 sps:$4 sm:$0xff] (!%p279_p3)  }
   0xb   : > { %v4607_v13 = vld [vmem:[%s6513_s3 + $0x134] ss:$8 sps:$4 sm:$0xff] (!%p279_p3)   ;;  %v4610_v15 = vld [vmem:[%s6513_s3 + $0x130] ss:$8 sps:$4 sm:$0xff] (!%p279_p3)   ;;  %v4611_v16 = vld [vmem:[%s6513_s3 + $0x344] ss:$8 sps:$4 sm:$0xff] (!%p279_p3)  }
   0xc   : > { %1651 = vmatpush1.bf16.msra.mxu1 (!%p279_p3), %v4597_v6  ;;  %v4613_v17 = vld [vmem:[%s6513_s3 + $0x144] ss:$8 sps:$4 sm:$0xff] (!%p279_p3)   ;;  %v4615_v18 = vld [vmem:[%s6513_s3 + $0x340] ss:$8 sps:$4 sm:$0xff] (!%p279_p3)   ;;  %v4617_v20 = vld [vmem:[%s6513_s3 + $0x354] ss:$8 sps:$4 sm:$0xff] (!%p279_p3)  }
   0xd   : > { %2471 = vmatpush1.bf16.msra.mxu0 (!%p279_p3), %v4598_v7  ;;  %1652 = vmatprep.subr.bf16.mxu1 (!%p279_p3), %v4599_v8  ;;  %v4616_v19 = vld [vmem:[%s6513_s3 + $0x140] ss:$8 sps:$4 sm:$0xff] (!%p279_p3)   ;;  %v4619_v21 = vld [vmem:[%s6513_s3 + $0x154] ss:$8 sps:$4 sm:$0xff] (!%p279_p3)   ;;  %v4621_v22 = vld [vmem:[%s6513_s3 + $0x350] ss:$8 sps:$4 sm:$0xff] (!%p279_p3)  }
   0xe   : > { %2472 = vmatprep.subr.bf16.mxu0 %v4601_v9  ;;  %v4622_v23 = vld [vmem:[%s6513_s3 + $0x150] ss:$8 sps:$4 sm:$0xff]   ;;  %v4623_v24 = vld [vmem:[%s6513_s3 + $0x364] ss:$8 sps:$4 sm:$0xff]   ;;  %v4627_v26 = vld [vmem:[%s6513_s3 + $0x360] ss:$8 sps:$4 sm:$0xff]  }
   0xf   : > { %v4625_v25 = vld [vmem:[%s6513_s3 + $0x164] ss:$8 sps:$4 sm:$0xff]   ;;  %v4628_v27 = vld [vmem:[%s6513_s3 + $0x160] ss:$8 sps:$4 sm:$0xff]   ;;  %v4629_v28 = vld [vmem:[%s6513_s3 + $0x374] ss:$8 sps:$4 sm:$0xff]  }
  0x10   : > { %1653 = vmatpush1.bf16.msra.mxu1 %v4603_v10  ;;  %v4631_v29 = vld [vmem:[%s6513_s3 + $0x174] ss:$8 sps:$4 sm:$0xff]   ;;  %v4633_v30 = vld [vmem:[%s6513_s3 + $0x370] ss:$8 sps:$4 sm:$0xff]   ;;  %v4635_v32 = vld [vmem:[%s6513_s3 + $0x384] ss:$8 sps:$4 sm:$0xff]  }
  0x11   : > { %2473 = vmatpush1.bf16.msra.mxu0 %v4604_v11  ;;  %1654 = vmatprep.subr.bf16.mxu1 %v4605_v12  ;;  %v4634_v31 = vld [vmem:[%s6513_s3 + $0x170] ss:$8 sps:$4 sm:$0xff]   ;;  %v5059_v33 = vmov 0   ;;  %v4637_v35 = vld [vmem:[%s6513_s3 + $0x184] ss:$8 sps:$4 sm:$0xff]   ;;  %s6527_s18 = smov (!%p369_p4, %s5049_s18), 1 }
  0x12   : > { %2474 = vmatprep.subr.bf16.mxu0 %v4607_v13  ;;  %v3824_v34 = vcombine.high %v5059_v33, %v5059_v33  ;;  %v3823_v36 = vcombine.low %v5059_v33, %v5059_v33  ;;  %v4639_v37 = vld [vmem:[%s6513_s3 + $0x380] ss:$8 sps:$4 sm:$0xff]   ;;  %v4641_v39 = vld [vmem:[%s6513_s3 + $0x394] ss:$8 sps:$4 sm:$0xff]   ;;  %v4645_v43 = vld [vmem:[%s6513_s3 + $0x390] ss:$8 sps:$4 sm:$0xff]  }
  0x13   : > { %v4640_v38 = vld [vmem:[%s6513_s3 + $0x180] ss:$8 sps:$4 sm:$0xff]   ;;  %v4643_v41 = vld [vmem:[%s6513_s3 + $0x194] ss:$8 sps:$4 sm:$0xff]   ;;  %s4389_s29 = sshll.u32 %s6527_s18, 6  ;;  %vm647_vm1 = vcmask 1040384  }
  0x14   : > { %1655 = vmatpush1.bf16.msra.mxu1 %v4609_v14  ;;  %v495_v40 = vshrl.u32 %v3824_v34, 16  ;;  %v488_v42 = vshrl.u32 %v3823_v36, 16  ;;  %v498_v44 = vshll.u32 %v3824_v34, 16  ;;  %v4646_v45 = vld [vmem:[%s6513_s3 + $0x190] ss:$8 sps:$4 sm:$0xff]   ;;  %v491_v50 = vshll.u32 %v3823_v36, 16  ;;  %s5252_s17 = scalar_lea.vmem %s6511_s1, %s4389_s29 }
  0x15   : > { %2475 = vmatpush1.bf16.msra.mxu0 %v4610_v15  ;;  %1656 = vmatprep.subr.bf16.mxu1 %v4611_v16  ;;  %v4647_v46 = vld [vmem:[%s6513_s3 + $0x3a4] ss:$8 sps:$4 sm:$0xff]   ;;  %v4651_v51 = vld [vmem:[%s6513_s3 + $0x3a0] ss:$8 sps:$4 sm:$0xff]   ;;  %vm648_vm0 = vsmask.f32 256 }
  0x16   : > { %2476 = vmatprep.subr.bf16.mxu0 %v4613_v17  ;;  %v497_v47 = vrot.slane %v495_v40, 7  ;;  %v4649_v48 = vld [vmem:[%s6513_s3 + $0x1a4] ss:$8 sps:$4 sm:$0xff]   ;;  %v490_v49 = vrot.slane %v488_v42, 7  ;;  %v4652_v52 = vld [vmem:[%s6513_s3 + $0x1a0] ss:$8 sps:$4 sm:$0xff]   ;;  %vm5270_vm4 = vmand %vm647_vm1, %vm648_vm0 }
  0x17   : > { %v4653_v53 = vld [vmem:[%s6513_s3 + $0x3b4] ss:$8 sps:$4 sm:$0xff]   ;;  %vm670_vm2 = vcmask 1044480   ;;  %vm671_vm3 = vsmask.f32 4352  ;;  %v418_v58 = vld [vmem:[%s5252_s17] sm:$0xff] }
  0x18   : > { %1657 = vmatpush1.bf16.msra.mxu1 %v4615_v18  ;;  %v500_v54 = vor.u32 %v498_v44, %v497_v47  ;;  %v4655_v55 = vld [vmem:[%s6513_s3 + $0x1b4] ss:$8 sps:$4 sm:$0xff]   ;;  %v4657_v56 = vld [vmem:[%s6513_s3 + $0x3b0] ss:$8 sps:$4 sm:$0xff]   ;;  %v493_v59 = vor.u32 %v491_v50, %v490_v49  ;;  %v419_v60 = vld [vmem:[%s5252_s17 + $0x8] sm:$0xff]  ;;  %v3825_v61 = vcombine.low %v418_v58, %v418_v58  ;;  %v3826_v62 = vcombine.high %v418_v58, %v418_v58 }
  0x19   : > { %2477 = vmatpush1.bf16.msra.mxu0 %v4616_v19  ;;  %1658 = vmatprep.subr.bf16.mxu1 %v4617_v20  ;;  %v4658_v57 = vld [vmem:[%s6513_s3 + $0x1b0] ss:$8 sps:$4 sm:$0xff]   ;;  %v4659_v0 = vld [vmem:[%s6513_s3 + $0x3c4] ss:$8 sps:$4 sm:$0xff]   ;;  %v3827_v1 = vcombine.low %v419_v60, %v419_v60  ;;  %v3828_v2 = vcombine.high %v419_v60, %v419_v60  ;;  %vm5278_vm5 = vmand %vm670_vm2, %vm671_vm3 }
  0x1a   : > { %2478 = vmatprep.subr.bf16.mxu0 %v4619_v21  ;;  %v651_v4 = vsel %vm5270_vm4, 0, %v500_v54  ;;  %v4661_v5 = vld [vmem:[%s6513_s3 + $0x1c4] ss:$8 sps:$4 sm:$0xff]   ;;  %v509_v6 = vshrl.u32 %v3826_v62, 16  ;;  %v512_v7 = vshll.u32 %v3826_v62, 16  ;;  %v650_v13 = vsel %vm5270_vm4, 0, %v493_v59 }
  0x1b   : > { %v5289_v8 = vsel %vm5278_vm5, %v651_v4, 0  ;;  %v4663_v9 = vld [vmem:[%s6513_s3 + $0x3c0] ss:$8 sps:$4 sm:$0xff]   ;;  %v523_v10 = vshrl.u32 %v3828_v2, 16  ;;  %v526_v11 = vshll.u32 %v3828_v2, 16  ;;  %v502_v17 = vshrl.u32 %v3825_v61, 16 }
  0x1c   : > { %1659 = vmatpush1.bf16.msra.mxu1 %v4621_v22  ;;  %v703_v12 = vshll.u32 %v5289_v8, 16  ;;  %v4664_v14 = vld [vmem:[%s6513_s3 + $0x1c0] ss:$8 sps:$4 sm:$0xff]   ;;  %v4665_v15 = vld [vmem:[%s6513_s3 + $0x3d4] ss:$8 sps:$4 sm:$0xff]   ;;  %v511_v16 = vrot.slane %v509_v6, 7 }
  0x1d   : > { %2479 = vmatpush1.bf16.msra.mxu0 %v4622_v23  ;;  %1660 = vmatprep.subr.bf16.mxu1 %v4623_v24  ;;  %v525_v18 = vrot.slane %v523_v10, 7  ;;  %v505_v19 = vshll.u32 %v3825_v61, 16  ;;  %v516_v20 = vshrl.u32 %v3827_v1, 16  ;;  %v4667_v21 = vld [vmem:[%s6513_s3 + $0x1d4] ss:$8 sps:$4 sm:$0xff]   ;;  %v504_v23 = vrot.slane %v502_v17, 7 }
  0x1e   : > { %2480 = vmatprep.subr.bf16.mxu0 %v4625_v25  ;;  %v514_v22 = vor.u32 %v512_v7, %v511_v16  ;;  %v519_v24 = vshll.u32 %v3827_v1, 16  ;;  %v5308_v25 = vsel %vm5278_vm5, %v650_v13, 0  ;;  %v4673_v36 = vld [vmem:[%s6513_s3 + $0x1e4] ss:$8 sps:$4 sm:$0xff]   ;;  %v4677_v54 = vld [vmem:[%s6513_s3 + $0x3f4] ss:$8 sps:$4 sm:$0xff]  }
  0x1f   : > { %v507_v33 = vor.u32 %v505_v19, %v504_v23  ;;  %v696_v34 = vshll.u32 %v5308_v25, 16  ;;  %v694_v47 = vshrl.u32 %v5308_v25, 16  ;;  %v4681_v59 = vld [vmem:[%s6513_s3 + $0x3f0] ss:$8 sps:$4 sm:$0xff]   ;;  %v4689_v1 = vld [vmem:[%s6513_s3 + $0x404] ss:$8 sps:$4 sm:$0xff]  }
  0x20   : > { %1661 = vmatpush1.bf16.msra.mxu1 %v4627_v26  ;;  %v4669_v26 = vld [vmem:[%s6513_s3 + $0x3d0] ss:$8 sps:$4 sm:$0xff]   ;;  %v4692_v4 = vld [vmem:[%s6513_s3 + $0x204] ss:$8 sps:$4 sm:$0xff]   ;;  %v4690_v6 = vld [vmem:[%s6513_s3 + $0x200] ss:$8 sps:$4 sm:$0xff]  }
  0x21   : > { %2481 = vmatpush1.bf16.msra.mxu0 %v4628_v27  ;;  %1662 = vmatprep.subr.bf16.mxu1 %v4629_v28  ;;  %v528_v27 = vor.u32 %v526_v11, %v525_v18  ;;  %v701_v28 = vshrl.u32 %v5289_v8, 16  ;;  %v698_v50 = vrot.slane %v696_v34, 1  ;;  %v4695_v10 = vld [vmem:[%s6513_s3 + $0x414] ss:$8 sps:$4 sm:$0xff]   ;;  %v4696_v16 = vld [vmem:[%s6513_s3 + $0x210] ss:$8 sps:$4 sm:$0xff]  }
  0x22   : > { %2482 = vmatprep.subr.bf16.mxu0 %v4631_v29  ;;  %v705_v29 = vrot.slane %v703_v12, 1  ;;  %v4698_v13 = vld [vmem:[%s6513_s3 + $0x214] ss:$8 sps:$4 sm:$0xff]   ;;  %v4701_v17 = vld [vmem:[%s6513_s3 + $0x424] ss:$8 sps:$4 sm:$0xff]  }
  0x23   : > { %v5372_v61 = vor.u32 %v698_v50, %v694_v47  ;;  %v4704_v18 = vld [vmem:[%s6513_s3 + $0x224] ss:$8 sps:$4 sm:$0xff]   ;;  %v4699_v19 = vld [vmem:[%s6513_s3 + $0x420] ss:$8 sps:$4 sm:$0xff]  }
  0x24   : > { %1663 = vmatpush1.bf16.msra.mxu1 %v4633_v30  ;;  %v518_v30 = vrot.slane %v516_v20, 7  ;;  %v4702_v20 = vld [vmem:[%s6513_s3 + $0x220] ss:$8 sps:$4 sm:$0xff]  }
  0x25   : > { %2483 = vmatpush1.bf16.msra.mxu0 %v4634_v31  ;;  %1664 = vmatprep.subr.bf16.mxu1 %v4635_v32  ;;  %v4670_v31 = vld [vmem:[%s6513_s3 + $0x1d0] ss:$8 sps:$4 sm:$0xff]   ;;  %v653_v32 = vsel %vm5270_vm4, 0, %v514_v22 }
  0x26   : > { %2484 = vmatprep.subr.bf16.mxu0 %v4637_v35  ;;  %v4671_v35 = vld [vmem:[%s6513_s3 + $0x3e4] ss:$8 sps:$4 sm:$0xff]  }
  0x28   : > { %1665 = vmatpush1.bf16.msra.mxu1 %v4639_v37  ;;  %v655_v37 = vsel %vm5270_vm4, 0, %v528_v27  ;;  %v420_v27 = vld [vmem:[%s5252_s17 + $0x10] sm:$0xff] }
  0x29   : > { %2485 = vmatpush1.bf16.msra.mxu0 %v4640_v38  ;;  %1666 = vmatprep.subr.bf16.mxu1 %v4641_v39  ;;  %v5330_v38 = vsel %vm5278_vm5, %v653_v32, 0  ;;  %v521_v39 = vor.u32 %v519_v24, %v518_v30  ;;  %v5334_v40 = vsel %vm5278_vm5, %v655_v37, 0  ;;  %v4710_v24 = vld [vmem:[%s6513_s3 + $0x234] ss:$8 sps:$4 sm:$0xff]   ;;  %v3830_v32 = vcombine.high %v420_v27, %v420_v27 }
  0x2a   : > { %2486 = vmatprep.subr.bf16.mxu0 %v4643_v41  ;;  %v715_v41 = vshrl.u32 %v5330_v38, 16  ;;  %v717_v42 = vshll.u32 %v5330_v38, 16  ;;  %v3940_v44 = vcombine.low %v5330_v38, %v5334_v40  ;;  %v731_v22 = vshll.u32 %v5334_v40, 16 }
  0x2b   : > { %v3829_v34 = vcombine.low %v420_v27, %v420_v27 }
  0x2c   : > { %1667 = vmatpush1.bf16.msra.mxu1 %v4645_v43  ;;  %v652_v43 = vsel %vm5270_vm4, 0, %v507_v33  ;;  %v719_v49 = vrot.slane %v717_v42, 1  ;;  %1680 = vmatprep.mubr.bf16.mxu1 %v3940_v44  ;;  %v733_v37 = vrot.slane %v731_v22, 1  ;;  %v537_v42 = vshrl.u32 %v3830_v32, 16 }
  0x2d   : > { %2487 = vmatpush1.bf16.msra.mxu0 %v4646_v45  ;;  %1668 = vmatprep.subr.bf16.mxu1 %v4647_v46  ;;  %v5342_v45 = vor.u32 %v705_v29, %v701_v28  ;;  %v5346_v46 = vsel %vm5278_vm5, %v652_v43, 0  ;;  %v421_v28 = vld [vmem:[%s5252_s17 + $0x18] sm:$0xff]  ;;  %v729_v29 = vshrl.u32 %v5334_v40, 16  ;;  %v540_v43 = vshll.u32 %v3830_v32, 16 }
  0x2e   : > { %2488 = vmatprep.subr.bf16.mxu0 %v4649_v48  ;;  %v4675_v48 = vld [vmem:[%s6513_s3 + $0x3e0] ss:$8 sps:$4 sm:$0xff]   ;;  %v855_v11 = vrot.slane %v5346_v46, 1  ;;  %v3832_v33 = vcombine.high %v421_v28, %v421_v28 }
  0x30   : > { %1669 = vmatpush1.bf16.msra.mxu1 %v4651_v51  ;;  %v708_v51 = vshrl.u32 %v5346_v46, 16  ;;  %v551_v44 = vshrl.u32 %v3832_v33, 16  ;;  %v554_v47 = vshll.u32 %v3832_v33, 16  ;;  %v4723_v33 = vld [vmem:[%s6513_s3 + $0x460] ss:$8 sps:$4 sm:$0xff]  }
  0x31   : > { %2489 = vmatpush1.bf16.msra.mxu0 %v4652_v52  ;;  %1670 = vmatprep.subr.bf16.mxu1 %v4653_v53  ;;  %v710_v52 = vshll.u32 %v5346_v46, 16  ;;  %v4676_v53 = vld [vmem:[%s6513_s3 + $0x1e0] ss:$8 sps:$4 sm:$0xff]  }
  0x32   : > { %2490 = vmatprep.subr.bf16.mxu0 %v4655_v55  ;;  %v4679_v55 = vld [vmem:[%s6513_s3 + $0x1f4] ss:$8 sps:$4 sm:$0xff]  }
  0x33   : > { %v712_v58 = vrot.slane %v710_v52, 1  ;;  %v4711_v52 = vld [vmem:[%s6513_s3 + $0x440] ss:$8 sps:$4 sm:$0xff]  }
  0x34   : > { %1671 = vmatpush1.bf16.msra.mxu1 %v4657_v56  ;;  %v5363_v56 = vor.u32 %v719_v49, %v715_v41  ;;  %v4716_v41 = vld [vmem:[%s6513_s3 + $0x244] ss:$8 sps:$4 sm:$0xff]   ;;  %v533_v49 = vshll.u32 %v3829_v34, 16 }
  0x35   : > { %2491 = vmatpush1.bf16.msra.mxu0 %v4658_v57  ;;  %1672 = vmatprep.subr.bf16.mxu1 %v4659_v0  ;;  %v654_v57 = vsel %vm5270_vm4, 0, %v521_v39  ;;  %v5374_v62 = vor.u32 %v712_v58, %v708_v51  ;;  %v4682_v0 = vld [vmem:[%s6513_s3 + $0x1f0] ss:$8 sps:$4 sm:$0xff]  }
  0x36   : > { %2492 = vmatprep.subr.bf16.mxu0 %v4661_v5  ;;  %v4062_v60 = vcombine.low %v5342_v45, %v5363_v56  ;;  %v5384_v2 = vsel %vm5278_vm5, %v654_v57, 0  ;;  %v4687_v5 = vld [vmem:[%s6513_s3 + $0x400] ss:$8 sps:$4 sm:$0xff]   ;;  %v5461_v57 = vor.u32 %v733_v37, %v729_v29 }
  0x37   : > { %v3939_v7 = vcombine.low %v5346_v46, %v5384_v2  ;;  %v857_v12 = vrot.slane %v5384_v2, 1  ;;  %v724_v23 = vshll.u32 %v5384_v2, 16  ;;  %v722_v30 = vshrl.u32 %v5384_v2, 16 }
  0x38   : > { %1673 = vmatpush1.bf16.msra.mxu1 %v4663_v9  ;;  %2500 = vmatprep.mubr.bf16.mxu0 %v4062_v60  ;;  %v4061_v9 = vcombine.low %v5372_v61, %v5374_v62  ;;  %v4719_v60 = vld [vmem:[%s6513_s3 + $0x454] ss:$8 sps:$4 sm:$0xff]  }
  0x39   : > { %2493 = vmatpush1.bf16.msra.mxu0 %v4664_v14  ;;  %1674 = vmatprep.subr.bf16.mxu1 %v4665_v15  ;;  %v5411_v14 = vcombine.low %v855_v11, %v857_v12  ;;  %v4693_v15 = vld [vmem:[%s6513_s3 + $0x410] ss:$8 sps:$4 sm:$0xff]   ;;  %v726_v39 = vrot.slane %v724_v23, 1 }
  0x3a   : > { %2494 = vmatprep.subr.bf16.mxu0 %v4667_v21  ;;  %v4707_v21 = vld [vmem:[%s6513_s3 + $0x434] ss:$8 sps:$4 sm:$0xff]  }
  0x3c   : > { %1675 = vmatpush1.bf16.msra.mxu1 %v4669_v26  ;;  %v4705_v26 = vld [vmem:[%s6513_s3 + $0x430] ss:$8 sps:$4 sm:$0xff]  }
  0x3d   : > { %2495 = vmatpush1.bf16.msra.mxu0 %v4670_v31  ;;  %1676 = vmatprep.subr.bf16.mxu1 %v4671_v35  ;;  %v4708_v31 = vld [vmem:[%s6513_s3 + $0x230] ss:$8 sps:$4 sm:$0xff]   ;;  %v3831_v35 = vcombine.low %v421_v28, %v421_v28  ;;  %v4728_v28 = vld [vmem:[%s6513_s3 + $0x264] ss:$8 sps:$4 sm:$0xff]  }
  0x3e   : > { %2496 = vmatprep.subr.bf16.mxu0 %v4673_v36  ;;  %v4713_v36 = vld [vmem:[%s6513_s3 + $0x444] ss:$8 sps:$4 sm:$0xff]  }
  0x3f   : > { %v544_v50 = vshrl.u32 %v3831_v35, 16  ;;  %v547_v51 = vshll.u32 %v3831_v35, 16 }
  0x40   : > { %1677 = vmatpush1.bf16.msra.mxu1 %v4675_v48  ;;  %v530_v48 = vshrl.u32 %v3829_v34, 16  ;;  %v4726_v34 = vld [vmem:[%s6513_s3 + $0x260] ss:$8 sps:$4 sm:$0xff]  }
  0x41   : > { %2497 = vmatpush1.bf16.msra.mxu0 %v4676_v53  ;;  %1678 = vmatprep.subr.bf16.mxu1 %v4677_v54  ;;  %v539_v53 = vrot.slane %v537_v42, 7  ;;  %v553_v54 = vrot.slane %v551_v44, 7 }
  0x42   : > { %2498 = vmatprep.subr.bf16.mxu0 %v4679_v55  ;;  %v4714_v55 = vld [vmem:[%s6513_s3 + $0x240] ss:$8 sps:$4 sm:$0xff]   ;;  %v532_v58 = vrot.slane %v530_v48, 7  ;;  %v4734_v48 = vld [vmem:[%s6513_s3 + $0x274] ss:$8 sps:$4 sm:$0xff]  }
  0x44   : > { %1679 = vmatpush1.bf16.msra.mxu1 %v4681_v59  ;;  %v546_v59 = vrot.slane %v544_v50, 7 }
  0x45   : > { %2499 = vmatpush1.bf16.msra.mxu0 %v4682_v0  ;;  %1721 = vmatprep.subr.bf16.mxu1 %v4689_v1  ;;  %v4722_v0 = vld [vmem:[%s6513_s3 + $0x254] ss:$8 sps:$4 sm:$0xff]   ;;  %v542_v1 = vor.u32 %v540_v43, %v539_v53 }
  0x46   : > { %2541 = vmatprep.subr.bf16.mxu0 %v4692_v4  ;;  %v556_v4 = vor.u32 %v554_v47, %v553_v54 }
  0x47   : > { %1681 = vmatmul.mubr.bf16.vlgmr.msra.gmra.mrb[0].mxu1 %v3939_v7  ;;  %v4717_v7 = vld [vmem:[%s6513_s3 + $0x450] ss:$8 sps:$4 sm:$0xff]  }
  0x48   : > { %2501 = vmatmul.mubr.bf16.vlgmr.msra.gmra.mrb[0].mxu0 %v4061_v9  ;;  %1722 = vmatpush1.bf16.msra.mxu1 %v4687_v5  ;;  %v5469_v5 = vor.u32 %v726_v39, %v722_v30  ;;  %v535_v9 = vor.u32 %v533_v49, %v532_v58 }
  0x49   : > { %2542 = vmatpush1.bf16.msra.mxu0 %v4690_v6  ;;  %1723 = vmatprep.subr.bf16.mxu1 %v4695_v10  ;;  %v422_v6 = vld [vmem:[%s5252_s17 + $0x20] sm:$0xff]  ;;  %v549_v10 = vor.u32 %v547_v51, %v546_v59  ;;  %v4729_v59 = vld [vmem:[%s6513_s3 + $0x470] ss:$8 sps:$4 sm:$0xff]  }
  0x4a   : > { %2543 = vmatprep.subr.bf16.mxu0 %v4698_v13  ;;  %v423_v13 = vld [vmem:[%s5252_s17 + $0x28] sm:$0xff] }
  0x4b   : > { %v5488_v22 = vcombine.low %v423_v13, %v423_v13  ;;  %v658_v27 = vsel %vm5270_vm4, 0, %v549_v10 }
  0x4c   : > { %1724 = vmatpush1.bf16.msra.mxu1 %v4693_v15  ;;  %v3834_v15 = vcombine.high %v422_v6, %v422_v6  ;;  %v5521_v35 = vsel %vm5278_vm5, %v658_v27, 0 }
  0x4d   : > { %2544 = vmatpush1.bf16.msra.mxu0 %v4696_v16  ;;  %1725 = vmatprep.subr.bf16.mxu1 %v4701_v17  ;;  %v5476_v16 = vcombine.low %v422_v6, %v422_v6  ;;  %v4720_v17 = vld [vmem:[%s6513_s3 + $0x250] ss:$8 sps:$4 sm:$0xff]   ;;  %v572_v6 = vshrl.u32 %v5488_v22, 16 }
  0x4e   : > { %2545 = vmatprep.subr.bf16.mxu0 %v4704_v18  ;;  %v4725_v18 = vld [vmem:[%s6513_s3 + $0x464] ss:$8 sps:$4 sm:$0xff]   ;;  %v565_v39 = vshrl.u32 %v3834_v15, 16  ;;  %v568_v44 = vshll.u32 %v3834_v15, 16 }
  0x4f   : > { %v558_v58 = vshrl.u32 %v5476_v16, 16 }
  0x50   : > { %1726 = vmatpush1.bf16.msra.mxu1 %v4699_v19  ;;  %v657_v19 = vsel %vm5270_vm4, 0, %v542_v1  ;;  %v567_v50 = vrot.slane %v565_v39, 7 }
  0x51   : > { %2546 = vmatpush1.bf16.msra.mxu0 %v4702_v20  ;;  %1727 = vmatprep.subr.bf16.mxu1 %v4707_v21  ;;  %v659_v20 = vsel %vm5270_vm4, 0, %v556_v4  ;;  %v3836_v21 = vcombine.high %v423_v13, %v423_v13  ;;  %v5492_v23 = vsel %vm5278_vm5, %v657_v19, 0  ;;  %v561_v4 = vshll.u32 %v5476_v16, 16  ;;  %v4740_v16 = vld [vmem:[%s6513_s3 + $0x284] ss:$8 sps:$4 sm:$0xff]  }
  0x52   : > { %2547 = vmatprep.subr.bf16.mxu0 %v4710_v24  ;;  %v5496_v24 = vsel %vm5278_vm5, %v659_v20, 0  ;;  %v743_v30 = vshrl.u32 %v5492_v23, 16  ;;  %v570_v1 = vor.u32 %v568_v44, %v567_v50  ;;  %v560_v15 = vrot.slane %v558_v58, 7  ;;  %v4743_v44 = vld [vmem:[%s6513_s3 + $0x494] ss:$8 sps:$4 sm:$0xff]  }
  0x53   : > { %v3946_v29 = vcombine.low %v5492_v23, %v5496_v24  ;;  %v579_v47 = vshrl.u32 %v3836_v21, 16  ;;  %v582_v51 = vshll.u32 %v3836_v21, 16  ;;  %v574_v19 = vrot.slane %v572_v6, 7  ;;  %v4741_v6 = vld [vmem:[%s6513_s3 + $0x490] ss:$8 sps:$4 sm:$0xff]  }
  0x54   : > { %1728 = vmatpush1.bf16.msra.mxu1 %v4705_v26  ;;  %v656_v26 = vsel %vm5270_vm4, 0, %v535_v9  ;;  %v575_v20 = vshll.u32 %v5488_v22, 16  ;;  %v4738_v22 = vld [vmem:[%s6513_s3 + $0x280] ss:$8 sps:$4 sm:$0xff]  }
  0x55   : > { %2548 = vmatpush1.bf16.msra.mxu0 %v4708_v31  ;;  %1729 = vmatprep.subr.bf16.mxu1 %v4713_v36  ;;  %v745_v31 = vshll.u32 %v5492_v23, 16  ;;  %v5511_v32 = vsel %vm5278_vm5, %v656_v26, 0  ;;  %v581_v54 = vrot.slane %v579_v47, 7 }
  0x56   : > { %2549 = vmatprep.subr.bf16.mxu0 %v4716_v41  ;;  %v736_v36 = vshrl.u32 %v5511_v32, 16  ;;  %v738_v37 = vshll.u32 %v5511_v32, 16  ;;  %v4731_v41 = vld [vmem:[%s6513_s3 + $0x474] ss:$8 sps:$4 sm:$0xff]   ;;  %1690 = vmatprep.mubr.bf16.mxu1 %v3946_v29  ;;  %v3945_v43 = vcombine.low %v5511_v32, %v5521_v35 }
  0x57   : > { %v747_v42 = vrot.slane %v745_v31, 1  ;;  %v584_v10 = vor.u32 %v582_v51, %v581_v54  ;;  %v424_v29 = vld [vmem:[%s5252_s17 + $0x30] sm:$0xff] }
  0x58   : > { %1730 = vmatpush1.bf16.msra.mxu1 %v4711_v52  ;;  %v740_v49 = vrot.slane %v738_v37, 1  ;;  %v757_v52 = vshrl.u32 %v5496_v24, 16  ;;  %v3838_v50 = vcombine.high %v424_v29, %v424_v29  ;;  %v4746_v51 = vld [vmem:[%s6513_s3 + $0x294] ss:$8 sps:$4 sm:$0xff]  }
  0x59   : > { %2550 = vmatpush1.bf16.msra.mxu0 %v4714_v55  ;;  %1731 = vmatprep.subr.bf16.mxu1 %v4719_v60  ;;  %v5534_v53 = vor.u32 %v747_v42, %v743_v30  ;;  %v759_v55 = vshll.u32 %v5496_v24, 16  ;;  %v4732_v60 = vld [vmem:[%s6513_s3 + $0x270] ss:$8 sps:$4 sm:$0xff]   ;;  %v663_v21 = vsel %vm5270_vm4, 0, %v584_v10  ;;  %v4735_v30 = vld [vmem:[%s6513_s3 + $0x480] ss:$8 sps:$4 sm:$0xff]  }
  0x5a   : > { %2551 = vmatprep.subr.bf16.mxu0 %v4722_v0  ;;  %1691 = vmatmul.mubr.bf16.gmra.mrb[4].mxu1 %v3945_v43  ;;  %v5544_v0 = vor.u32 %v740_v49, %v736_v36  ;;  %v5583_v31 = vsel %vm5278_vm5, %v663_v21, 0  ;;  %v577_v36 = vor.u32 %v575_v20, %v574_v19  ;;  %v752_v42 = vshll.u32 %v5521_v35, 16  ;;  %v425_v43 = vld [vmem:[%s5252_s17 + $0x38] sm:$0xff]  ;;  %v4751_v21 = vld [vmem:[%s6513_s3 + $0x4a4] ss:$8 sps:$4 sm:$0xff]   ;;  %s6447_s17 = scalar_lea.vmem %s6514_s4, %s4389_s29  ;;  %s4393_s29 = sshll.u32 %s6527_s18, 2 }
  0x5b   : > { %v5553_v9 = vcombine.low %v5461_v57, %v5534_v53  ;;  %v761_v13 = vrot.slane %v759_v55, 1  ;;  %s415_s9 = scalar_lea.vmem %s6515_s5, %s4393_s29 }
  0x5c   : > { %1732 = vmatpush1.bf16.msra.mxu1 %v4717_v7  ;;  %v4737_v7 = vld [vmem:[%s6513_s3 + $0x484] ss:$8 sps:$4 sm:$0xff]   ;;  %v754_v54 = vrot.slane %v752_v42, 1  ;;  %v4752_v42 = vld [vmem:[%s6513_s3 + $0x2a0] ss:$8 sps:$4 sm:$0xff]  }
  0x5d   : > { %2552 = vmatpush1.bf16.msra.mxu0 %v4720_v17  ;;  %1733 = vmatprep.subr.bf16.mxu1 %v4725_v18  ;;  %v5560_v17 = vcombine.low %v5469_v5, %v5544_v0  ;;  %v661_v18 = vsel %vm5270_vm4, 0, %v570_v1  ;;  %v5571_v27 = vor.u32 %v761_v13, %v757_v52  ;;  %v3840_v1 = vcombine.high %v425_v43, %v425_v43 }
  0x5e   : > { %2553 = vmatprep.subr.bf16.mxu0 %v4728_v28  ;;  %v5569_v26 = vsel %vm5278_vm5, %v661_v18, 0  ;;  %v563_v28 = vor.u32 %v561_v4, %v560_v15  ;;  %2510 = vmatprep.mubr.bf16.mxu0 %v5553_v9  ;;  %v593_v4 = vshrl.u32 %v3838_v50, 16  ;;  %v596_v13 = vshll.u32 %v3838_v50, 16  ;;  %v4744_v15 = vld [vmem:[%s6513_s3 + $0x290] ss:$8 sps:$4 sm:$0xff]  }
  0x5f   : > { %2511 = vmatmul.mubr.bf16.gmra.mrb[4].mxu0 %v5560_v17  ;;  %v3952_v37 = vcombine.low %v5569_v26, %v5583_v31  ;;  %v607_v19 = vshrl.u32 %v3840_v1, 16  ;;  %v610_v20 = vshll.u32 %v3840_v1, 16 }
  0x60   : > { %1734 = vmatpush1.bf16.msra.mxu1 %v4723_v33  ;;  %v771_v33 = vshrl.u32 %v5569_v26, 16  ;;  %v660_v39 = vsel %vm5270_vm4, 0, %v563_v28  ;;  %v595_v18 = vrot.slane %v593_v4, 7  ;;  %v4754_v28 = vld [vmem:[%s6513_s3 + $0x2a4] ss:$8 sps:$4 sm:$0xff]  }
  0x61   : > { %2554 = vmatpush1.bf16.msra.mxu0 %v4726_v34  ;;  %1735 = vmatprep.subr.bf16.mxu1 %v4731_v41  ;;  %v773_v34 = vshll.u32 %v5569_v26, 16  ;;  %v750_v41 = vshrl.u32 %v5521_v35, 16  ;;  %v5602_v49 = vsel %vm5278_vm5, %v660_v39, 0  ;;  %v609_v39 = vrot.slane %v607_v19, 7  ;;  %v4760_v19 = vld [vmem:[%s6513_s3 + $0x2b0] ss:$8 sps:$4 sm:$0xff]  }
  0x62   : > { %2555 = vmatprep.subr.bf16.mxu0 %v4734_v48  ;;  %v662_v48 = vsel %vm5270_vm4, 0, %v577_v36  ;;  %v764_v55 = vshrl.u32 %v5602_v49, 16  ;;  %v766_v58 = vshll.u32 %v5602_v49, 16  ;;  %1700 = vmatprep.mubr.bf16.mxu1 %v3952_v37  ;;  %v4749_v36 = vld [vmem:[%s6513_s3 + $0x4a0] ss:$8 sps:$4 sm:$0xff]   ;;  %v598_v37 = vor.u32 %v596_v13, %v595_v18 }
  0x63   : > { %v775_v47 = vrot.slane %v773_v34, 1  ;;  %v5609_v52 = vsel %vm5278_vm5, %v662_v48, 0  ;;  %v3839_v34 = vcombine.low %v425_v43, %v425_v43  ;;  %v4759_v48 = vld [vmem:[%s6513_s3 + $0x4b4] ss:$8 sps:$4 sm:$0xff]   ;;  %v612_v50 = vor.u32 %v610_v20, %v609_v39  ;;  %v4757_v18 = vld [vmem:[%s6513_s3 + $0x4b0] ss:$8 sps:$4 sm:$0xff]  }
  0x64   : > { %1736 = vmatpush1.bf16.msra.mxu1 %v4729_v59  ;;  %v768_v10 = vrot.slane %v766_v58, 1  ;;  %v4762_v58 = vld [vmem:[%s6513_s3 + $0x2b4] ss:$8 sps:$4 sm:$0xff]   ;;  %v780_v4 = vshll.u32 %v5609_v52, 16 }
  0x65   : > { %2556 = vmatpush1.bf16.msra.mxu0 %v4732_v60  ;;  %1737 = vmatprep.subr.bf16.mxu1 %v4737_v7  ;;  %v5613_v59 = vor.u32 %v775_v47, %v771_v33  ;;  %v3951_v60 = vcombine.low %v5602_v49, %v5609_v52  ;;  %v5620_v7 = vor.u32 %v754_v54, %v750_v41  ;;  %v785_v41 = vshrl.u32 %v5583_v31, 16 }
  0x66   : > { %2557 = vmatprep.subr.bf16.mxu0 %v4740_v16  ;;  %v3837_v33 = vcombine.low %v424_v29, %v424_v29  ;;  %v600_v54 = vshrl.u32 %v3839_v34, 16 }
  0x67   : > { %v5627_v16 = vcombine.low %v5571_v27, %v5613_v59  ;;  %1701 = vmatmul.mubr.bf16.gmra.mrb[8].mxu1 %v3951_v60 }
  0x68   : > { %1738 = vmatpush1.bf16.msra.mxu1 %v4735_v30  ;;  %v5635_v30 = vor.u32 %v768_v10, %v764_v55  ;;  %v586_v43 = vshrl.u32 %v3837_v33, 16  ;;  %v589_v47 = vshll.u32 %v3837_v33, 16  ;;  %v603_v55 = vshll.u32 %v3839_v34, 16 }
  0x69   : > { %2558 = vmatpush1.bf16.msra.mxu0 %v4738_v22  ;;  %1739 = vmatprep.subr.bf16.mxu1 %v4743_v44  ;;  %v787_v22 = vshll.u32 %v5583_v31, 16 }
  0x6a   : > { %2559 = vmatprep.subr.bf16.mxu0 %v4746_v51  ;;  %2520 = vmatprep.mubr.bf16.mxu0 %v5627_v16  ;;  %v5648_v44 = vcombine.low %v5620_v7, %v5635_v30  ;;  %v665_v51 = vsel %vm5270_vm4, 0, %v598_v37  ;;  %v588_v1 = vrot.slane %v586_v43, 7  ;;  %v782_v43 = vrot.slane %v780_v4, 1 }
  0x6b   : > { %v789_v29 = vrot.slane %v787_v22, 1  ;;  %v5660_v60 = vsel %vm5278_vm5, %v665_v51, 0  ;;  %v4770_v22 = vld [vmem:[%s6513_s3 + $0x2c4] ss:$8 sps:$4 sm:$0xff]  }
  0x6c   : > { %1740 = vmatpush1.bf16.msra.mxu1 %v4741_v6  ;;  %2521 = vmatmul.mubr.bf16.gmra.mrb[8].mxu0 %v5648_v44  ;;  %v667_v6 = vsel %vm5270_vm4, 0, %v612_v50  ;;  %v799_v10 = vshrl.u32 %v5660_v60, 16  ;;  %v801_v13 = vshll.u32 %v5660_v60, 16 }
  0x6d   : > { %2560 = vmatpush1.bf16.msra.mxu0 %v4744_v15  ;;  %1741 = vmatprep.subr.bf16.mxu1 %v4751_v21  ;;  %v602_v15 = vrot.slane %v600_v54, 7  ;;  %v5676_v20 = vsel %vm5278_vm5, %v667_v6, 0  ;;  %v591_v21 = vor.u32 %v589_v47, %v588_v1  ;;  %v5686_v34 = vor.u32 %v789_v29, %v785_v41  ;;  %v4775_v1 = vld [vmem:[%s6513_s3 + $0x4d4] ss:$8 sps:$4 sm:$0xff]  }
  0x6e   : > { %2561 = vmatprep.subr.bf16.mxu0 %v4754_v28  ;;  %v4767_v28 = vld [vmem:[%s6513_s3 + $0x4c4] ss:$8 sps:$4 sm:$0xff]   ;;  %v3958_v33 = vcombine.low %v5660_v60, %v5676_v20  ;;  %v803_v37 = vrot.slane %v801_v13, 1  ;;  %v5701_v29 = vcombine.low %v5334_v40, %v5492_v23  ;;  %v5737_v13 = vcombine.low %v5496_v24, %v5569_v26 }
  0x6f   : > { %v605_v39 = vor.u32 %v603_v55, %v602_v15  ;;  %v3942_v55 = vcombine.low %v5363_v56, %v5461_v57  ;;  %v5728_v56 = vcombine.low %v5384_v2, %v5511_v32  ;;  %v4778_v57 = vld [vmem:[%s6513_s3 + $0x2d4] ss:$8 sps:$4 sm:$0xff]   ;;  %v5741_v15 = vcombine.low %v5521_v35, %v5602_v49 }
  0x70   : > { %1742 = vmatpush1.bf16.msra.mxu1 %v4749_v36  ;;  %v664_v36 = vsel %vm5270_vm4, 0, %v591_v21  ;;  %1710 = vmatprep.mubr.bf16.mxu1 %v3958_v33  ;;  %v5691_v47 = vor.u32 %v803_v37, %v799_v10  ;;  %v5748_v21 = vcombine.low %v5583_v31, %v5660_v60  ;;  %v4776_v33 = vld [vmem:[%s6513_s3 + $0x2d0] ss:$8 sps:$4 sm:$0xff]   ;;  %v3954_v2 = vcombine.low %v5613_v59, %v5686_v34 }
  0x71   : > { %2562 = vmatpush1.bf16.msra.mxu0 %v4752_v42  ;;  %1743 = vmatprep.subr.bf16.mxu1 %v4759_v48  ;;  %v778_v42 = vshrl.u32 %v5609_v52, 16  ;;  %v666_v50 = vsel %vm5270_vm4, 0, %v605_v39  ;;  %v5697_v41 = vsel %vm5278_vm5, %v664_v36, 0  ;;  %v4765_v48 = vld [vmem:[%s6513_s3 + $0x4c0] ss:$8 sps:$4 sm:$0xff]   ;;  %v863_v59 = vrot.slane %v5602_v49, 1 }
  0x72   : > { %2563 = vmatprep.subr.bf16.mxu0 %v4762_v58  ;;  %v5708_v51 = vsel %vm5278_vm5, %v666_v50, 0  ;;  %v792_v54 = vshrl.u32 %v5697_v41, 16  ;;  %v794_v63 = vshll.u32 %v5697_v41, 16  ;;  %v4768_v58 = vld [vmem:[%s6513_s3 + $0x2c0] ss:$8 sps:$4 sm:$0xff]   ;;  %v5722_v3 = vcombine.low %v5686_v34, %v5691_v47 }
  0x73   : > { %v3957_v4 = vcombine.low %v5697_v41, %v5708_v51  ;;  %v5733_v6 = vor.u32 %v782_v43, %v778_v42  ;;  %v4783_v39 = vld [vmem:[%s6513_s3 + $0x4e4] ss:$8 sps:$4 sm:$0xff]   ;;  %v4781_v50 = vld [vmem:[%s6513_s3 + $0x4e0] ss:$8 sps:$4 sm:$0xff]   ;;  %v808_v34 = vshll.u32 %v5708_v51, 16 }
  0x74   : > { %1744 = vmatpush1.bf16.msra.mxu1 %v4757_v18  ;;  %v796_v10 = vrot.slane %v794_v63, 1  ;;  %2530 = vmatprep.mubr.bf16.mxu0 %v5722_v3  ;;  %v854_v18 = vrot.slane %v5289_v8, 1  ;;  %v4786_v36 = vld [vmem:[%s6513_s3 + $0x2e4] ss:$8 sps:$4 sm:$0xff]   ;;  %v4794_v63 = vld [vmem:[%s6513_s3 + $0x2f4] ss:$8 sps:$4 sm:$0xff]  }
  0x75   : > { %2564 = vmatpush1.bf16.msra.mxu0 %v4760_v19  ;;  %1745 = vmatprep.subr.bf16.mxu1 %v4767_v28  ;;  %v856_v19 = vrot.slane %v5330_v38, 1  ;;  %v5752_v28 = vcombine.low %v5609_v52, %v5697_v41  ;;  %v4926_v49 = vld [vmem:[%s6513_s3 + $0x754] ss:$8 sps:$4 sm:$0xff]  }
  0x76   : > { %2565 = vmatprep.subr.bf16.mxu0 %v4770_v22  ;;  %1711 = vmatmul.mubr.bf16.gmra.mrb[12].mxu1 %v3957_v4  ;;  %v4773_v22 = vld [vmem:[%s6513_s3 + $0x4d0] ss:$8 sps:$4 sm:$0xff]   ;;  %v5760_v37 = vor.u32 %v796_v10, %v792_v54  ;;  %v4791_v54 = vld [vmem:[%s6513_s3 + $0x4f4] ss:$8 sps:$4 sm:$0xff]   ;;  %v4797_v4 = vld [vmem:[%s6513_s3 + $0x504] ss:$8 sps:$4 sm:$0xff]  }
  0x77   : > { %1753 = vmatprep.mubr.bf16.mxu1 %v3942_v55  ;;  %v4064_v43 = vcombine.low %v854_v18, %v856_v19  ;;  %v4789_v55 = vld [vmem:[%s6513_s3 + $0x4f0] ss:$8 sps:$4 sm:$0xff]   ;;  %v858_v10 = vrot.slane %v5334_v40, 1  ;;  %v4845_v40 = vld [vmem:[%s6513_s3 + $0x584] ss:$8 sps:$4 sm:$0xff]  }
  0x78   : > { %1746 = vmatpush1.bf16.msra.mxu1 %v4765_v48  ;;  %v5770_v42 = vcombine.low %v5733_v6, %v5760_v37  ;;  %v4784_v48 = vld [vmem:[%s6513_s3 + $0x2e0] ss:$8 sps:$4 sm:$0xff]  }
  0x79   : > { %2566 = vmatpush1.bf16.msra.mxu0 %v4768_v58  ;;  %1747 = vmatprep.subr.bf16.mxu1 %v4775_v1  ;;  %v4792_v58 = vld [vmem:[%s6513_s3 + $0x2f0] ss:$8 sps:$4 sm:$0xff]   ;;  %v6516_v1 = vrot.slane %v5308_v25, 1 }
  0x7a   : > { %2567 = vmatprep.subr.bf16.mxu0 %v4778_v57  ;;  %2531 = vmatmul.mubr.bf16.gmra.mrb[12].mxu0 %v5770_v42  ;;  %v4800_v57 = vld [vmem:[%s6513_s3 + $0x604] ss:$8 sps:$4 sm:$0xff]  }
  0x7b   : > { %2573 = vmatprep.mubr.bf16.mxu0 %v4064_v43  ;;  %v4063_v43 = vcombine.low %v6516_v1, %v855_v11 }
  0x7c   : > { %1748 = vmatpush1.bf16.msra.mxu1 %v4773_v22  ;;  %v860_v22 = vrot.slane %v5492_v23, 1  ;;  %v4903_v23 = vld [vmem:[%s6513_s3 + $0x20] ss:$8 sps:$4 sm:$0xff]  }
  0x7d   : > { %2568 = vmatpush1.bf16.msra.mxu0 %v4776_v33  ;;  %1749 = vmatprep.subr.bf16.mxu1 %v4783_v39  ;;  %v3941_v33 = vcombine.low %v5374_v62, %v5469_v5  ;;  %v4795_v39 = vld [vmem:[%s6513_s3 + $0x500] ss:$8 sps:$4 sm:$0xff]   ;;  %v4806_v62 = vld [vmem:[%s6513_s3 + $0x614] ss:$8 sps:$4 sm:$0xff]   ;;  %v3948_v5 = vcombine.low %v5534_v53, %v5571_v27  ;;  %v4809_v53 = vld [vmem:[%s6513_s3 + $0x524] ss:$8 sps:$4 sm:$0xff]  }
  0x7e   : > { %2569 = vmatprep.subr.bf16.mxu0 %v4786_v36  ;;  %v4798_v36 = vld [vmem:[%s6513_s3 + $0x600] ss:$8 sps:$4 sm:$0xff]   ;;  %v5828_v11 = vcombine.low %v858_v10, %v860_v22  ;;  %v4812_v27 = vld [vmem:[%s6513_s3 + $0x624] ss:$8 sps:$4 sm:$0xff]  }
  0x80   : > { %1750 = vmatpush1.bf16.msra.mxu1 %v4781_v50  ;;  %v4803_v50 = vld [vmem:[%s6513_s3 + $0x514] ss:$8 sps:$4 sm:$0xff]  }
  0x81   : > { %2570 = vmatpush1.bf16.msra.mxu0 %v4784_v48  ;;  %1751 = vmatprep.subr.bf16.mxu1 %v4791_v54  ;;  %v4801_v48 = vld [vmem:[%s6513_s3 + $0x510] ss:$8 sps:$4 sm:$0xff]  }
  0x82   : > { %2571 = vmatprep.subr.bf16.mxu0 %v4794_v63  ;;  %v4804_v54 = vld [vmem:[%s6513_s3 + $0x610] ss:$8 sps:$4 sm:$0xff]   ;;  %v859_v63 = vrot.slane %v5511_v32, 1 }
  0x83   : > { %v4909_v32 = vld [vmem:[%s6513_s3 + $0x30] ss:$8 sps:$4 sm:$0xff]  }
  0x84   : > { %1752 = vmatpush1.bf16.msra.mxu1 %v4789_v55  ;;  %v862_v55 = vrot.slane %v5496_v24, 1  ;;  %v4905_v24 = vld [vmem:[%s6513_s3 + $0x24] ss:$8 sps:$4 sm:$0xff]  }
  0x85   : > { %2572 = vmatpush1.bf16.msra.mxu0 %v4792_v58  ;;  %1794 = vmatprep.subr.bf16.mxu1 %v4797_v4  ;;  %v864_v58 = vrot.slane %v5569_v26, 1  ;;  %v815_v4 = vshll.u32 %v5676_v20, 16  ;;  %v4920_v26 = vld [vmem:[%s6513_s3 + $0x744] ss:$8 sps:$4 sm:$0xff]  }
  0x86   : > { %3209 = vmatprep.subr.bf16.mxu0 %v4800_v57  ;;  %v4807_v57 = vld [vmem:[%s6513_s3 + $0x520] ss:$8 sps:$4 sm:$0xff]  }
  0x87   : > { %1754 = vmatmul.mubr.bf16.vlgmr.msra.gmra.mrb[0].mxu1 %v3941_v33  ;;  %v4810_v33 = vld [vmem:[%s6513_s3 + $0x620] ss:$8 sps:$4 sm:$0xff]  }
  0x88   : > { %2574 = vmatmul.mubr.bf16.vlgmr.msra.gmra.mrb[0].mxu0 %v4063_v43  ;;  %1795 = vmatpush1.bf16.msra.mxu1 %v4795_v39  ;;  %v3947_v39 = vcombine.low %v5544_v0, %v5620_v7  ;;  %v4815_v43 = vld [vmem:[%s6513_s3 + $0x534] ss:$8 sps:$4 sm:$0xff]   ;;  %v4813_v0 = vld [vmem:[%s6513_s3 + $0x530] ss:$8 sps:$4 sm:$0xff]   ;;  %v813_v7 = vshrl.u32 %v5676_v20, 16 }
  0x89   : > { %3210 = vmatpush1.bf16.msra.mxu0 %v4798_v36  ;;  %1796 = vmatprep.subr.bf16.mxu1 %v4803_v50  ;;  %v5859_v36 = vcombine.low %v857_v12, %v859_v63  ;;  %v4818_v50 = vld [vmem:[%s6513_s3 + $0x634] ss:$8 sps:$4 sm:$0xff]   ;;  %v5876_v12 = vcombine.low %v862_v55, %v864_v58 }
  0x8a   : > { %3211 = vmatprep.subr.bf16.mxu0 %v4806_v62  ;;  %1763 = vmatprep.mubr.bf16.mxu1 %v3948_v5  ;;  %v817_v62 = vrot.slane %v815_v4, 1  ;;  %v4816_v5 = vld [vmem:[%s6513_s3 + $0x630] ss:$8 sps:$4 sm:$0xff]  }
  0x8b   : > { %2583 = vmatprep.mubr.bf16.mxu0 %v5828_v11 }
  0x8c   : > { %1797 = vmatpush1.bf16.msra.mxu1 %v4801_v48  ;;  %v861_v48 = vrot.slane %v5521_v35, 1  ;;  %v5896_v4 = vor.u32 %v817_v62, %v813_v7  ;;  %v810_v7 = vrot.slane %v808_v34, 1  ;;  %v4827_v62 = vld [vmem:[%s6513_s3 + $0x554] ss:$8 sps:$4 sm:$0xff]  }
  0x8d   : > { %3212 = vmatpush1.bf16.msra.mxu0 %v4804_v54  ;;  %1798 = vmatprep.subr.bf16.mxu1 %v4809_v53  ;;  %v4821_v54 = vld [vmem:[%s6513_s3 + $0x544] ss:$8 sps:$4 sm:$0xff]  }
  0x8e   : > { %3213 = vmatprep.subr.bf16.mxu0 %v4812_v27  ;;  %v4824_v53 = vld [vmem:[%s6513_s3 + $0x644] ss:$8 sps:$4 sm:$0xff]   ;;  %v4819_v27 = vld [vmem:[%s6513_s3 + $0x540] ss:$8 sps:$4 sm:$0xff]   ;;  %v3960_v1 = vcombine.low %v5691_v47, %v5896_v4 }
  0x8f   : > { %1764 = vmatmul.mubr.bf16.gmra.mrb[4].mxu1 %v3947_v39  ;;  %v4822_v39 = vld [vmem:[%s6513_s3 + $0x640] ss:$8 sps:$4 sm:$0xff]   ;;  %v4833_v47 = vld [vmem:[%s6513_s3 + $0x564] ss:$8 sps:$4 sm:$0xff]  }
  0x90   : > { %2584 = vmatmul.mubr.bf16.gmra.mrb[4].mxu0 %v5859_v36  ;;  %1799 = vmatpush1.bf16.msra.mxu1 %v4807_v57  ;;  %v866_v57 = vrot.slane %v5583_v31, 1  ;;  %v4917_v31 = vld [vmem:[%s6513_s3 + $0x44] ss:$8 sps:$4 sm:$0xff]  }
  0x91   : > { %3214 = vmatpush1.bf16.msra.mxu0 %v4810_v33  ;;  %1800 = vmatprep.subr.bf16.mxu1 %v4815_v43  ;;  %v868_v33 = vrot.slane %v5660_v60, 1  ;;  %v3953_v43 = vcombine.low %v5635_v30, %v5733_v6  ;;  %v4830_v30 = vld [vmem:[%s6513_s3 + $0x654] ss:$8 sps:$4 sm:$0xff]   ;;  %v4825_v6 = vld [vmem:[%s6513_s3 + $0x550] ss:$8 sps:$4 sm:$0xff]  }
  0x92   : > { %3215 = vmatprep.subr.bf16.mxu0 %v4818_v50  ;;  %1773 = vmatprep.mubr.bf16.mxu1 %v3954_v2  ;;  %v5909_v50 = vcombine.low %v861_v48, %v863_v59  ;;  %v806_v2 = vshrl.u32 %v5708_v51, 16  ;;  %v3956_v35 = vcombine.low %v864_v58, %v866_v57  ;;  %v870_v58 = vrot.slane %v5676_v20, 1  ;;  %v4929_v60 = vld [vmem:[%s6513_s3 + $0x64] ss:$8 sps:$4 sm:$0xff]  }
  0x93   : > { %2593 = vmatprep.mubr.bf16.mxu0 %v5876_v12 }
  0x94   : > { %1801 = vmatpush1.bf16.msra.mxu1 %v4813_v0  ;;  %v5927_v0 = vcombine.low %v866_v57, %v868_v33  ;;  %v5933_v34 = vor.u32 %v810_v7, %v806_v2  ;;  %v4831_v2 = vld [vmem:[%s6513_s3 + $0x560] ss:$8 sps:$4 sm:$0xff]  }
  0x95   : > { %3216 = vmatpush1.bf16.msra.mxu0 %v4816_v5  ;;  %1802 = vmatprep.subr.bf16.mxu1 %v4821_v54  ;;  %v4828_v5 = vld [vmem:[%s6513_s3 + $0x650] ss:$8 sps:$4 sm:$0xff]   ;;  %v865_v54 = vrot.slane %v5609_v52, 1  ;;  %v4915_v57 = vld [vmem:[%s6513_s3 + $0x40] ss:$8 sps:$4 sm:$0xff]   ;;  %v3962_v52 = vcombine.low %v868_v33, %v870_v58 }
  0x96   : > { %3217 = vmatprep.subr.bf16.mxu0 %v4824_v53  ;;  %v867_v53 = vrot.slane %v5697_v41, 1  ;;  %v4932_v33 = vld [vmem:[%s6513_s3 + $0x764] ss:$8 sps:$4 sm:$0xff]   ;;  %v4935_v41 = vld [vmem:[%s6513_s3 + $0x74] ss:$8 sps:$4 sm:$0xff]  }
  0x97   : > { %1774 = vmatmul.mubr.bf16.gmra.mrb[8].mxu1 %v3953_v43  ;;  %v4836_v43 = vld [vmem:[%s6513_s3 + $0x664] ss:$8 sps:$4 sm:$0xff]  }
  0x98   : > { %2594 = vmatmul.mubr.bf16.gmra.mrb[8].mxu0 %v5909_v50  ;;  %1803 = vmatpush1.bf16.msra.mxu1 %v4819_v27  ;;  %v4834_v27 = vld [vmem:[%s6513_s3 + $0x660] ss:$8 sps:$4 sm:$0xff]   ;;  %v5956_v7 = vcombine.low %v865_v54, %v867_v53 }
  0x99   : > { %3218 = vmatpush1.bf16.msra.mxu0 %v4822_v39  ;;  %1804 = vmatprep.subr.bf16.mxu1 %v4827_v62  ;;  %v3959_v39 = vcombine.low %v5760_v37, %v5933_v34  ;;  %v4842_v62 = vld [vmem:[%s6513_s3 + $0x674] ss:$8 sps:$4 sm:$0xff]   ;;  %v3944_v37 = vcombine.low %v856_v19, %v858_v10  ;;  %v4848_v19 = vld [vmem:[%s6513_s3 + $0x684] ss:$8 sps:$4 sm:$0xff]   ;;  %v4843_v10 = vld [vmem:[%s6513_s3 + $0x580] ss:$8 sps:$4 sm:$0xff]  }
  0x9a   : > { %3219 = vmatprep.subr.bf16.mxu0 %v4830_v30  ;;  %1783 = vmatprep.mubr.bf16.mxu1 %v3960_v1  ;;  %v4839_v1 = vld [vmem:[%s6513_s3 + $0x574] ss:$8 sps:$4 sm:$0xff]   ;;  %v4837_v30 = vld [vmem:[%s6513_s3 + $0x570] ss:$8 sps:$4 sm:$0xff]  }
  0x9b   : > { %2603 = vmatprep.mubr.bf16.mxu0 %v5927_v0 }
  0x9c   : > { %1805 = vmatpush1.bf16.msra.mxu1 %v4825_v6  ;;  %v4840_v6 = vld [vmem:[%s6513_s3 + $0x670] ss:$8 sps:$4 sm:$0xff]  }
  0x9d   : > { %3220 = vmatpush1.bf16.msra.mxu0 %v4828_v5  ;;  %1806 = vmatprep.subr.bf16.mxu1 %v4833_v47  ;;  %v4846_v5 = vld [vmem:[%s6513_s3 + $0x680] ss:$8 sps:$4 sm:$0xff]   ;;  %v4851_v47 = vld [vmem:[%s6513_s3 + $0x594] ss:$8 sps:$4 sm:$0xff]  }
  0x9e   : > { %3221 = vmatprep.subr.bf16.mxu0 %v4836_v43  ;;  %v4854_v43 = vld [vmem:[%s6513_s3 + $0x694] ss:$8 sps:$4 sm:$0xff]  }
  0x9f   : > { %1784 = vmatmul.mubr.bf16.gmra.mrb[12].mxu1 %v3959_v39  ;;  %v4857_v39 = vld [vmem:[%s6513_s3 + $0x5a4] ss:$8 sps:$4 sm:$0xff]  }
  0xa0   : > { %2604 = vmatmul.mubr.bf16.gmra.mrb[12].mxu0 %v5956_v7  ;;  %1807 = vmatpush1.bf16.msra.mxu1 %v4831_v2  ;;  %v4849_v2 = vld [vmem:[%s6513_s3 + $0x590] ss:$8 sps:$4 sm:$0xff]  }
  0xa1   : > { %3222 = vmatpush1.bf16.msra.mxu0 %v4834_v27  ;;  %1808 = vmatprep.subr.bf16.mxu1 %v4839_v1  ;;  %v4852_v27 = vld [vmem:[%s6513_s3 + $0x690] ss:$8 sps:$4 sm:$0xff]   ;;  %v4860_v1 = vld [vmem:[%s6513_s3 + $0x6a4] ss:$8 sps:$4 sm:$0xff]  }
  0xa2   : > { %3223 = vmatprep.subr.bf16.mxu0 %v4842_v62  ;;  %1826 = vmatprep.mubr.bf16.mxu1 %v3944_v37  ;;  %v4855_v62 = vld [vmem:[%s6513_s3 + $0x5a0] ss:$8 sps:$4 sm:$0xff]  }
  0xa3   : > { %3241 = vmatprep.mubr.bf16.mxu0 %v5701_v29  ;;  %v4858_v37 = vld [vmem:[%s6513_s3 + $0x6a0] ss:$8 sps:$4 sm:$0xff]  }
  0xa4   : > { %1809 = vmatpush1.bf16.msra.mxu1 %v4837_v30  ;;  %v4863_v30 = vld [vmem:[%s6513_s3 + $0x5b4] ss:$8 sps:$4 sm:$0xff]  }
  0xa5   : > { %3224 = vmatpush1.bf16.msra.mxu0 %v4840_v6  ;;  %1810 = vmatprep.subr.bf16.mxu1 %v4845_v40  ;;  %v4866_v6 = vld [vmem:[%s6513_s3 + $0x6b4] ss:$8 sps:$4 sm:$0xff]   ;;  %v4861_v40 = vld [vmem:[%s6513_s3 + $0x5b0] ss:$8 sps:$4 sm:$0xff]  }
  0xa6   : > { %3225 = vmatprep.subr.bf16.mxu0 %v4848_v19  ;;  %v4864_v19 = vld [vmem:[%s6513_s3 + $0x6b0] ss:$8 sps:$4 sm:$0xff]  }
  0xa8   : > { %1811 = vmatpush1.bf16.msra.mxu1 %v4843_v10  ;;  %v4869_v10 = vld [vmem:[%s6513_s3 + $0x5c4] ss:$8 sps:$4 sm:$0xff]  }
  0xa9   : > { %3226 = vmatpush1.bf16.msra.mxu0 %v4846_v5  ;;  %1812 = vmatprep.subr.bf16.mxu1 %v4851_v47  ;;  %v4872_v5 = vld [vmem:[%s6513_s3 + $0x6c4] ss:$8 sps:$4 sm:$0xff]   ;;  %v4867_v47 = vld [vmem:[%s6513_s3 + $0x5c0] ss:$8 sps:$4 sm:$0xff]  }
  0xaa   : > { %3227 = vmatprep.subr.bf16.mxu0 %v4854_v43  ;;  %v4870_v43 = vld [vmem:[%s6513_s3 + $0x6c0] ss:$8 sps:$4 sm:$0xff]  }
  0xac   : > { %1813 = vmatpush1.bf16.msra.mxu1 %v4849_v2  ;;  %v4875_v2 = vld [vmem:[%s6513_s3 + $0x5d4] ss:$8 sps:$4 sm:$0xff]  }
  0xad   : > { %3228 = vmatpush1.bf16.msra.mxu0 %v4852_v27  ;;  %1814 = vmatprep.subr.bf16.mxu1 %v4857_v39  ;;  %v4878_v27 = vld [vmem:[%s6513_s3 + $0x6d4] ss:$8 sps:$4 sm:$0xff]   ;;  %v4873_v39 = vld [vmem:[%s6513_s3 + $0x5d0] ss:$8 sps:$4 sm:$0xff]  }
  0xae   : > { %3229 = vmatprep.subr.bf16.mxu0 %v4860_v1  ;;  %v4876_v1 = vld [vmem:[%s6513_s3 + $0x6d0] ss:$8 sps:$4 sm:$0xff]  }
  0xb0   : > { %1815 = vmatpush1.bf16.msra.mxu1 %v4855_v62  ;;  %v4881_v62 = vld [vmem:[%s6513_s3 + $0x5e4] ss:$8 sps:$4 sm:$0xff]  }
  0xb1   : > { %3230 = vmatpush1.bf16.msra.mxu0 %v4858_v37  ;;  %1816 = vmatprep.subr.bf16.mxu1 %v4863_v30  ;;  %v4884_v37 = vld [vmem:[%s6513_s3 + $0x6e4] ss:$8 sps:$4 sm:$0xff]   ;;  %v4879_v30 = vld [vmem:[%s6513_s3 + $0x5e0] ss:$8 sps:$4 sm:$0xff]  }
  0xb2   : > { %3231 = vmatprep.subr.bf16.mxu0 %v4866_v6  ;;  %v4882_v6 = vld [vmem:[%s6513_s3 + $0x6e0] ss:$8 sps:$4 sm:$0xff]  }
  0xb4   : > { %1817 = vmatpush1.bf16.msra.mxu1 %v4861_v40  ;;  %v4887_v40 = vld [vmem:[%s6513_s3 + $0x5f4] ss:$8 sps:$4 sm:$0xff]  }
  0xb5   : > { %3232 = vmatpush1.bf16.msra.mxu0 %v4864_v19  ;;  %1818 = vmatprep.subr.bf16.mxu1 %v4869_v10  ;;  %v4890_v19 = vld [vmem:[%s6513_s3 + $0x6f4] ss:$8 sps:$4 sm:$0xff]   ;;  %v4885_v10 = vld [vmem:[%s6513_s3 + $0x5f0] ss:$8 sps:$4 sm:$0xff]  }
  0xb6   : > { %3233 = vmatprep.subr.bf16.mxu0 %v4872_v5  ;;  %v4888_v5 = vld [vmem:[%s6513_s3 + $0x6f0] ss:$8 sps:$4 sm:$0xff]  }
  0xb8   : > { %1819 = vmatpush1.bf16.msra.mxu1 %v4867_v47  ;;  %v4893_v47 = vld [vmem:[%s6513_s3 + $0x4] ss:$8 sps:$4 sm:$0xff]  }
  0xb9   : > { %3234 = vmatpush1.bf16.msra.mxu0 %v4870_v43  ;;  %1820 = vmatprep.subr.bf16.mxu1 %v4875_v2  ;;  %v4896_v43 = vld [vmem:[%s6513_s3 + $0x704] ss:$8 sps:$4 sm:$0xff]   ;;  %v4891_v2 = vld [vmem:[%s6513_s3] ss:$8 sps:$4 sm:$0xff]  }
  0xba   : > { %3235 = vmatprep.subr.bf16.mxu0 %v4878_v27  ;;  %v4894_v27 = vld [vmem:[%s6513_s3 + $0x700] ss:$8 sps:$4 sm:$0xff]  }
  0xbc   : > { %1821 = vmatpush1.bf16.msra.mxu1 %v4873_v39  ;;  %v4899_v39 = vld [vmem:[%s6513_s3 + $0x14] ss:$8 sps:$4 sm:$0xff]  }
  0xbd   : > { %3236 = vmatpush1.bf16.msra.mxu0 %v4876_v1  ;;  %1822 = vmatprep.subr.bf16.mxu1 %v4881_v62  ;;  %v4902_v1 = vld [vmem:[%s6513_s3 + $0x714] ss:$8 sps:$4 sm:$0xff]   ;;  %v3950_v62 = vcombine.low %v860_v22, %v862_v55  ;;  %v4906_v22 = vld [vmem:[%s6513_s3 + $0x720] ss:$8 sps:$4 sm:$0xff]   ;;  %v3949_v55 = vcombine.low %v859_v63, %v861_v48  ;;  %v4912_v63 = vld [vmem:[%s6513_s3 + $0x730] ss:$8 sps:$4 sm:$0xff]   ;;  %v3955_v48 = vcombine.low %v863_v59, %v865_v54 }
  0xbe   : > { %3237 = vmatprep.subr.bf16.mxu0 %v4884_v37  ;;  %v4897_v37 = vld [vmem:[%s6513_s3 + $0x10] ss:$8 sps:$4 sm:$0xff]   ;;  %v4276_v59 = vcombine.low %v5676_v20, %v5289_v8  ;;  %v869_v54 = vrot.slane %v5708_v51, 1 }
  0xc0   : > { %1823 = vmatpush1.bf16.msra.mxu1 %v4879_v30  ;;  %v4900_v30 = vld [vmem:[%s6513_s3 + $0x710] ss:$8 sps:$4 sm:$0xff]  }
  0xc1   : > { %3238 = vmatpush1.bf16.msra.mxu0 %v4882_v6  ;;  %1824 = vmatprep.subr.bf16.mxu1 %v4887_v40  ;;  %v4911_v6 = vld [vmem:[%s6513_s3 + $0x34] ss:$8 sps:$4 sm:$0xff]  }
  0xc2   : > { %3239 = vmatprep.subr.bf16.mxu0 %v4890_v19  ;;  %v4914_v40 = vld [vmem:[%s6513_s3 + $0x734] ss:$8 sps:$4 sm:$0xff]   ;;  %v4918_v19 = vld [vmem:[%s6513_s3 + $0x740] ss:$8 sps:$4 sm:$0xff]  }
  0xc4   : > { %1825 = vmatpush1.bf16.msra.mxu1 %v4885_v10  ;;  %v4923_v10 = vld [vmem:[%s6513_s3 + $0x54] ss:$8 sps:$4 sm:$0xff]  }
  0xc5   : > { %3240 = vmatpush1.bf16.msra.mxu0 %v4888_v5  ;;  %2395 = vmatprep.subr.bf16.mxu1 %v4893_v47  ;;  %v4921_v5 = vld [vmem:[%s6513_s3 + $0x50] ss:$8 sps:$4 sm:$0xff]  }
  0xc6   : > { %3282 = vmatprep.subr.bf16.mxu0 %v4896_v43  ;;  %v4924_v47 = vld [vmem:[%s6513_s3 + $0x750] ss:$8 sps:$4 sm:$0xff]   ;;  %v3961_v43 = vcombine.low %v867_v53, %v869_v54  ;;  %v4938_v53 = vld [vmem:[%s6513_s3 + $0x774] ss:$8 sps:$4 sm:$0xff]  }
  0xc7   : > { %1827 = vmatmul.mubr.bf16.vlgmr.msra.gmra.mrb[0].mxu1 %v5411_v14  ;;  %v4908_v14 = vld [vmem:[%s6513_s3 + $0x724] ss:$8 sps:$4 sm:$0xff]  }
  0xc8   : > { %3242 = vmatmul.mubr.bf16.vlgmr.msra.gmra.mrb[0].mxu0 %v5728_v56  ;;  %2396 = vmatpush1.bf16.msra.mxu1 %v4891_v2  ;;  %v4275_v2 = vcombine.low %v5708_v51, %v5308_v25 }
  0xc9   : > { %3283 = vmatpush1.bf16.msra.mxu0 %v4894_v27  ;;  %2397 = vmatprep.subr.bf16.mxu1 %v4899_v39  ;;  %v4927_v27 = vld [vmem:[%s6513_s3 + $0x60] ss:$8 sps:$4 sm:$0xff]  }
  0xca   : > { %3284 = vmatprep.subr.bf16.mxu0 %v4902_v1  ;;  %1836 = vmatprep.mubr.bf16.mxu1 %v3950_v62  ;;  %v4930_v39 = vld [vmem:[%s6513_s3 + $0x760] ss:$8 sps:$4 sm:$0xff]   ;;  %v4060_v1 = vcombine.low %v5289_v8, %v5330_v38  ;;  %v4933_v62 = vld [vmem:[%s6513_s3 + $0x70] ss:$8 sps:$4 sm:$0xff]   ;;  %v4944_v38 = vld [vmem:[%s6513_s3 + $0x784] ss:$8 sps:$4 sm:$0xff]  }
  0xcb   : > { %3251 = vmatprep.mubr.bf16.mxu0 %v5737_v13 }
  0xcc   : > { %2398 = vmatpush1.bf16.msra.mxu1 %v4897_v37  ;;  %v4936_v37 = vld [vmem:[%s6513_s3 + $0x770] ss:$8 sps:$4 sm:$0xff]  }
  0xcd   : > { %3285 = vmatpush1.bf16.msra.mxu0 %v4900_v30  ;;  %2399 = vmatprep.subr.bf16.mxu1 %v4905_v24  ;;  %v4941_v30 = vld [vmem:[%s6513_s3 + $0x84] ss:$8 sps:$4 sm:$0xff]   ;;  %v4939_v24 = vld [vmem:[%s6513_s3 + $0x80] ss:$8 sps:$4 sm:$0xff]  }
  0xce   : > { %3286 = vmatprep.subr.bf16.mxu0 %v4908_v14  ;;  %v4942_v14 = vld [vmem:[%s6513_s3 + $0x780] ss:$8 sps:$4 sm:$0xff]  }
  0xcf   : > { %1837 = vmatmul.mubr.bf16.gmra.mrb[4].mxu1 %v3949_v55  ;;  %v4948_v55 = vld [vmem:[%s6513_s3 + $0x790] ss:$8 sps:$4 sm:$0xff]  }
  0xd0   : > { %3252 = vmatmul.mubr.bf16.gmra.mrb[4].mxu0 %v5741_v15  ;;  %2400 = vmatpush1.bf16.msra.mxu1 %v4903_v23  ;;  %v4947_v23 = vld [vmem:[%s6513_s3 + $0x94] ss:$8 sps:$4 sm:$0xff]  }
  0xd1   : > { %3287 = vmatpush1.bf16.msra.mxu0 %v4906_v22  ;;  %2401 = vmatprep.subr.bf16.mxu1 %v4911_v6  ;;  %v4945_v22 = vld [vmem:[%s6513_s3 + $0x90] ss:$8 sps:$4 sm:$0xff]   ;;  %v4953_v6 = vld [vmem:[%s6513_s3 + $0xa4] ss:$8 sps:$4 sm:$0xff]  }
  0xd2   : > { %3288 = vmatprep.subr.bf16.mxu0 %v4914_v40  ;;  %1846 = vmatprep.mubr.bf16.mxu1 %v3956_v35  ;;  %v4956_v40 = vld [vmem:[%s6513_s3 + $0x7a4] ss:$8 sps:$4 sm:$0xff]   ;;  %v4951_v35 = vld [vmem:[%s6513_s3 + $0xa0] ss:$8 sps:$4 sm:$0xff]  }
  0xd3   : > { %3261 = vmatprep.mubr.bf16.mxu0 %v5748_v21 }
  0xd4   : > { %2402 = vmatpush1.bf16.msra.mxu1 %v4909_v32  ;;  %v4954_v32 = vld [vmem:[%s6513_s3 + $0x7a0] ss:$8 sps:$4 sm:$0xff]  }
  0xd5   : > { %3289 = vmatpush1.bf16.msra.mxu0 %v4912_v63  ;;  %2403 = vmatprep.subr.bf16.mxu1 %v4917_v31  ;;  %v4959_v63 = vld [vmem:[%s6513_s3 + $0xb4] ss:$8 sps:$4 sm:$0xff]  }
  0xd6   : > { %3290 = vmatprep.subr.bf16.mxu0 %v4920_v26  ;;  %v4962_v31 = vld [vmem:[%s6513_s3 + $0x7b4] ss:$8 sps:$4 sm:$0xff]   ;;  %v4957_v26 = vld [vmem:[%s6513_s3 + $0xb0] ss:$8 sps:$4 sm:$0xff]  }
  0xd7   : > { %1847 = vmatmul.mubr.bf16.gmra.mrb[8].mxu1 %v3955_v48  ;;  %v4960_v48 = vld [vmem:[%s6513_s3 + $0x7b0] ss:$8 sps:$4 sm:$0xff]  }
  0xd8   : > { %3262 = vmatmul.mubr.bf16.gmra.mrb[8].mxu0 %v5752_v28  ;;  %2404 = vmatpush1.bf16.msra.mxu1 %v4915_v57  ;;  %v4965_v57 = vld [vmem:[%s6513_s3 + $0xc4] ss:$8 sps:$4 sm:$0xff]  }
  0xd9   : > { %3291 = vmatpush1.bf16.msra.mxu0 %v4918_v19  ;;  %2405 = vmatprep.subr.bf16.mxu1 %v4923_v10  ;;  %v4968_v19 = vld [vmem:[%s6513_s3 + $0x7c4] ss:$8 sps:$4 sm:$0xff]   ;;  %v4963_v10 = vld [vmem:[%s6513_s3 + $0xc0] ss:$8 sps:$4 sm:$0xff]  }
  0xda   : > { %3292 = vmatprep.subr.bf16.mxu0 %v4926_v49  ;;  %1856 = vmatprep.mubr.bf16.mxu1 %v3962_v52  ;;  %v4966_v49 = vld [vmem:[%s6513_s3 + $0x7c0] ss:$8 sps:$4 sm:$0xff]   ;;  %v4971_v52 = vld [vmem:[%s6513_s3 + $0xd4] ss:$8 sps:$4 sm:$0xff]  }
  0xdb   : > { %3271 = vmatprep.mubr.bf16.mxu0 %v4276_v59  ;;  %v4974_v59 = vld [vmem:[%s6513_s3 + $0x7d4] ss:$8 sps:$4 sm:$0xff]  }
  0xdc   : > { %2406 = vmatpush1.bf16.msra.mxu1 %v4921_v5  ;;  %v4969_v5 = vld [vmem:[%s6513_s3 + $0xd0] ss:$8 sps:$4 sm:$0xff]  }
  0xdd   : > { %3293 = vmatpush1.bf16.msra.mxu0 %v4924_v47  ;;  %2407 = vmatprep.subr.bf16.mxu1 %v4929_v60  ;;  %v4972_v47 = vld [vmem:[%s6513_s3 + $0x7d0] ss:$8 sps:$4 sm:$0xff]   ;;  %v4977_v60 = vld [vmem:[%s6513_s3 + $0xe4] ss:$8 sps:$4 sm:$0xff]  }
  0xde   : > { %3294 = vmatprep.subr.bf16.mxu0 %v4932_v33  ;;  %v4980_v33 = vld [vmem:[%s6513_s3 + $0x7e4] ss:$8 sps:$4 sm:$0xff]  }
  0xdf   : > { %1857 = vmatmul.mubr.bf16.gmra.mrb[12].mxu1 %v3961_v43  ;;  %v4975_v43 = vld [vmem:[%s6513_s3 + $0xe0] ss:$8 sps:$4 sm:$0xff]  }
  0xe0   : > { %3272 = vmatmul.mubr.bf16.gmra.mrb[12].mxu0 %v4275_v2  ;;  %2408 = vmatpush1.bf16.msra.mxu1 %v4927_v27  ;;  %v4978_v2 = vld [vmem:[%s6513_s3 + $0x7e0] ss:$8 sps:$4 sm:$0xff]   ;;  %v4983_v27 = vld [vmem:[%s6513_s3 + $0xf4] ss:$8 sps:$4 sm:$0xff]  }
  0xe1   : > { %3295 = vmatpush1.bf16.msra.mxu0 %v4930_v39  ;;  %2409 = vmatprep.subr.bf16.mxu1 %v4935_v41  ;;  %v4986_v39 = vld [vmem:[%s6513_s3 + $0x7f4] ss:$8 sps:$4 sm:$0xff]   ;;  %v4981_v41 = vld [vmem:[%s6513_s3 + $0xf0] ss:$8 sps:$4 sm:$0xff]  }
  0xe2   : > { %3296 = vmatprep.subr.bf16.mxu0 %v4938_v53  ;;  %2427 = vmatprep.mubr.bf16.mxu1 %v4060_v1  ;;  %v4984_v53 = vld [vmem:[%s6513_s3 + $0x7f0] ss:$8 sps:$4 sm:$0xff]   ;;  %v4989_v1 = vld [vmem:[%s6513_s3 + $0x804] ss:$8 sps:$4 sm:$0xff]  }
  0xe3   : > { %3314 = vmatprep.mubr.bf16.mxu0 %v5553_v9  ;;  %v4950_v9 = vld [vmem:[%s6513_s3 + $0x794] ss:$8 sps:$4 sm:$0xff]  }
  0xe4   : > { %2410 = vmatpush1.bf16.msra.mxu1 %v4933_v62  ;;  %v4059_v62 = vcombine.low %v5308_v25, %v5346_v46  ;;  %v4990_v46 = vld [vmem:[%s6513_s3 + $0x810] ss:$8 sps:$4 sm:$0xff]  }
  0xe5   : > { %3297 = vmatpush1.bf16.msra.mxu0 %v4936_v37  ;;  %2411 = vmatprep.subr.bf16.mxu1 %v4941_v30  ;;  %v4987_v37 = vld [vmem:[%s6513_s3 + $0x800] ss:$8 sps:$4 sm:$0xff]   ;;  %v4992_v30 = vld [vmem:[%s6513_s3 + $0x814] ss:$8 sps:$4 sm:$0xff]  }
  0xe6   : > { %3298 = vmatprep.subr.bf16.mxu0 %v4944_v38  ;;  %v4995_v38 = vld [vmem:[%s6513_s3 + $0x824] ss:$8 sps:$4 sm:$0xff]  }
  0xe8   : > { %2412 = vmatpush1.bf16.msra.mxu1 %v4939_v24  ;;  %v4998_v24 = vld [vmem:[%s6513_s3 + $0x834] ss:$8 sps:$4 sm:$0xff]  }
  0xe9   : > { %3299 = vmatpush1.bf16.msra.mxu0 %v4942_v14  ;;  %2413 = vmatprep.subr.bf16.mxu1 %v4947_v23  ;;  %v4278_v14 = vcombine.low %v5896_v4, %v5342_v45  ;;  %v4277_v45 = vcombine.low %v5933_v34, %v5372_v61  ;;  %v5008_v61 = vld [vmem:[%s6513_s3 + $0x870] ss:$8 sps:$4 sm:$0xff]   ;;  %v5016_v4 = vld [vmem:[%s6513_s3 + $0x894] ss:$8 sps:$4 sm:$0xff]   ;;  %v5017_v34 = vld [vmem:[%s6513_s3 + $0x8a0] ss:$8 sps:$4 sm:$0xff]  }
  0xea   : > { %3300 = vmatprep.subr.bf16.mxu0 %v4950_v9  ;;  %v5022_v23 = vld [vmem:[%s6513_s3 + $0x8b4] ss:$8 sps:$4 sm:$0xff]   ;;  %v5020_v9 = vld [vmem:[%s6513_s3 + $0x8b0] ss:$8 sps:$4 sm:$0xff]  }
  0xec   : > { %2414 = vmatpush1.bf16.msra.mxu1 %v4945_v22  ;;  %v5025_v22 = vld [vmem:[%s6513_s3 + $0x8c4] ss:$8 sps:$4 sm:$0xff]  }
  0xed   : > { %3301 = vmatpush1.bf16.msra.mxu0 %v4948_v55  ;;  %2415 = vmatprep.subr.bf16.mxu1 %v4953_v6  ;;  %v5023_v55 = vld [vmem:[%s6513_s3 + $0x8c0] ss:$8 sps:$4 sm:$0xff]   ;;  %v5028_v6 = vld [vmem:[%s6513_s3 + $0x8d4] ss:$8 sps:$4 sm:$0xff]  }
  0xee   : > { %3302 = vmatprep.subr.bf16.mxu0 %v4956_v40  ;;  %v5026_v40 = vld [vmem:[%s6513_s3 + $0x8d0] ss:$8 sps:$4 sm:$0xff]  }
  0xf0   : > { %2416 = vmatpush1.bf16.msra.mxu1 %v4951_v35  ;;  %v5031_v35 = vld [vmem:[%s6513_s3 + $0x8e4] ss:$8 sps:$4 sm:$0xff]  }
  0xf1   : > { %3303 = vmatpush1.bf16.msra.mxu0 %v4954_v32  ;;  %2417 = vmatprep.subr.bf16.mxu1 %v4959_v63  ;;  %v5029_v32 = vld [vmem:[%s6513_s3 + $0x8e0] ss:$8 sps:$4 sm:$0xff]   ;;  %v5034_v63 = vld [vmem:[%s6513_s3 + $0x8f4] ss:$8 sps:$4 sm:$0xff]  }
  0xf2   : > { %3304 = vmatprep.subr.bf16.mxu0 %v4962_v31  ;;  %v5032_v31 = vld [vmem:[%s6513_s3 + $0x8f0] ss:$8 sps:$4 sm:$0xff]  }
  0xf4   : > { %2418 = vmatpush1.bf16.msra.mxu1 %v4957_v26  ;;  %v4280_v26 = vcombine.low %v870_v58, %v854_v18 }
  0xf5   : > { %3305 = vmatpush1.bf16.msra.mxu0 %v4960_v48  ;;  %2419 = vmatprep.subr.bf16.mxu1 %v4965_v57  ;;  %v6521_v48 = vrot.slane %v5308_v25, 1 }
  0xf6   : > { %3306 = vmatprep.subr.bf16.mxu0 %v4968_v19 }
  0xf7   : > { %v4279_v57 = vcombine.low %v869_v54, %v6521_v48 }
  0xf8   : > { %2420 = vmatpush1.bf16.msra.mxu1 %v4963_v10 }
  0xf9   : > { %3307 = vmatpush1.bf16.msra.mxu0 %v4966_v49  ;;  %2421 = vmatprep.subr.bf16.mxu1 %v4971_v52 }
  0xfa   : > { %3308 = vmatprep.subr.bf16.mxu0 %v4974_v59 }
  0xfc   : > { %2422 = vmatpush1.bf16.msra.mxu1 %v4969_v5 }
  0xfd   : > { %3309 = vmatpush1.bf16.msra.mxu0 %v4972_v47  ;;  %2423 = vmatprep.subr.bf16.mxu1 %v4977_v60 }
  0xfe   : > { %3310 = vmatprep.subr.bf16.mxu0 %v4980_v33 }
 0x100   : > { %2424 = vmatpush1.bf16.msra.mxu1 %v4975_v43 }
 0x101   : > { %3311 = vmatpush1.bf16.msra.mxu0 %v4978_v2  ;;  %2425 = vmatprep.subr.bf16.mxu1 %v4983_v27 }
 0x102   : > { %3312 = vmatprep.subr.bf16.mxu0 %v4986_v39 }
 0x104   : > { %2426 = vmatpush1.bf16.msra.mxu1 %v4981_v41 }
 0x105   : > { %3313 = vmatpush1.bf16.msra.mxu0 %v4984_v53  ;;  %4402 = vmatprep.subr.bf16.mxu1 %v4989_v1 }
 0x106   : > { %3355 = vmatprep.subr.bf16.mxu0 %v4989_v1 }
 0x107   : > { %2428 = vmatmul.mubr.bf16.vlgmr.msra.gmra.mrb[0].mxu1 %v4059_v62 }
 0x108   : > { %3315 = vmatmul.mubr.bf16.vlgmr.msra.gmra.mrb[0].mxu0 %v5560_v17  ;;  %4418 = vmatpush1.bf16.msra.mxu1 %v4987_v37  ;;  %v4993_v17 = vld [vmem:[%s6513_s3 + $0x820] ss:$8 sps:$4 sm:$0xff]  }
 0x109   : > { %3356 = vmatpush1.bf16.msra.mxu0 %v4987_v37  ;;  %4403 = vmatprep.subr.bf16.mxu1 %v4992_v30 }
 0x10a   : > { %3357 = vmatprep.subr.bf16.mxu0 %v4992_v30  ;;  %2437 = vmatprep.mubr.bf16.mxu1 %v5701_v29  ;;  %v5001_v29 = vld [vmem:[%s6513_s3 + $0x844] ss:$8 sps:$4 sm:$0xff]  }
 0x10b   : > { %3324 = vmatprep.mubr.bf16.mxu0 %v5627_v16  ;;  %v4996_v16 = vld [vmem:[%s6513_s3 + $0x830] ss:$8 sps:$4 sm:$0xff]  }
 0x10c   : > { %4419 = vmatpush1.bf16.msra.mxu1 %v4990_v46 }
 0x10d   : > { %3358 = vmatpush1.bf16.msra.mxu0 %v4990_v46  ;;  %4404 = vmatprep.subr.bf16.mxu1 %v4995_v38 }
 0x10e   : > { %3359 = vmatprep.subr.bf16.mxu0 %v4995_v38 }
 0x10f   : > { %2438 = vmatmul.mubr.bf16.gmra.mrb[4].mxu1 %v5728_v56  ;;  %v5004_v56 = vld [vmem:[%s6513_s3 + $0x854] ss:$8 sps:$4 sm:$0xff]  }
 0x110   : > { %3325 = vmatmul.mubr.bf16.gmra.mrb[4].mxu0 %v5648_v44  ;;  %4420 = vmatpush1.bf16.msra.mxu1 %v4993_v17  ;;  %v4999_v44 = vld [vmem:[%s6513_s3 + $0x840] ss:$8 sps:$4 sm:$0xff]  }
 0x111   : > { %3360 = vmatpush1.bf16.msra.mxu0 %v4993_v17  ;;  %4405 = vmatprep.subr.bf16.mxu1 %v4998_v24 }
 0x112   : > { %3361 = vmatprep.subr.bf16.mxu0 %v4998_v24  ;;  %2447 = vmatprep.mubr.bf16.mxu1 %v5737_v13  ;;  %v5007_v13 = vld [vmem:[%s6513_s3 + $0x864] ss:$8 sps:$4 sm:$0xff]  }
 0x113   : > { %3334 = vmatprep.mubr.bf16.mxu0 %v5722_v3  ;;  %v5002_v3 = vld [vmem:[%s6513_s3 + $0x850] ss:$8 sps:$4 sm:$0xff]  }
 0x114   : > { %4421 = vmatpush1.bf16.msra.mxu1 %v4996_v16 }
 0x115   : > { %3362 = vmatpush1.bf16.msra.mxu0 %v4996_v16  ;;  %4406 = vmatprep.subr.bf16.mxu1 %v5001_v29 }
 0x116   : > { %3363 = vmatprep.subr.bf16.mxu0 %v5001_v29 }
 0x117   : > { %2448 = vmatmul.mubr.bf16.gmra.mrb[8].mxu1 %v5741_v15  ;;  %v5005_v15 = vld [vmem:[%s6513_s3 + $0x860] ss:$8 sps:$4 sm:$0xff]  }
 0x118   : > { %3335 = vmatmul.mubr.bf16.gmra.mrb[8].mxu0 %v5770_v42  ;;  %4422 = vmatpush1.bf16.msra.mxu1 %v4999_v44  ;;  %v5010_v42 = vld [vmem:[%s6513_s3 + $0x874] ss:$8 sps:$4 sm:$0xff]  }
 0x119   : > { %3364 = vmatpush1.bf16.msra.mxu0 %v4999_v44  ;;  %4407 = vmatprep.subr.bf16.mxu1 %v5004_v56 }
 0x11a   : > { %3365 = vmatprep.subr.bf16.mxu0 %v5004_v56  ;;  %2457 = vmatprep.mubr.bf16.mxu1 %v5748_v21  ;;  %v5013_v21 = vld [vmem:[%s6513_s3 + $0x884] ss:$8 sps:$4 sm:$0xff]  }
 0x11b   : > { %3344 = vmatprep.mubr.bf16.mxu0 %v4278_v14 }
 0x11c   : > { %4423 = vmatpush1.bf16.msra.mxu1 %v5002_v3 }
 0x11d   : > { %3366 = vmatpush1.bf16.msra.mxu0 %v5002_v3  ;;  %4408 = vmatprep.subr.bf16.mxu1 %v5007_v13 }
 0x11e   : > { %3367 = vmatprep.subr.bf16.mxu0 %v5007_v13 }
 0x11f   : > { %2458 = vmatmul.mubr.bf16.gmra.mrb[12].mxu1 %v5752_v28  ;;  %v5011_v28 = vld [vmem:[%s6513_s3 + $0x880] ss:$8 sps:$4 sm:$0xff]  }
 0x120   : > { %3345 = vmatmul.mubr.bf16.gmra.mrb[12].mxu0 %v4277_v45  ;;  %4424 = vmatpush1.bf16.msra.mxu1 %v5005_v15 }
 0x121   : > { %3368 = vmatpush1.bf16.msra.mxu0 %v5005_v15  ;;  %4409 = vmatprep.subr.bf16.mxu1 %v5010_v42 }
 0x122   : > { %3369 = vmatprep.subr.bf16.mxu0 %v5010_v42  ;;  %3387 = vmatprep.mubr.bf16.mxu0 %v5828_v11  ;;  %v5014_v11 = vld [vmem:[%s6513_s3 + $0x890] ss:$8 sps:$4 sm:$0xff]  }
 0x123   : > { %3407 = vmatprep.mubr.bf16.mxu1 %v5927_v0  ;;  %v5019_v0 = vld [vmem:[%s6513_s3 + $0x8a4] ss:$8 sps:$4 sm:$0xff]  }
 0x124   : > { %4425 = vmatpush1.bf16.msra.mxu1 %v5008_v61 }
 0x125   : > { %3370 = vmatpush1.bf16.msra.mxu0 %v5008_v61  ;;  %4410 = vmatprep.subr.bf16.mxu1 %v5013_v21 }
 0x126   : > { %3371 = vmatprep.subr.bf16.mxu0 %v5013_v21 }
 0x128   : > { %4426 = vmatpush1.bf16.msra.mxu1 %v5011_v28 }
 0x129   : > { %3372 = vmatpush1.bf16.msra.mxu0 %v5011_v28  ;;  %4411 = vmatprep.subr.bf16.mxu1 %v5016_v4 }
 0x12a   : > { %3373 = vmatprep.subr.bf16.mxu0 %v5016_v4 }
 0x12c   : > { %4427 = vmatpush1.bf16.msra.mxu1 %v5014_v11 }
 0x12d   : > { %3374 = vmatpush1.bf16.msra.mxu0 %v5014_v11  ;;  %4412 = vmatprep.subr.bf16.mxu1 %v5019_v0 }
 0x12e   : > { %3375 = vmatprep.subr.bf16.mxu0 %v5019_v0 }
 0x130   : > { %4428 = vmatpush1.bf16.msra.mxu1 %v5017_v34 }
 0x131   : > { %3376 = vmatpush1.bf16.msra.mxu0 %v5017_v34  ;;  %4413 = vmatprep.subr.bf16.mxu1 %v5022_v23 }
 0x132   : > { %3377 = vmatprep.subr.bf16.mxu0 %v5022_v23 }
 0x134   : > { %4429 = vmatpush1.bf16.msra.mxu1 %v5020_v9 }
 0x135   : > { %3378 = vmatpush1.bf16.msra.mxu0 %v5020_v9  ;;  %4414 = vmatprep.subr.bf16.mxu1 %v5025_v22 }
 0x136   : > { %3379 = vmatprep.subr.bf16.mxu0 %v5025_v22 }
 0x138   : > { %4430 = vmatpush1.bf16.msra.mxu1 %v5023_v55 }
 0x139   : > { %3380 = vmatpush1.bf16.msra.mxu0 %v5023_v55  ;;  %4415 = vmatprep.subr.bf16.mxu1 %v5028_v6 }
 0x13a   : > { %3381 = vmatprep.subr.bf16.mxu0 %v5028_v6 }
 0x13c   : > { %4431 = vmatpush1.bf16.msra.mxu1 %v5026_v40 }
 0x13d   : > { %3382 = vmatpush1.bf16.msra.mxu0 %v5026_v40  ;;  %4416 = vmatprep.subr.bf16.mxu1 %v5031_v35 }
 0x13e   : > { %3383 = vmatprep.subr.bf16.mxu0 %v5031_v35 }
 0x140   : > { %4432 = vmatpush1.bf16.msra.mxu1 %v5029_v32 }
 0x141   : > { %3384 = vmatpush1.bf16.msra.mxu0 %v5029_v32  ;;  %4417 = vmatprep.subr.bf16.mxu1 %v5034_v63 }
 0x142   : > { %3385 = vmatprep.subr.bf16.mxu0 %v5034_v63 }
 0x144   : > { %4433 = vmatpush1.bf16.msra.mxu1 %v5032_v31 }
 0x145   : > { %3386 = vmatpush1.bf16.msra.mxu0 %v5032_v31 }
 0x147   : > { %3408 = vmatmul.mubr.bf16.vlgmr.msra.gmra.mrb[16].mxu1 %v5956_v7 }
 0x148   : > { %3388 = vmatmul.mubr.bf16.vlgmr.msra.gmra.mrb[0].mxu0 %v5859_v36  ;;  %3417 = vmatprep.mubr.bf16.mxu1 %v4280_v26 }
 0x149   : > { %3397 = vmatprep.mubr.bf16.mxu0 %v5876_v12 }
 0x14f   : > { %3418 = vmatmul.mubr.bf16.gmra.mrb[20].mxu1 %v4279_v57 }
 0x150   : > { %3398 = vmatmul.mubr.bf16.gmra.mrb[4].mxu0 %v5909_v50 }
 0x1da   : > { %v2429_v19 = vpop.f32.mrb[0].mxu1 }
 0x1db   : > { %v2431_v8 = vpop.f32.mrb[1].mxu1 }
 0x1dc   : > { %v2433_v10 = vpop.f32.mrb[2].mxu1 }
 0x1dd   : > { %v2435_v20 = vpop.f32.mrb[3].mxu1 }
 0x1e2   : > { %v2439_v18 = vpop.f32.mrb[4].mxu1 }
 0x1e3   : > { %v2441_v58 = vpop.f32.mrb[5].mxu1 }
 0x1e4   : > { %v6430_v36 = vpop.f32.mrb[6].mxu1 }
 0x1e5   : > { %v6432_v7 = vpop.f32.mrb[7].mxu1 }
 0x1ea   : > { %v2449_v12 = vpop.f32.mrb[8].mxu1 }
 0x1eb   : > { %v3336_v49 = vpop.f32.mrb[8].mxu0  ;;  %v2451_v25 = vpop.f32.mrb[9].mxu1 }
 0x1ec   : > { %v4442_v52 = vadd.f32 %v3336_v49, %v2449_v12  ;;  %v3338_v59 = vpop.f32.mrb[9].mxu0  ;;  %v2453_v54 = vpop.f32.mrb[10].mxu1 }
 0x1ed   : > { %v4444_v51 = vadd.f32 %v3338_v59, %v2451_v25  ;;  %v3340_v5 = vpop.f32.mrb[10].mxu0  ;;  %v2455_v47 = vpop.f32.mrb[11].mxu1 }
 0x1ee   : > { %v4446_v50 = vadd.f32 %v3340_v5, %v2453_v54  ;;  %v3342_v60 = vpop.f32.mrb[11].mxu0 }
 0x1ef   : > { %v4448_v33 = vadd.f32 %v3342_v60, %v2455_v47 }
 0x1f2   : > { %v2459_v43 = vpop.f32.mrb[12].mxu1 }
 0x1f3   : > { %v3346_v2 = vpop.f32.mrb[12].mxu0  ;;  %v2461_v39 = vpop.f32.mrb[13].mxu1 }
 0x1f4   : > { %v4450_v27 = vadd.f32 %v3346_v2, %v2459_v43  ;;  %v3348_v41 = vpop.f32.mrb[13].mxu0  ;;  %v2463_v1 = vpop.f32.mrb[14].mxu1 }
 0x1f5   : > { %v4452_v53 = vadd.f32 %v3348_v41, %v2461_v39  ;;  %v3350_v62 = vpop.f32.mrb[14].mxu0  ;;  %v2465_v30 = vpop.f32.mrb[15].mxu1 }
 0x1f6   : > { %v4454_v37 = vadd.f32 %v3350_v62, %v2463_v1  ;;  %v3352_v46 = vpop.f32.mrb[15].mxu0 }
 0x1f7   : > { %v4456_v38 = vadd.f32 %v3352_v46, %v2465_v30 }
 0x21a   : > { %v3409_v24 = vpop.f32.mrb[16].mxu1 }
 0x21b   : > { %v3389_v17 = vpop.f32.mrb[0].mxu0  ;;  %v6436_v29 = vadd.f32 %v4442_v52, %v3409_v24  ;;  %v3411_v56 = vpop.f32.mrb[17].mxu1 }
 0x21c   : > { %v6434_v16 = vadd.f32 %v3389_v17, %v2429_v19  ;;  %v3391_v44 = vpop.f32.mrb[1].mxu0  ;;  %v6440_v3 = vadd.f32 %v4444_v51, %v3411_v56  ;;  %v3413_v45 = vpop.f32.mrb[18].mxu1 }
 0x21d   : > { %v6438_v14 = vadd.f32 %v3391_v44, %v2431_v8  ;;  %v3393_v13 = vpop.f32.mrb[2].mxu0  ;;  %v6451_v42 = vadd.f32 %v4446_v50, %v3413_v45  ;;  %v3415_v21 = vpop.f32.mrb[19].mxu1 }
 0x21e   : > { %v6449_v15 = vadd.f32 %v3393_v13, %v2433_v10  ;;  %v3395_v61 = vpop.f32.mrb[3].mxu0  ;;  %v4398_v4 = vpack.c.bf16 %v6440_v3, %v6436_v29  ;;  %v6459_v0 = vadd.f32 %v4448_v33, %v3415_v21 }
 0x21f   : > { %v4394_v28 = vpack.c.bf16 %v6438_v14, %v6434_v16  ;;  %v6457_v11 = vadd.f32 %v3395_v61, %v2435_v20 }
 0x220   : > { %v3516_v34 = vadd.f32 %v6449_v15, %v6434_v16  ;;  %3512 = vst [vmem:[%s6447_s17 + $0x20] sm:$0xff] %v4398_v4  ;;  %v4399_v22 = vpack.c.bf16 %v6459_v0, %v6451_v42 }
 0x221   : > { %3508 = vst [vmem:[%s6447_s17] sm:$0xff] %v4394_v28  ;;  %v4395_v23 = vpack.c.bf16 %v6457_v11, %v6449_v15  ;;  %v3529_v9 = vadd.f32 %v6457_v11, %v6438_v14 }
 0x222   : > { %3513 = vst [vmem:[%s6447_s17 + $0x28] sm:$0xff] %v4399_v22  ;;  %v3419_v6 = vpop.f32.mrb[20].mxu1 }
 0x223   : > { %3509 = vst [vmem:[%s6447_s17 + $0x8] sm:$0xff] %v4395_v23  ;;  %v3399_v55 = vpop.f32.mrb[4].mxu0  ;;  %v4451_v35 = vadd.f32 %v4450_v27, %v3419_v6  ;;  %v3421_v63 = vpop.f32.mrb[21].mxu1 }
 0x224   : > { %v4438_v40 = vadd.f32 %v3399_v55, %v2439_v18  ;;  %v3401_v32 = vpop.f32.mrb[5].mxu0  ;;  %v4453_v26 = vadd.f32 %v4452_v53, %v3421_v63  ;;  %v3423_v57 = vpop.f32.mrb[22].mxu1 }
 0x225   : > { %v4439_v31 = vadd.f32 %v3401_v32, %v2441_v58  ;;  %v3403_v48 = vpop.f32.mrb[6].mxu0  ;;  %v4455_v10 = vadd.f32 %v4454_v37, %v3423_v57  ;;  %v3425_v12 = vpop.f32.mrb[23].mxu1 }
 0x226   : > { %v3517_v19 = vadd.f32 %v4438_v40, %v3516_v34  ;;  %v4440_v8 = vadd.f32 %v3403_v48, %v6430_v36  ;;  %v3405_v20 = vpop.f32.mrb[7].mxu0  ;;  %v4400_v18 = vpack.c.bf16 %v4453_v26, %v4451_v35  ;;  %v4457_v51 = vadd.f32 %v4456_v38, %v3425_v12 }
 0x227   : > { %v4396_v49 = vpack.c.bf16 %v4439_v31, %v4438_v40  ;;  %v3530_v52 = vadd.f32 %v4439_v31, %v3529_v9  ;;  %v4441_v25 = vadd.f32 %v3405_v20, %v6432_v7 }
 0x228   : > { %v3518_v59 = vadd.f32 %v4440_v8, %v3517_v19  ;;  %3514 = vst [vmem:[%s6447_s17 + $0x30] sm:$0xff] %v4400_v18  ;;  %v4401_v50 = vpack.c.bf16 %v4457_v51, %v4455_v10 }
 0x229   : > { %3510 = vst [vmem:[%s6447_s17 + $0x10] sm:$0xff] %v4396_v49  ;;  %v4397_v58 = vpack.c.bf16 %v4441_v25, %v4440_v8  ;;  %v3531_v54 = vadd.f32 %v4441_v25, %v3530_v52 }
 0x22a   : > { %v3519_v5 = vadd.f32 %v6436_v29, %v3518_v59  ;;  %3515 = vst [vmem:[%s6447_s17 + $0x38] sm:$0xff] %v4401_v50 }
 0x22b   : > { %3511 = vst [vmem:[%s6447_s17 + $0x18] sm:$0xff] %v4397_v58  ;;  %v3532_v36 = vadd.f32 %v6440_v3, %v3531_v54 }
 0x22c   : > { %v3520_v47 = vadd.f32 %v6451_v42, %v3519_v5 }
 0x22d   : > { %v3533_v60 = vadd.f32 %v6459_v0, %v3532_v36 }
 0x22e   : > { %v3521_v33 = vadd.f32 %v4451_v35, %v3520_v47 }
 0x22f   : > { %v3534_v43 = vadd.f32 %v4453_v26, %v3533_v60 }
 0x230   : > { %v3522_v7 = vadd.f32 %v4455_v10, %v3521_v33 }
 0x231   : > { %v3535_v2 = vadd.f32 %v4457_v51, %v3534_v43 }
 0x232   : > { %v3523_v27 = vrot.slane %v3522_v7, 4 }
 0x233   : > { %v3536_v39 = vrot.slane %v3535_v2, 4 }
 0x234   : > { %v3524_v41 = vadd.f32 %v3523_v27, %v3522_v7 }
 0x235   : > { %v3537_v53 = vadd.f32 %v3536_v39, %v3535_v2 }
 0x236   : > { %v3525_v1 = vrot.slane %v3524_v41, 2 }
 0x237   : > { %v3538_v62 = vrot.slane %v3537_v53, 2 }
 0x238   : > { %v3526_v37 = vadd.f32 %v3525_v1, %v3524_v41 }
 0x239   : > { %v3539_v30 = vadd.f32 %v3538_v62, %v3537_v53 }
 0x23a   : > { %v3527_v46 = vrot.slane %v3526_v37, 1 }
 0x23b   : > { %v3540_v38 = vrot.slane %v3539_v30, 1 }
 0x23c   : > { %v3528_v17 = vadd.f32 %v3527_v46, %v3526_v37 }
 0x23d   : > { %v6483_v24 = vadd.f32 %v3540_v38, %v3539_v30 }
 0x23e   : > { %v3542_v44 = vmul.f32 0.015625, %v3528_v17 }
 0x23f   : > { %v3543_v56 = vmul.f32 0.015625, %v6483_v24 }
 0x240   : > { %v3544_v13 = vsub.f32 %v6434_v16, %v3542_v44  ;;  %v3546_v45 = vsub.f32 %v6449_v15, %v3542_v44  ;;  %v3548_v61 = vsub.f32 %v4438_v40, %v3542_v44  ;;  %v3550_v21 = vsub.f32 %v4440_v8, %v3542_v44 }
 0x241   : > { %v3552_v28 = vsub.f32 %v6436_v29, %v3542_v44  ;;  %v3554_v4 = vsub.f32 %v6451_v42, %v3542_v44  ;;  %v3556_v34 = vsub.f32 %v4451_v35, %v3542_v44  ;;  %v3558_v23 = vsub.f32 %v4455_v10, %v3542_v44 }
 0x242   : > { %v3560_v9 = vmul.f32 %v3544_v13, %v3544_v13  ;;  %v3562_v22 = vmul.f32 %v3546_v45, %v3546_v45  ;;  %v3564_v55 = vmul.f32 %v3548_v61, %v3548_v61  ;;  %v3566_v6 = vmul.f32 %v3550_v21, %v3550_v21 }
 0x243   : > { %v3545_v63 = vsub.f32 %v6438_v14, %v3543_v56  ;;  %v3547_v48 = vsub.f32 %v6457_v11, %v3543_v56  ;;  %v3549_v16 = vsub.f32 %v4439_v31, %v3543_v56  ;;  %v3551_v57 = vsub.f32 %v4441_v25, %v3543_v56 }
 0x244   : > { %v3576_v32 = vadd.f32 %v3562_v22, %v3560_v9  ;;  %v3553_v15 = vsub.f32 %v6440_v3, %v3543_v56  ;;  %v3555_v40 = vsub.f32 %v6459_v0, %v3543_v56  ;;  %v3557_v29 = vsub.f32 %v4453_v26, %v3543_v56 }
 0x245   : > { %v3559_v42 = vsub.f32 %v4457_v51, %v3543_v56  ;;  %v3561_v35 = vmul.f32 %v3545_v63, %v3545_v63  ;;  %v3563_v8 = vmul.f32 %v3547_v48, %v3547_v48  ;;  %v3568_v10 = vmul.f32 %v3552_v28, %v3552_v28 }
 0x246   : > { %v3577_v19 = vadd.f32 %v3576_v32, %v3564_v55  ;;  %v3565_v12 = vmul.f32 %v3549_v16, %v3549_v16  ;;  %v3570_v52 = vmul.f32 %v3554_v4, %v3554_v4  ;;  %v3567_v14 = vmul.f32 %v3551_v57, %v3551_v57 }
 0x247   : > { %v3589_v49 = vadd.f32 %v3563_v8, %v3561_v35  ;;  %v3572_v11 = vmul.f32 %v3556_v34, %v3556_v34  ;;  %v3569_v25 = vmul.f32 %v3553_v15, %v3553_v15  ;;  %v3574_v3 = vmul.f32 %v3558_v23, %v3558_v23 }
 0x248   : > { %v3578_v20 = vadd.f32 %v3577_v19, %v3566_v6  ;;  %v3571_v0 = vmul.f32 %v3555_v40, %v3555_v40  ;;  %v3573_v51 = vmul.f32 %v3557_v29, %v3557_v29  ;;  %v3575_v47 = vmul.f32 %v3559_v42, %v3559_v42 }
 0x249   : > { %v3590_v59 = vadd.f32 %v3589_v49, %v3565_v12 }
 0x24a   : > { %v3579_v18 = vadd.f32 %v3578_v20, %v3568_v10 }
 0x24b   : > { %v3591_v58 = vadd.f32 %v3590_v59, %v3567_v14 }
 0x24c   : > { %v3580_v31 = vadd.f32 %v3579_v18, %v3570_v52 }
 0x24d   : > { %v3592_v26 = vadd.f32 %v3591_v58, %v3569_v25 }
 0x24e   : > { %v3581_v54 = vadd.f32 %v3580_v31, %v3572_v11 }
 0x24f   : > { %v3593_v50 = vadd.f32 %v3592_v26, %v3571_v0 }
 0x250   : > { %v3582_v5 = vadd.f32 %v3581_v54, %v3574_v3 }
 0x251   : > { %v3594_v60 = vadd.f32 %v3593_v50, %v3573_v51 }
 0x252   : > { %v3583_v36 = vrot.slane %v3582_v5, 4 }
 0x253   : > { %v3595_v43 = vadd.f32 %v3594_v60, %v3575_v47 }
 0x254   : > { %v3584_v33 = vadd.f32 %v3583_v36, %v3582_v5 }
 0x255   : > { %v3596_v2 = vrot.slane %v3595_v43, 4 }
 0x256   : > { %v3585_v7 = vrot.slane %v3584_v33, 2 }
 0x257   : > { %v3597_v39 = vadd.f32 %v3596_v2, %v3595_v43 }
 0x258   : > { %v3586_v27 = vadd.f32 %v3585_v7, %v3584_v33 }
 0x259   : > { %v3598_v53 = vrot.slane %v3597_v39, 2 }
 0x25a   : > { %v3587_v41 = vrot.slane %v3586_v27, 1 }
 0x25b   : > { %v3599_v62 = vadd.f32 %v3598_v53, %v3597_v39 }
 0x25c   : > { %v3588_v1 = vadd.f32 %v3587_v41, %v3586_v27 }
 0x25d   : > { %v3600_v30 = vrot.slane %v3599_v62, 1 }
 0x25e   : > { %v3603_v37 = vsel %vm647_vm1, %v3528_v17, %v3588_v1 }
 0x25f   : > { %v3601_v46 = vadd.f32 %v3600_v30, %v3599_v62 }
 0x261   : > { %v3604_v38 = vsel %vm647_vm1, %v6483_v24, %v3601_v46 }
 0x262   : > { %v3607_v44 = vcombine.low %v3603_v37, %v3604_v38 }
 0x264   : > { %4385 = vst.sshfl [vmem:[%s415_s9] sm:$0x33 pattern:$0x76325410] %v3607_v44 }
 0x265 PF: > { %s16_s0 = sadd.s32 1, %s5057_s0   ;;  %s6522_s18 = smov %s5053_s19 }
 0x266   : > { %p13_p5 = scmp.ge.s32.totalorder %s16_s0, 4   ;;  %s6523_s19 = smov %s6525_s2 }
 0x268   :  { %15 = sbr.rel (!%p13_p5) target bundleno = 2 (0x2), region = 86 }

// kernel: residual_block.4
= control target key start
LH: loop header
LB: loop body
LE: loop exit
PB: predicated region body
PF: predicated region fallthrough
CT: control target
= control target key end

     0   :  { %s5194_s23 = smov 0   ;;  %s5196_s24 = smov 0   ;;  %s6655_s0 = inlined_call_operand.vmem [shape: bf16[2,8,8,256], index: 0, kind: input, shape index: {}, may-alias: {0,1,2}]   ;;  %s6656_s1 = inlined_call_operand.vmem [shape: bf16[2,8,8,256], index: 1, kind: input, shape index: {}, may-alias: {0,1,2}]   ;;  %s6657_s2 = inlined_call_operand.vmem [shape: bf16[2,8,8,256], index: 2, kind: input, shape index: {}, may-alias: {0,1,2}]   ;;  %s6658_s3 = inlined_call_operand.vmem [shape: bf16[3,768,256], index: 3, kind: input, shape index: {}]   ;;  %s6659_s4 = inlined_call_operand.vmem [shape: f32[1,1,1,256], index: 4, kind: input, shape index: {}]   ;;  %s6660_s5 = inlined_call_operand.vmem [shape: f32[1,1,1,256], index: 5, kind: input, shape index: {}]   ;;  %s6661_s6 = inlined_call_operand.vmem [shape: bf16[2,8,8,256], index: 6, kind: output, shape index: {0}]   ;;  %s6662_s7 = inlined_call_operand.vmem [shape: f32[2,1,2,256], index: 7, kind: output, shape index: {1}]  }
   0x1   :  { %s5198_s2 = smov 0  }
   0x2 LB: > { %s30_s25 = sadd.s32 1, %s5147_s24  ;;  %p3942_p0 = scmp.ge.s32.totalorder %s5151_s2, 1  ;;  %s5151_s2 = sphi %s5198_s2, %s18_s2   ;;  %s5147_s24 = sphi %s5196_s24, %s6668_s24   ;;  %s5143_s23 = sphi %s5194_s23, %s6667_s23  }
   0x3   : > { %p32_p1 = scmp.ge.s32.totalorder %s30_s25, 2  ;;  %p328_p2 = scmp.lt.s32.totalorder %s5151_s2, 3 }
   0x5   : > { %s6670_s25 = smov (%p32_p1, %s30_s25), 0  ;;  %p329_p3 = pnand %p3942_p0, %p328_p2 }
   0x6   : > { %v4697_v0 = vld [vmem:[%s6658_s3 + $0x304] ss:$8 sps:$4 sm:$0xff] (!%p329_p3)   ;;  %v4701_v2 = vld [vmem:[%s6658_s3 + $0x300] ss:$8 sps:$4 sm:$0xff] (!%p329_p3)   ;;  %v4703_v4 = vld [vmem:[%s6658_s3 + $0x314] ss:$8 sps:$4 sm:$0xff] (!%p329_p3)   ;;  %v476_v36 = vlaneseq (!%p329_p3) }
   0x7   : > { %332 = sbr.rel (%p329_p3) target bundleno = 620 (0x26c), region = 44  ;;  %v4699_v1 = vld [vmem:[%s6658_s3 + $0x104] ss:$8 sps:$4 sm:$0xff] (!%p329_p3)   ;;  %1778 = vmatprep.subr.bf16.mxu1 (!%p329_p3), %v4697_v0  ;;  %v4702_v3 = vld [vmem:[%s6658_s3 + $0x100] ss:$8 sps:$4 sm:$0xff] (!%p329_p3)   ;;  %p423_p4 = scmp.lt.s32.totalorder (!%p329_p3), %s5143_s23, 1 }
   0x8   : > { %2598 = vmatprep.subr.bf16.mxu0 (!%p329_p3), %v4699_v1  ;;  %1779 = vmatpush1.bf16.msra.mxu1 (!%p329_p3), %v4701_v2  ;;  %v4705_v5 = vld [vmem:[%s6658_s3 + $0x114] ss:$8 sps:$4 sm:$0xff] (!%p329_p3)   ;;  %v4707_v6 = vld [vmem:[%s6658_s3 + $0x310] ss:$8 sps:$4 sm:$0xff] (!%p329_p3)   ;;  %v4709_v8 = vld [vmem:[%s6658_s3 + $0x324] ss:$8 sps:$4 sm:$0xff] (!%p329_p3)  }
   0x9   : > { %2599 = vmatpush1.bf16.msra.mxu0 (!%p329_p3), %v4702_v3  ;;  %1780 = vmatprep.subr.bf16.mxu1 (!%p329_p3), %v4703_v4  ;;  %v4708_v7 = vld [vmem:[%s6658_s3 + $0x110] ss:$8 sps:$4 sm:$0xff] (!%p329_p3)   ;;  %v4711_v9 = vld [vmem:[%s6658_s3 + $0x124] ss:$8 sps:$4 sm:$0xff] (!%p329_p3)   ;;  %v4713_v10 = vld [vmem:[%s6658_s3 + $0x320] ss:$8 sps:$4 sm:$0xff] (!%p329_p3)  }
   0xa   : > { %2600 = vmatprep.subr.bf16.mxu0 (!%p329_p3), %v4705_v5  ;;  %v4714_v11 = vld [vmem:[%s6658_s3 + $0x120] ss:$8 sps:$4 sm:$0xff] (!%p329_p3)   ;;  %v4715_v12 = vld [vmem:[%s6658_s3 + $0x334] ss:$8 sps:$4 sm:$0xff] (!%p329_p3)   ;;  %v4719_v14 = vld [vmem:[%s6658_s3 + $0x330] ss:$8 sps:$4 sm:$0xff] (!%p329_p3)  }
   0xb   : > { %v4717_v13 = vld [vmem:[%s6658_s3 + $0x134] ss:$8 sps:$4 sm:$0xff] (!%p329_p3)   ;;  %v4720_v15 = vld [vmem:[%s6658_s3 + $0x130] ss:$8 sps:$4 sm:$0xff] (!%p329_p3)   ;;  %v4721_v16 = vld [vmem:[%s6658_s3 + $0x344] ss:$8 sps:$4 sm:$0xff] (!%p329_p3)  }
   0xc   : > { %1781 = vmatpush1.bf16.msra.mxu1 (!%p329_p3), %v4707_v6  ;;  %v4723_v17 = vld [vmem:[%s6658_s3 + $0x144] ss:$8 sps:$4 sm:$0xff] (!%p329_p3)   ;;  %v4725_v18 = vld [vmem:[%s6658_s3 + $0x340] ss:$8 sps:$4 sm:$0xff] (!%p329_p3)   ;;  %v4727_v20 = vld [vmem:[%s6658_s3 + $0x354] ss:$8 sps:$4 sm:$0xff] (!%p329_p3)  }
   0xd   : > { %2601 = vmatpush1.bf16.msra.mxu0 (!%p329_p3), %v4708_v7  ;;  %1782 = vmatprep.subr.bf16.mxu1 (!%p329_p3), %v4709_v8  ;;  %v4726_v19 = vld [vmem:[%s6658_s3 + $0x140] ss:$8 sps:$4 sm:$0xff] (!%p329_p3)   ;;  %v4729_v21 = vld [vmem:[%s6658_s3 + $0x154] ss:$8 sps:$4 sm:$0xff] (!%p329_p3)   ;;  %v4731_v22 = vld [vmem:[%s6658_s3 + $0x350] ss:$8 sps:$4 sm:$0xff] (!%p329_p3)  }
   0xe   : > { %2602 = vmatprep.subr.bf16.mxu0 %v4711_v9  ;;  %v4732_v23 = vld [vmem:[%s6658_s3 + $0x150] ss:$8 sps:$4 sm:$0xff]   ;;  %v4733_v24 = vld [vmem:[%s6658_s3 + $0x364] ss:$8 sps:$4 sm:$0xff]   ;;  %v4737_v26 = vld [vmem:[%s6658_s3 + $0x360] ss:$8 sps:$4 sm:$0xff]  }
   0xf   : > { %v4735_v25 = vld [vmem:[%s6658_s3 + $0x164] ss:$8 sps:$4 sm:$0xff]   ;;  %v4738_v27 = vld [vmem:[%s6658_s3 + $0x160] ss:$8 sps:$4 sm:$0xff]   ;;  %v4739_v28 = vld [vmem:[%s6658_s3 + $0x374] ss:$8 sps:$4 sm:$0xff]  }
  0x10   : > { %1783 = vmatpush1.bf16.msra.mxu1 %v4713_v10  ;;  %v4741_v29 = vld [vmem:[%s6658_s3 + $0x174] ss:$8 sps:$4 sm:$0xff]   ;;  %v4743_v30 = vld [vmem:[%s6658_s3 + $0x370] ss:$8 sps:$4 sm:$0xff]   ;;  %v4745_v32 = vld [vmem:[%s6658_s3 + $0x384] ss:$8 sps:$4 sm:$0xff]  }
  0x11   : > { %2603 = vmatpush1.bf16.msra.mxu0 %v4714_v11  ;;  %1784 = vmatprep.subr.bf16.mxu1 %v4715_v12  ;;  %v4744_v31 = vld [vmem:[%s6658_s3 + $0x170] ss:$8 sps:$4 sm:$0xff]   ;;  %v4747_v33 = vld [vmem:[%s6658_s3 + $0x184] ss:$8 sps:$4 sm:$0xff]   ;;  %v4749_v34 = vld [vmem:[%s6658_s3 + $0x380] ss:$8 sps:$4 sm:$0xff]  }
  0x12   : > { %2604 = vmatprep.subr.bf16.mxu0 %v4717_v13  ;;  %v4750_v35 = vld [vmem:[%s6658_s3 + $0x180] ss:$8 sps:$4 sm:$0xff]   ;;  %v4751_v37 = vld [vmem:[%s6658_s3 + $0x394] ss:$8 sps:$4 sm:$0xff]   ;;  %s6672_s23 = smov (!%p423_p4, %s5143_s23), 1  ;;  %v477_v40 = vshrl.u32 %v476_v36, 7 }
  0x13   : > { %v4753_v38 = vld [vmem:[%s6658_s3 + $0x194] ss:$8 sps:$4 sm:$0xff]   ;;  %v4755_v39 = vld [vmem:[%s6658_s3 + $0x390] ss:$8 sps:$4 sm:$0xff]   ;;  %v4757_v42 = vld [vmem:[%s6658_s3 + $0x3a4] ss:$8 sps:$4 sm:$0xff]  }
  0x14   : > { %1785 = vmatpush1.bf16.msra.mxu1 %v4719_v14  ;;  %v4756_v41 = vld [vmem:[%s6658_s3 + $0x190] ss:$8 sps:$4 sm:$0xff]   ;;  %v4759_v43 = vld [vmem:[%s6658_s3 + $0x1a4] ss:$8 sps:$4 sm:$0xff]   ;;  %s4499_s26 = sshll.u32 %s6672_s23, 6  ;;  %v478_v46 = vsub.s32 0, %v477_v40 }
  0x15   : > { %2605 = vmatpush1.bf16.msra.mxu0 %v4720_v15  ;;  %1786 = vmatprep.subr.bf16.mxu1 %v4721_v16  ;;  %v4761_v44 = vld [vmem:[%s6658_s3 + $0x3a0] ss:$8 sps:$4 sm:$0xff]   ;;  %v482_v47 = vsub.s32 1, %v477_v40  ;;  %v4763_v48 = vld [vmem:[%s6658_s3 + $0x3b4] ss:$8 sps:$4 sm:$0xff]   ;;  %s5359_s12 = scalar_lea.vmem %s6656_s1, %s4499_s26  ;;  %vm777_vm1 = vcmask 1040384   ;;  %s6581_s10 = scalar_lea.vmem %s6661_s6, %s4499_s26 }
  0x16   : > { %2606 = vmatprep.subr.bf16.mxu0 %v4723_v17  ;;  %v4762_v45 = vld [vmem:[%s6658_s3 + $0x1a0] ss:$8 sps:$4 sm:$0xff]   ;;  %v4765_v49 = vld [vmem:[%s6658_s3 + $0x1b4] ss:$8 sps:$4 sm:$0xff]   ;;  %v4767_v50 = vld [vmem:[%s6658_s3 + $0x3b0] ss:$8 sps:$4 sm:$0xff]  }
  0x17   : > { %v474_v51 = vld [vmem:[%s6659_s4] sm:$0x3]  ;;  %vm778_vm0 = vsmask.f32 256  ;;  %v507_v56 = vld [vmem:[%s5359_s12 + $0x8] sm:$0xff]  ;;  %v5153_v3 = vmov 0  }
  0x18   : > { %1787 = vmatpush1.bf16.msra.mxu1 %v4725_v18  ;;  %v5370_v52 = vrot.slane %v474_v51, %v478_v46  ;;  %v5372_v53 = vrot.slane %v474_v51, %v482_v47  ;;  %v488_v54 = vld [vmem:[%s6660_s5] sm:$0x3]  ;;  %v4768_v57 = vld [vmem:[%s6658_s3 + $0x1b0] ss:$8 sps:$4 sm:$0xff]   ;;  %v4769_v62 = vld [vmem:[%s6658_s3 + $0x3c4] ss:$8 sps:$4 sm:$0xff]   ;;  %v516_v0 = vunpack.c.l.bf16 %v507_v56  ;;  %v517_v1 = vunpack.c.h.bf16 %v507_v56 }
  0x19   : > { %2607 = vmatpush1.bf16.msra.mxu0 %v4726_v19  ;;  %1788 = vmatprep.subr.bf16.mxu1 %v4727_v20  ;;  %v506_v55 = vld [vmem:[%s5359_s12] sm:$0xff]  ;;  %v5382_v58 = vrot.slane %v488_v54, %v478_v46  ;;  %v5384_v59 = vrot.slane %v488_v54, %v482_v47  ;;  %v620_v4 = vrot.slane %v5153_v3, 7  ;;  %vm5397_vm2 = vmand %vm777_vm1, %vm778_vm0  ;;  %vm800_vm3 = vcmask 1044480   ;;  %v4775_v13 = vld [vmem:[%s6658_s3 + $0x3d4] ss:$8 sps:$4 sm:$0xff]   ;;  %s4503_s26 = sshll.u32 %s6672_s23, 2 }
  0x1a   : > { %2608 = vmatprep.subr.bf16.mxu0 %v4729_v21  ;;  %v514_v60 = vunpack.c.l.bf16 %v506_v55  ;;  %v515_v61 = vunpack.c.h.bf16 %v506_v55  ;;  %v4771_v63 = vld [vmem:[%s6658_s3 + $0x1c4] ss:$8 sps:$4 sm:$0xff]   ;;  %v533_v6 = vmul.f32 %v517_v1, %v5372_v53  ;;  %vm801_vm4 = vsmask.f32 4352  ;;  %v4773_v9 = vld [vmem:[%s6658_s3 + $0x3c0] ss:$8 sps:$4 sm:$0xff]   ;;  %s469_s14 = scalar_lea.vmem %s6662_s7, %s4503_s26 }
  0x1b   : > { %v532_v8 = vmul.f32 %v516_v0, %v5370_v52  ;;  %v4774_v10 = vld [vmem:[%s6658_s3 + $0x1c0] ss:$8 sps:$4 sm:$0xff]   ;;  %v4777_v14 = vld [vmem:[%s6658_s3 + $0x1d4] ss:$8 sps:$4 sm:$0xff]   ;;  %vm5420_vm5 = vmand %vm800_vm3, %vm801_vm4  ;;  %v780_v19 = vsel %vm5397_vm2, 0, %v620_v4 }
  0x1c   : > { %1789 = vmatpush1.bf16.msra.mxu1 %v4731_v22  ;;  %v531_v2 = vmul.f32 %v515_v61, %v5372_v53  ;;  %v530_v5 = vmul.f32 %v514_v60, %v5370_v52  ;;  %v549_v15 = vadd.f32 %v533_v6, %v5384_v59  ;;  %v4789_v46 = vld [vmem:[%s6658_s3 + $0x1f4] ss:$8 sps:$4 sm:$0xff]   ;;  %v4792_v54 = vld [vmem:[%s6658_s3 + $0x1f0] ss:$8 sps:$4 sm:$0xff]   ;;  %v4795_v60 = vld [vmem:[%s6658_s3 + $0x404] ss:$8 sps:$4 sm:$0xff]  }
  0x1d   : > { %2609 = vmatpush1.bf16.msra.mxu0 %v4732_v23  ;;  %1790 = vmatprep.subr.bf16.mxu1 %v4733_v24  ;;  %v548_v16 = vadd.f32 %v532_v8, %v5382_v58  ;;  %v4779_v23 = vld [vmem:[%s6658_s3 + $0x3d0] ss:$8 sps:$4 sm:$0xff]   ;;  %v4798_v8 = vld [vmem:[%s6658_s3 + $0x204] ss:$8 sps:$4 sm:$0xff]  }
  0x1e   : > { %2610 = vmatprep.subr.bf16.mxu0 %v4735_v25  ;;  %v547_v11 = vadd.f32 %v531_v2, %v5384_v59  ;;  %v546_v12 = vadd.f32 %v530_v5, %v5382_v58  ;;  %v565_v21 = vmax.f32 %v549_v15, 0.0  ;;  %v4780_v24 = vld [vmem:[%s6658_s3 + $0x1d0] ss:$8 sps:$4 sm:$0xff]  }
  0x1f   : > { %v564_v22 = vmax.f32 %v548_v16, 0.0 }
  0x20   : > { %1791 = vmatpush1.bf16.msra.mxu1 %v4737_v26  ;;  %v563_v17 = vmax.f32 %v547_v11, 0.0  ;;  %v562_v20 = vmax.f32 %v546_v12, 0.0 }
  0x21   : > { %2611 = vmatpush1.bf16.msra.mxu0 %v4738_v27  ;;  %1792 = vmatprep.subr.bf16.mxu1 %v4739_v28  ;;  %v4781_v27 = vld [vmem:[%s6658_s3 + $0x3e4] ss:$8 sps:$4 sm:$0xff]  }
  0x22   : > { %2612 = vmatprep.subr.bf16.mxu0 %v4741_v29  ;;  %v579_v25 = vpack.c.bf16 %v563_v17, %v563_v17  ;;  %v578_v26 = vpack.c.bf16 %v562_v20, %v562_v20  ;;  %v4783_v28 = vld [vmem:[%s6658_s3 + $0x1e4] ss:$8 sps:$4 sm:$0xff]   ;;  %v581_v29 = vpack.c.bf16 %v565_v21, %v565_v21 }
  0x24   : > { %1793 = vmatpush1.bf16.msra.mxu1 %v4743_v30  ;;  %v5440_v30 = vsel %vm5420_vm5, %v780_v19, 0  ;;  %v635_v36 = vshll.u32 %v578_v26, 16  ;;  %v4801_v19 = vld [vmem:[%s6658_s3 + $0x414] ss:$8 sps:$4 sm:$0xff]  }
  0x25   : > { %2613 = vmatpush1.bf16.msra.mxu0 %v4744_v31  ;;  %1794 = vmatprep.subr.bf16.mxu1 %v4745_v32  ;;  %v580_v31 = vpack.c.bf16 %v564_v22, %v564_v22  ;;  %v4785_v32 = vld [vmem:[%s6658_s3 + $0x3e0] ss:$8 sps:$4 sm:$0xff]   ;;  %v824_v61 = vshrl.u32 %v5440_v30, 16 }
  0x26   : > { %2614 = vmatprep.subr.bf16.mxu0 %v4747_v33  ;;  %v639_v33 = vshrl.u32 %v579_v25, 16 }
  0x27   : > { %v646_v40 = vshrl.u32 %v580_v31, 16 }
  0x28   : > { %1795 = vmatpush1.bf16.msra.mxu1 %v4749_v34  ;;  %v642_v34 = vshll.u32 %v579_v25, 16 }
  0x29   : > { %2615 = vmatpush1.bf16.msra.mxu0 %v4750_v35  ;;  %1796 = vmatprep.subr.bf16.mxu1 %v4751_v37  ;;  %v632_v35 = vshrl.u32 %v578_v26, 16  ;;  %v4786_v37 = vld [vmem:[%s6658_s3 + $0x1e0] ss:$8 sps:$4 sm:$0xff]   ;;  %v4804_v26 = vld [vmem:[%s6658_s3 + $0x214] ss:$8 sps:$4 sm:$0xff]  }
  0x2a   : > { %2616 = vmatprep.subr.bf16.mxu0 %v4753_v38  ;;  %v653_v38 = vshrl.u32 %v581_v29, 16 }
  0x2c   : > { %1797 = vmatpush1.bf16.msra.mxu1 %v4755_v39  ;;  %v656_v39 = vshll.u32 %v581_v29, 16  ;;  %v655_v47 = vrot.slane %v653_v38, 7  ;;  %v4805_v29 = vld [vmem:[%s6658_s3 + $0x420] ss:$8 sps:$4 sm:$0xff]   ;;  %v4811_v38 = vld [vmem:[%s6658_s3 + $0x430] ss:$8 sps:$4 sm:$0xff]  }
  0x2d   : > { %2617 = vmatpush1.bf16.msra.mxu0 %v4756_v41  ;;  %1798 = vmatprep.subr.bf16.mxu1 %v4757_v42  ;;  %v649_v41 = vshll.u32 %v580_v31, 16  ;;  %v641_v42 = vrot.slane %v639_v33, 7  ;;  %v4813_v33 = vld [vmem:[%s6658_s3 + $0x434] ss:$8 sps:$4 sm:$0xff]  }
  0x2e   : > { %2618 = vmatprep.subr.bf16.mxu0 %v4759_v43  ;;  %v826_v43 = vshll.u32 %v5440_v30, 16  ;;  %v658_v55 = vor.u32 %v656_v39, %v655_v47 }
  0x30   : > { %1799 = vmatpush1.bf16.msra.mxu1 %v4761_v44  ;;  %v634_v44 = vrot.slane %v632_v35, 7  ;;  %v785_v0 = vsel %vm5397_vm2, 0, %v658_v55  ;;  %v509_v35 = vld [vmem:[%s5359_s12 + $0x18] sm:$0xff] }
  0x31   : > { %2619 = vmatpush1.bf16.msra.mxu0 %v4762_v45  ;;  %1800 = vmatprep.subr.bf16.mxu1 %v4763_v48  ;;  %v4787_v45 = vld [vmem:[%s6658_s3 + $0x3f4] ss:$8 sps:$4 sm:$0xff]   ;;  %v648_v48 = vrot.slane %v646_v40, 7  ;;  %v5483_v4 = vsel %vm5420_vm5, %v785_v0, 0  ;;  %v521_v40 = vunpack.c.h.bf16 %v509_v35 }
  0x32   : > { %2620 = vmatprep.subr.bf16.mxu0 %v4765_v49  ;;  %v4791_v49 = vld [vmem:[%s6658_s3 + $0x3f0] ss:$8 sps:$4 sm:$0xff]   ;;  %v637_v51 = vor.u32 %v635_v36, %v634_v44  ;;  %v861_v31 = vshll.u32 %v5483_v4, 16  ;;  %v859_v44 = vshrl.u32 %v5483_v4, 16 }
  0x33   : > { %v651_v56 = vor.u32 %v649_v41, %v648_v48  ;;  %v537_v48 = vmul.f32 %v521_v40, %v5372_v53 }
  0x34   : > { %1801 = vmatpush1.bf16.msra.mxu1 %v4767_v50  ;;  %v644_v50 = vor.u32 %v642_v34, %v641_v42  ;;  %v508_v34 = vld [vmem:[%s5359_s12 + $0x10] sm:$0xff]  ;;  %v520_v42 = vunpack.c.l.bf16 %v509_v35 }
  0x35   : > { %2621 = vmatpush1.bf16.msra.mxu0 %v4768_v57  ;;  %1802 = vmatprep.subr.bf16.mxu1 %v4769_v62  ;;  %v828_v62 = vrot.slane %v826_v43, 1  ;;  %v784_v2 = vsel %vm5397_vm2, 0, %v651_v56  ;;  %v519_v39 = vunpack.c.h.bf16 %v508_v34  ;;  %v518_v41 = vunpack.c.l.bf16 %v508_v34  ;;  %v4816_v43 = vld [vmem:[%s6658_s3 + $0x234] ss:$8 sps:$4 sm:$0xff]   ;;  %v4817_v56 = vld [vmem:[%s6658_s3 + $0x440] ss:$8 sps:$4 sm:$0xff]  }
  0x36   : > { %2622 = vmatprep.subr.bf16.mxu0 %v4771_v63  ;;  %v783_v57 = vsel %vm5397_vm2, 0, %v644_v50  ;;  %v782_v63 = vsel %vm5397_vm2, 0, %v637_v51  ;;  %v4814_v50 = vld [vmem:[%s6658_s3 + $0x230] ss:$8 sps:$4 sm:$0xff]   ;;  %v536_v51 = vmul.f32 %v520_v42, %v5370_v52 }
  0x37   : > { %v5473_v1 = vsel %vm5420_vm5, %v783_v57, 0  ;;  %v5479_v3 = vsel %vm5420_vm5, %v782_v63, 0  ;;  %v5503_v15 = vor.u32 %v828_v62, %v824_v61  ;;  %v535_v47 = vmul.f32 %v519_v39, %v5372_v53  ;;  %v4822_v57 = vld [vmem:[%s6658_s3 + $0x244] ss:$8 sps:$4 sm:$0xff]   ;;  %v4826_v42 = vld [vmem:[%s6658_s3 + $0x250] ss:$8 sps:$4 sm:$0xff]  }
  0x38   : > { %1803 = vmatpush1.bf16.msra.mxu1 %v4773_v9  ;;  %v845_v5 = vshrl.u32 %v5473_v1, 16  ;;  %v847_v6 = vshll.u32 %v5473_v1, 16  ;;  %v5492_v9 = vsel %vm5420_vm5, %v784_v2, 0  ;;  %v838_v12 = vshrl.u32 %v5479_v3, 16  ;;  %v510_v2 = vld [vmem:[%s5359_s12 + $0x20] sm:$0xff] }
  0x39   : > { %2623 = vmatpush1.bf16.msra.mxu0 %v4774_v10  ;;  %1804 = vmatprep.subr.bf16.mxu1 %v4775_v13  ;;  %v4050_v10 = vcombine.low %v5473_v1, %v5483_v4  ;;  %v4049_v11 = vcombine.low %v5479_v3, %v5492_v9  ;;  %v840_v13 = vshll.u32 %v5479_v3, 16  ;;  %v854_v36 = vshll.u32 %v5492_v9, 16 }
  0x3a   : > { %2624 = vmatprep.subr.bf16.mxu0 %v4777_v14  ;;  %v4793_v14 = vld [vmem:[%s6658_s3 + $0x400] ss:$8 sps:$4 sm:$0xff]   ;;  %v849_v16 = vrot.slane %v847_v6, 1  ;;  %v553_v61 = vadd.f32 %v537_v48, %v5384_v59  ;;  %v552_v0 = vadd.f32 %v536_v51, %v5382_v58  ;;  %v4825_v6 = vld [vmem:[%s6658_s3 + $0x454] ss:$8 sps:$4 sm:$0xff]  }
  0x3b   : > { %1810 = vmatprep.mubr.bf16.mxu1 %v4050_v10  ;;  %v842_v17 = vrot.slane %v840_v13, 1  ;;  %v856_v55 = vrot.slane %v854_v36, 1  ;;  %v4834_v48 = vld [vmem:[%s6658_s3 + $0x264] ss:$8 sps:$4 sm:$0xff]  }
  0x3c   : > { %1805 = vmatpush1.bf16.msra.mxu1 %v4779_v23  ;;  %v5508_v20 = vor.u32 %v849_v16, %v845_v5  ;;  %v4796_v23 = vld [vmem:[%s6658_s3 + $0x200] ss:$8 sps:$4 sm:$0xff]   ;;  %v569_v10 = vmax.f32 %v553_v61, 0.0  ;;  %v568_v13 = vmax.f32 %v552_v0, 0.0 }
  0x3d   : > { %2625 = vmatpush1.bf16.msra.mxu0 %v4780_v24  ;;  %1806 = vmatprep.subr.bf16.mxu1 %v4781_v27  ;;  %v5510_v21 = vor.u32 %v842_v17, %v838_v12  ;;  %v4799_v24 = vld [vmem:[%s6658_s3 + $0x410] ss:$8 sps:$4 sm:$0xff]   ;;  %v4807_v27 = vld [vmem:[%s6658_s3 + $0x424] ss:$8 sps:$4 sm:$0xff]   ;;  %v523_v12 = vunpack.c.h.bf16 %v510_v2  ;;  %v522_v17 = vunpack.c.l.bf16 %v510_v2 }
  0x3e   : > { %2626 = vmatprep.subr.bf16.mxu0 %v4783_v28  ;;  %v4172_v22 = vcombine.low %v5503_v15, %v5508_v20  ;;  %v4802_v28 = vld [vmem:[%s6658_s3 + $0x210] ss:$8 sps:$4 sm:$0xff]   ;;  %v511_v5 = vld [vmem:[%s5359_s12 + $0x28] sm:$0xff] }
  0x3f   : > { %v4171_v25 = vcombine.low %v5503_v15, %v5510_v21  ;;  %v525_v16 = vunpack.c.h.bf16 %v511_v5 }
  0x40   : > { %1807 = vmatpush1.bf16.msra.mxu1 %v4785_v32  ;;  %2630 = vmatprep.mubr.bf16.mxu0 %v4172_v22  ;;  %v4810_v32 = vld [vmem:[%s6658_s3 + $0x224] ss:$8 sps:$4 sm:$0xff]   ;;  %v4823_v22 = vld [vmem:[%s6658_s3 + $0x450] ss:$8 sps:$4 sm:$0xff]  }
  0x41   : > { %2627 = vmatpush1.bf16.msra.mxu0 %v4786_v37  ;;  %1808 = vmatprep.subr.bf16.mxu1 %v4787_v45  ;;  %v4808_v37 = vld [vmem:[%s6658_s3 + $0x220] ss:$8 sps:$4 sm:$0xff]   ;;  %v863_v45 = vrot.slane %v861_v31, 1  ;;  %v541_v31 = vmul.f32 %v525_v16, %v5372_v53  ;;  %v4840_v16 = vld [vmem:[%s6658_s3 + $0x274] ss:$8 sps:$4 sm:$0xff]  }
  0x42   : > { %2628 = vmatprep.subr.bf16.mxu0 %v4789_v46  ;;  %v4819_v46 = vld [vmem:[%s6658_s3 + $0x444] ss:$8 sps:$4 sm:$0xff]  }
  0x43   : > { %v5574_v63 = vor.u32 %v863_v45, %v859_v44 }
  0x44   : > { %1809 = vmatpush1.bf16.msra.mxu1 %v4791_v49  ;;  %v534_v49 = vmul.f32 %v518_v41, %v5370_v52 }
  0x45   : > { %2629 = vmatpush1.bf16.msra.mxu0 %v4792_v54  ;;  %1851 = vmatprep.subr.bf16.mxu1 %v4795_v60  ;;  %v852_v54 = vshrl.u32 %v5492_v9, 16  ;;  %v551_v60 = vadd.f32 %v535_v47, %v5384_v59  ;;  %v557_v47 = vadd.f32 %v541_v31, %v5384_v59  ;;  %v4841_v31 = vld [vmem:[%s6658_s3 + $0x480] ss:$8 sps:$4 sm:$0xff]  }
  0x46   : > { %2671 = vmatprep.subr.bf16.mxu0 %v4798_v8  ;;  %v550_v62 = vadd.f32 %v534_v49, %v5382_v58 }
  0x47   : > { %1811 = vmatmul.mubr.bf16.vlgmr.msra.gmra.mrb[0].mxu1 %v4049_v11  ;;  %v567_v8 = vmax.f32 %v551_v60, 0.0  ;;  %v573_v61 = vmax.f32 %v557_v47, 0.0 }
  0x48   : > { %1852 = vmatpush1.bf16.msra.mxu1 %v4793_v14  ;;  %2631 = vmatmul.mubr.bf16.vlgmr.msra.gmra.mrb[0].mxu0 %v4171_v25  ;;  %v566_v11 = vmax.f32 %v550_v62, 0.0  ;;  %v5582_v14 = vor.u32 %v856_v55, %v852_v54  ;;  %v4837_v55 = vld [vmem:[%s6658_s3 + $0x474] ss:$8 sps:$4 sm:$0xff]   ;;  %v4832_v62 = vld [vmem:[%s6658_s3 + $0x260] ss:$8 sps:$4 sm:$0xff]  }
  0x49   : > { %1853 = vmatprep.subr.bf16.mxu1 %v4801_v19  ;;  %2672 = vmatpush1.bf16.msra.mxu0 %v4796_v23  ;;  %v4820_v19 = vld [vmem:[%s6658_s3 + $0x240] ss:$8 sps:$4 sm:$0xff]   ;;  %v583_v23 = vpack.c.bf16 %v567_v8, %v567_v8  ;;  %v4835_v8 = vld [vmem:[%s6658_s3 + $0x470] ss:$8 sps:$4 sm:$0xff]  }
  0x4a   : > { %2673 = vmatprep.subr.bf16.mxu0 %v4804_v26  ;;  %v582_v25 = vpack.c.bf16 %v566_v11, %v566_v11  ;;  %v539_v26 = vmul.f32 %v523_v12, %v5372_v53 }
  0x4b   : > { %v667_v34 = vshrl.u32 %v583_v23, 16  ;;  %v670_v35 = vshll.u32 %v583_v23, 16 }
  0x4c   : > { %1854 = vmatpush1.bf16.msra.mxu1 %v4799_v24  ;;  %v585_v24 = vpack.c.bf16 %v569_v10, %v569_v10  ;;  %v663_v39 = vshll.u32 %v582_v25, 16 }
  0x4d   : > { %1855 = vmatprep.subr.bf16.mxu1 %v4807_v27  ;;  %2674 = vmatpush1.bf16.msra.mxu0 %v4802_v28  ;;  %v4828_v27 = vld [vmem:[%s6658_s3 + $0x254] ss:$8 sps:$4 sm:$0xff]   ;;  %v4831_v28 = vld [vmem:[%s6658_s3 + $0x464] ss:$8 sps:$4 sm:$0xff]   ;;  %v669_v44 = vrot.slane %v667_v34, 7 }
  0x4e   : > { %2675 = vmatprep.subr.bf16.mxu0 %v4810_v32  ;;  %v524_v32 = vunpack.c.l.bf16 %v511_v5  ;;  %v681_v36 = vshrl.u32 %v585_v24, 16 }
  0x50   : > { %1856 = vmatpush1.bf16.msra.mxu1 %v4805_v29  ;;  %v584_v29 = vpack.c.bf16 %v568_v13, %v568_v13  ;;  %v683_v45 = vrot.slane %v681_v36, 7  ;;  %v540_v51 = vmul.f32 %v524_v32, %v5370_v52  ;;  %v589_v13 = vpack.c.bf16 %v573_v61, %v573_v61 }
  0x51   : > { %1857 = vmatprep.subr.bf16.mxu1 %v4813_v33  ;;  %2676 = vmatpush1.bf16.msra.mxu0 %v4808_v37  ;;  %v538_v33 = vmul.f32 %v522_v17, %v5370_v52  ;;  %v684_v37 = vshll.u32 %v585_v24, 16  ;;  %v4843_v24 = vld [vmem:[%s6658_s3 + $0x484] ss:$8 sps:$4 sm:$0xff]  }
  0x52   : > { %2677 = vmatprep.subr.bf16.mxu0 %v4816_v43  ;;  %v674_v40 = vshrl.u32 %v584_v29, 16  ;;  %v677_v41 = vshll.u32 %v584_v29, 16  ;;  %v4829_v43 = vld [vmem:[%s6658_s3 + $0x460] ss:$8 sps:$4 sm:$0xff]   ;;  %v556_v5 = vadd.f32 %v540_v51, %v5382_v58  ;;  %v4838_v29 = vld [vmem:[%s6658_s3 + $0x270] ss:$8 sps:$4 sm:$0xff]  }
  0x53   : > { %v5612_v54 = vadd.f32 %v538_v33, %v5382_v58  ;;  %v4847_v51 = vld [vmem:[%s6658_s3 + $0x490] ss:$8 sps:$4 sm:$0xff]  }
  0x54   : > { %1858 = vmatpush1.bf16.msra.mxu1 %v4811_v38  ;;  %v660_v38 = vshrl.u32 %v582_v25, 16 }
  0x55   : > { %1859 = vmatprep.subr.bf16.mxu1 %v4819_v46  ;;  %2678 = vmatpush1.bf16.msra.mxu0 %v4814_v50  ;;  %v555_v46 = vadd.f32 %v539_v26, %v5384_v59  ;;  %v676_v50 = vrot.slane %v674_v40, 7  ;;  %v4846_v40 = vld [vmem:[%s6658_s3 + $0x284] ss:$8 sps:$4 sm:$0xff]  }
  0x56   : > { %2679 = vmatprep.subr.bf16.mxu0 %v4822_v57  ;;  %v662_v49 = vrot.slane %v660_v38, 7  ;;  %v686_v57 = vor.u32 %v684_v37, %v683_v45  ;;  %v4849_v45 = vld [vmem:[%s6658_s3 + $0x494] ss:$8 sps:$4 sm:$0xff]  }
  0x57   : > { %v571_v60 = vmax.f32 %v555_v46, 0.0  ;;  %v679_v2 = vor.u32 %v677_v41, %v676_v50  ;;  %v4844_v50 = vld [vmem:[%s6658_s3 + $0x280] ss:$8 sps:$4 sm:$0xff]  }
  0x58   : > { %1860 = vmatpush1.bf16.msra.mxu1 %v4817_v56  ;;  %v672_v56 = vor.u32 %v670_v35, %v669_v44  ;;  %v665_v0 = vor.u32 %v663_v39, %v662_v49  ;;  %v789_v11 = vsel %vm5397_vm2, 0, %v686_v57  ;;  %v709_v39 = vshrl.u32 %v589_v13, 16  ;;  %v4852_v57 = vld [vmem:[%s6658_s3 + $0x294] ss:$8 sps:$4 sm:$0xff]  }
  0x59   : > { %1861 = vmatprep.subr.bf16.mxu1 %v4825_v6  ;;  %2680 = vmatpush1.bf16.msra.mxu0 %v4820_v19  ;;  %v570_v6 = vmax.f32 %v5612_v54, 0.0  ;;  %v587_v12 = vpack.c.bf16 %v571_v60, %v571_v60  ;;  %v5638_v19 = vsel %vm5420_vm5, %v789_v11, 0  ;;  %v788_v23 = vsel %vm5397_vm2, 0, %v679_v2  ;;  %v4855_v60 = vld [vmem:[%s6658_s3 + $0x4a4] ss:$8 sps:$4 sm:$0xff]  }
  0x5a   : > { %2681 = vmatprep.subr.bf16.mxu0 %v4828_v27  ;;  %v787_v10 = vsel %vm5397_vm2, 0, %v672_v56  ;;  %v5663_v32 = vsel %vm5420_vm5, %v788_v23, 0  ;;  %v887_v44 = vshrl.u32 %v5638_v19, 16  ;;  %v711_v47 = vrot.slane %v709_v39, 7  ;;  %v5713_v23 = vld [vmem:[%s5359_s12 + $0x38] sm:$0xff] }
  0x5b   : > { %v5634_v17 = vsel %vm5420_vm5, %v787_v10, 0  ;;  %v695_v35 = vshrl.u32 %v587_v12, 16  ;;  %v698_v38 = vshll.u32 %v587_v12, 16  ;;  %v572_v49 = vmax.f32 %v556_v5, 0.0 }
  0x5c   : > { %1862 = vmatpush1.bf16.msra.mxu1 %v4823_v22  ;;  %v786_v22 = vsel %vm5397_vm2, 0, %v665_v0  ;;  %v4056_v25 = vcombine.low %v5634_v17, %v5638_v19  ;;  %v873_v26 = vshrl.u32 %v5634_v17, 16  ;;  %v875_v27 = vshll.u32 %v5634_v17, 16 }
  0x5d   : > { %1863 = vmatprep.subr.bf16.mxu1 %v4831_v28  ;;  %2682 = vmatpush1.bf16.msra.mxu0 %v4826_v42  ;;  %v5653_v28 = vsel %vm5420_vm5, %v786_v22, 0  ;;  %v697_v42 = vrot.slane %v695_v35, 7  ;;  %v586_v56 = vpack.c.bf16 %v570_v6, %v570_v6  ;;  %v588_v2 = vpack.c.bf16 %v572_v49, %v572_v49  ;;  %v512_v22 = vld [vmem:[%s5359_s12 + $0x30] sm:$0xff] }
  0x5e   : > { %2683 = vmatprep.subr.bf16.mxu0 %v4834_v48  ;;  %v866_v33 = vshrl.u32 %v5653_v28, 16  ;;  %v868_v34 = vshll.u32 %v5653_v28, 16  ;;  %1820 = vmatprep.mubr.bf16.mxu1 %v4056_v25  ;;  %v877_v36 = vrot.slane %v875_v27, 1  ;;  %v4055_v37 = vcombine.low %v5653_v28, %v5663_v32 }
  0x5f   : > { %v889_v48 = vshll.u32 %v5638_v19, 16  ;;  %v691_v10 = vshll.u32 %v586_v56, 16  ;;  %v882_v35 = vshll.u32 %v5663_v32, 16 }
  0x60   : > { %1864 = vmatpush1.bf16.msra.mxu1 %v4829_v43  ;;  %v870_v41 = vrot.slane %v868_v34, 1  ;;  %v712_v43 = vshll.u32 %v589_v13, 16  ;;  %v5676_v46 = vor.u32 %v877_v36, %v873_v26  ;;  %v705_v34 = vshll.u32 %v588_v2, 16  ;;  %v4853_v36 = vld [vmem:[%s6658_s3 + $0x4a0] ss:$8 sps:$4 sm:$0xff]  }
  0x61   : > { %1865 = vmatprep.subr.bf16.mxu1 %v4837_v55  ;;  %2684 = vmatpush1.bf16.msra.mxu0 %v4832_v62  ;;  %v700_v55 = vor.u32 %v698_v38, %v697_v42  ;;  %v891_v0 = vrot.slane %v889_v48, 1  ;;  %v4861_v42 = vld [vmem:[%s6658_s3 + $0x4b4] ss:$8 sps:$4 sm:$0xff]  }
  0x62   : > { %2685 = vmatprep.subr.bf16.mxu0 %v4840_v16  ;;  %1821 = vmatmul.mubr.bf16.gmra.mrb[4].mxu1 %v4055_v37  ;;  %v5685_v54 = vor.u32 %v870_v41, %v866_v33  ;;  %v5695_v61 = vcombine.low %v5574_v63, %v5676_v46  ;;  %v714_v62 = vor.u32 %v712_v43, %v711_v47  ;;  %v702_v16 = vshrl.u32 %v588_v2, 16  ;;  %v4858_v37 = vld [vmem:[%s6658_s3 + $0x2a4] ss:$8 sps:$4 sm:$0xff]   ;;  %v4856_v47 = vld [vmem:[%s6658_s3 + $0x2a0] ss:$8 sps:$4 sm:$0xff]  }
  0x63   : > { %v791_v6 = vsel %vm5397_vm2, 0, %v700_v55  ;;  %v5709_v13 = vor.u32 %v891_v0, %v887_v44  ;;  %v529_v41 = vunpack.c.h.bf16 %v5713_v23  ;;  %v880_v44 = vshrl.u32 %v5663_v32, 16  ;;  %v4864_v2 = vld [vmem:[%s6658_s3 + $0x2b4] ss:$8 sps:$4 sm:$0xff]  }
  0x64   : > { %1866 = vmatpush1.bf16.msra.mxu1 %v4835_v8  ;;  %v5699_v5 = vcombine.low %v5582_v14, %v5685_v54  ;;  %v688_v8 = vshrl.u32 %v586_v56, 16  ;;  %v793_v11 = vsel %vm5397_vm2, 0, %v714_v62  ;;  %v5707_v12 = vsel %vm5420_vm5, %v791_v6, 0  ;;  %2640 = vmatprep.mubr.bf16.mxu0 %v5695_v61  ;;  %v4867_v6 = vld [vmem:[%s6658_s3 + $0x4c4] ss:$8 sps:$4 sm:$0xff]  }
  0x65   : > { %1867 = vmatprep.subr.bf16.mxu1 %v4843_v24  ;;  %2686 = vmatpush1.bf16.msra.mxu0 %v4838_v29  ;;  %v5718_v24 = vsel %vm5420_vm5, %v793_v11, 0  ;;  %v901_v25 = vshrl.u32 %v5707_v12, 16  ;;  %v903_v26 = vshll.u32 %v5707_v12, 16  ;;  %v4850_v29 = vld [vmem:[%s6658_s3 + $0x290] ss:$8 sps:$4 sm:$0xff]   ;;  %v704_v33 = vrot.slane %v702_v16, 7 }
  0x66   : > { %2687 = vmatprep.subr.bf16.mxu0 %v4846_v40  ;;  %v690_v27 = vrot.slane %v688_v8, 7  ;;  %2641 = vmatmul.mubr.bf16.gmra.mrb[4].mxu0 %v5699_v5  ;;  %v527_v40 = vunpack.c.h.bf16 %v512_v22  ;;  %v526_v16 = vunpack.c.l.bf16 %v512_v22 }
  0x67   : > { %v905_v38 = vrot.slane %v903_v26, 1  ;;  %v707_v43 = vor.u32 %v705_v34, %v704_v33  ;;  %v4862_v34 = vld [vmem:[%s6658_s3 + $0x2b0] ss:$8 sps:$4 sm:$0xff]  }
  0x68   : > { %1868 = vmatpush1.bf16.msra.mxu1 %v4841_v31  ;;  %v4062_v31 = vcombine.low %v5707_v12, %v5718_v24  ;;  %v693_v39 = vor.u32 %v691_v10, %v690_v27  ;;  %v528_v27 = vunpack.c.l.bf16 %v5713_v23  ;;  %v542_v33 = vmul.f32 %v526_v16, %v5370_v52  ;;  %v4870_v23 = vld [vmem:[%s6658_s3 + $0x2c4] ss:$8 sps:$4 sm:$0xff]  }
  0x69   : > { %1869 = vmatprep.subr.bf16.mxu1 %v4849_v45  ;;  %2688 = vmatpush1.bf16.msra.mxu0 %v4844_v50  ;;  %v884_v45 = vrot.slane %v882_v35, 1  ;;  %v5743_v48 = vor.u32 %v905_v38, %v901_v25  ;;  %v543_v50 = vmul.f32 %v527_v40, %v5372_v53  ;;  %v792_v55 = vsel %vm5397_vm2, 0, %v707_v43 }
  0x6a   : > { %2689 = vmatprep.subr.bf16.mxu0 %v4852_v57  ;;  %1830 = vmatprep.mubr.bf16.mxu1 %v4062_v31  ;;  %v790_v49 = vsel %vm5397_vm2, 0, %v693_v39  ;;  %v4859_v57 = vld [vmem:[%s6658_s3 + $0x4b0] ss:$8 sps:$4 sm:$0xff]   ;;  %v544_v35 = vmul.f32 %v528_v27, %v5370_v52  ;;  %v558_v38 = vadd.f32 %v542_v33, %v5382_v58  ;;  %v4868_v39 = vld [vmem:[%s6658_s3 + $0x2c0] ss:$8 sps:$4 sm:$0xff]   ;;  %v915_v27 = vshrl.u32 %v5718_v24, 16 }
  0x6b   : > { %v5753_v56 = vsel %vm5420_vm5, %v790_v49, 0  ;;  %v559_v10 = vadd.f32 %v543_v50, %v5384_v59  ;;  %v5779_v25 = vor.u32 %v884_v45, %v880_v44  ;;  %v4873_v52 = vld [vmem:[%s6658_s3 + $0x4d4] ss:$8 sps:$4 sm:$0xff]   ;;  %v917_v49 = vshll.u32 %v5718_v24, 16 }
  0x6c   : > { %1870 = vmatpush1.bf16.msra.mxu1 %v4847_v51  ;;  %v545_v51 = vmul.f32 %v529_v41, %v5372_v53  ;;  %v5764_v53 = vsel %vm5420_vm5, %v792_v55, 0  ;;  %v894_v62 = vshrl.u32 %v5753_v56, 16  ;;  %v896_v0 = vshll.u32 %v5753_v56, 16 }
  0x6d   : > { %1871 = vmatprep.subr.bf16.mxu1 %v4855_v60  ;;  %2690 = vmatpush1.bf16.msra.mxu0 %v4850_v29  ;;  %v5760_v60 = vcombine.low %v5709_v13, %v5743_v48  ;;  %v4061_v8 = vcombine.low %v5753_v56, %v5764_v53  ;;  %v575_v29 = vmax.f32 %v559_v10, 0.0  ;;  %v560_v41 = vadd.f32 %v544_v35, %v5382_v58  ;;  %v4876_v58 = vld [vmem:[%s6658_s3 + $0x2d4] ss:$8 sps:$4 sm:$0xff]  }
  0x6e   : > { %2691 = vmatprep.subr.bf16.mxu0 %v4858_v37  ;;  %v561_v11 = vadd.f32 %v545_v51, %v5384_v59  ;;  %v898_v26 = vrot.slane %v896_v0, 1  ;;  %v4865_v59 = vld [vmem:[%s6658_s3 + $0x4c0] ss:$8 sps:$4 sm:$0xff]   ;;  %v574_v50 = vmax.f32 %v558_v38, 0.0  ;;  %v5820_v0 = vcombine.low %v5483_v4, %v5634_v17 }
  0x6f   : > { %2650 = vmatprep.mubr.bf16.mxu0 %v5760_v60  ;;  %1831 = vmatmul.mubr.bf16.gmra.mrb[8].mxu1 %v4061_v8  ;;  %v576_v51 = vmax.f32 %v560_v41, 0.0 }
  0x70   : > { %1872 = vmatpush1.bf16.msra.mxu1 %v4853_v36  ;;  %v577_v31 = vmax.f32 %v561_v11, 0.0  ;;  %v5789_v22 = vor.u32 %v898_v26, %v894_v62  ;;  %v591_v36 = vpack.c.bf16 %v575_v29, %v575_v29  ;;  %v4879_v62 = vld [vmem:[%s6658_s3 + $0x4e4] ss:$8 sps:$4 sm:$0xff]   ;;  %v590_v8 = vpack.c.bf16 %v574_v50, %v574_v50  ;;  %v4877_v26 = vld [vmem:[%s6658_s3 + $0x4e0] ss:$8 sps:$4 sm:$0xff]  }
  0x71   : > { %1873 = vmatprep.subr.bf16.mxu1 %v4861_v42  ;;  %2692 = vmatpush1.bf16.msra.mxu0 %v4856_v47  ;;  %v4871_v42 = vld [vmem:[%s6658_s3 + $0x4d0] ss:$8 sps:$4 sm:$0xff]   ;;  %v592_v10 = vpack.c.bf16 %v576_v51, %v576_v51  ;;  %v4882_v29 = vld [vmem:[%s6658_s3 + $0x2e4] ss:$8 sps:$4 sm:$0xff]  }
  0x72   : > { %2693 = vmatprep.subr.bf16.mxu0 %v4864_v2  ;;  %v593_v37 = vpack.c.bf16 %v577_v31, %v577_v31  ;;  %v5801_v40 = vcombine.low %v5779_v25, %v5789_v22  ;;  %v723_v43 = vshrl.u32 %v591_v36, 16  ;;  %v726_v44 = vshll.u32 %v591_v36, 16  ;;  %v4883_v51 = vld [vmem:[%s6658_s3 + $0x4f0] ss:$8 sps:$4 sm:$0xff]  }
  0x73   : > { %v5824_v2 = vcombine.low %v5492_v9, %v5653_v28  ;;  %v716_v31 = vshrl.u32 %v590_v8, 16  ;;  %v719_v33 = vshll.u32 %v590_v8, 16  ;;  %v919_v36 = vrot.slane %v917_v49, 1 }
  0x74   : > { %1874 = vmatpush1.bf16.msra.mxu1 %v4859_v57  ;;  %v737_v45 = vshrl.u32 %v593_v37, 16  ;;  %v740_v47 = vshll.u32 %v593_v37, 16  ;;  %2651 = vmatmul.mubr.bf16.gmra.mrb[8].mxu0 %v5801_v40  ;;  %v725_v55 = vrot.slane %v723_v43, 7  ;;  %v910_v37 = vshll.u32 %v5764_v53, 16 }
  0x75   : > { %1875 = vmatprep.subr.bf16.mxu1 %v4867_v6  ;;  %2694 = vmatpush1.bf16.msra.mxu0 %v4862_v34  ;;  %v4874_v6 = vld [vmem:[%s6658_s3 + $0x2d0] ss:$8 sps:$4 sm:$0xff]   ;;  %v730_v34 = vshrl.u32 %v592_v10, 16  ;;  %v5876_v8 = vcombine.low %v5663_v32, %v5753_v56 }
  0x76   : > { %2695 = vmatprep.subr.bf16.mxu0 %v4870_v23  ;;  %v739_v57 = vrot.slane %v737_v45, 7  ;;  %v728_v11 = vor.u32 %v726_v44, %v725_v55  ;;  %v5866_v55 = vor.u32 %v919_v36, %v915_v27  ;;  %v912_v27 = vrot.slane %v910_v37, 1  ;;  %v4894_v37 = vld [vmem:[%s6658_s3 + $0x604] ss:$8 sps:$4 sm:$0xff]  }
  0x77   : > { %v732_v41 = vrot.slane %v730_v34, 7  ;;  %v4052_v34 = vcombine.low %v5508_v20, %v5574_v63  ;;  %v5915_v63 = vrot.slane %v5440_v30, 1  ;;  %v986_v36 = vrot.slane %v5473_v1, 1 }
  0x78   : > { %1876 = vmatpush1.bf16.msra.mxu1 %v4865_v59  ;;  %v742_v16 = vor.u32 %v740_v47, %v739_v57  ;;  %v733_v59 = vshll.u32 %v592_v10, 16  ;;  %v795_v35 = vsel %vm5397_vm2, 0, %v728_v11  ;;  %v4880_v47 = vld [vmem:[%s6658_s3 + $0x2e0] ss:$8 sps:$4 sm:$0xff]  }
  0x79   : > { %1877 = vmatprep.subr.bf16.mxu1 %v4873_v52  ;;  %2696 = vmatpush1.bf16.msra.mxu0 %v4868_v39  ;;  %v5843_v38 = vsel %vm5420_vm5, %v795_v35, 0  ;;  %v718_v52 = vrot.slane %v716_v31, 7 }
  0x7a   : > { %2697 = vmatprep.subr.bf16.mxu0 %v4876_v58  ;;  %v797_v23 = vsel %vm5397_vm2, 0, %v742_v16  ;;  %v929_v44 = vshrl.u32 %v5843_v38, 16  ;;  %v931_v45 = vshll.u32 %v5843_v38, 16  ;;  %v735_v50 = vor.u32 %v733_v59, %v732_v41 }
  0x7b   : > { %v5847_v39 = vsel %vm5420_vm5, %v797_v23, 0  ;;  %v721_v49 = vor.u32 %v719_v33, %v718_v52  ;;  %v5864_v58 = vcombine.low %v5638_v19, %v5707_v12  ;;  %v5880_v10 = vcombine.low %v5718_v24, %v5843_v38  ;;  %v4886_v23 = vld [vmem:[%s6658_s3 + $0x2f0] ss:$8 sps:$4 sm:$0xff]  }
  0x7c   : > { %1878 = vmatpush1.bf16.msra.mxu1 %v4871_v42  ;;  %v4885_v42 = vld [vmem:[%s6658_s3 + $0x4f4] ss:$8 sps:$4 sm:$0xff]   ;;  %v4068_v43 = vcombine.low %v5843_v38, %v5847_v39  ;;  %v933_v57 = vrot.slane %v931_v45, 1  ;;  %v796_v16 = vsel %vm5397_vm2, 0, %v735_v50  ;;  %v985_v50 = vrot.slane %v5479_v3, 1 }
  0x7d   : > { %1879 = vmatprep.subr.bf16.mxu1 %v4879_v62  ;;  %2698 = vmatpush1.bf16.msra.mxu0 %v4874_v6  ;;  %v4888_v62 = vld [vmem:[%s6658_s3 + $0x2f4] ss:$8 sps:$4 sm:$0xff]   ;;  %v4891_v6 = vld [vmem:[%s6658_s3 + $0x504] ss:$8 sps:$4 sm:$0xff]   ;;  %v794_v11 = vsel %vm5397_vm2, 0, %v721_v49  ;;  %v5895_v33 = vsel %vm5420_vm5, %v796_v16, 0  ;;  %v4058_v49 = vcombine.low %v5676_v46, %v5709_v13 }
  0x7e   : > { %1840 = vmatprep.mubr.bf16.mxu1 %v4068_v43  ;;  %2699 = vmatprep.subr.bf16.mxu0 %v4882_v29  ;;  %v5887_v29 = vor.u32 %v933_v57, %v929_v44  ;;  %v5891_v31 = vsel %vm5420_vm5, %v794_v11, 0  ;;  %v4174_v43 = vcombine.low %v5915_v63, %v986_v36  ;;  %v4051_v44 = vcombine.low %v5510_v21, %v5582_v14  ;;  %v4895_v57 = vld [vmem:[%s6658_s3 + $0x510] ss:$8 sps:$4 sm:$0xff]   ;;  %v4900_v16 = vld [vmem:[%s6658_s3 + $0x614] ss:$8 sps:$4 sm:$0xff]  }
  0x7f   : > { %v4067_v7 = vcombine.low %v5891_v31, %v5895_v33  ;;  %v922_v59 = vshrl.u32 %v5891_v31, 16  ;;  %v924_v35 = vshll.u32 %v5891_v31, 16  ;;  %v5908_v18 = vcombine.low %v5764_v53, %v5891_v31 }
  0x80   : > { %1880 = vmatpush1.bf16.msra.mxu1 %v4877_v26  ;;  %v908_v26 = vshrl.u32 %v5764_v53, 16  ;;  %v5912_v20 = vcombine.low %v5866_v55, %v5887_v29  ;;  %v988_v21 = vrot.slane %v5483_v4, 1  ;;  %v990_v14 = vrot.slane %v5634_v17, 1  ;;  %v4930_v4 = vld [vmem:[%s6658_s3 + $0x664] ss:$8 sps:$4 sm:$0xff]  }
  0x81   : > { %1881 = vmatprep.subr.bf16.mxu1 %v4885_v42  ;;  %2700 = vmatpush1.bf16.msra.mxu0 %v4880_v47  ;;  %v926_v41 = vrot.slane %v924_v35, 1  ;;  %v4889_v47 = vld [vmem:[%s6658_s3 + $0x500] ss:$8 sps:$4 sm:$0xff]   ;;  %v945_v46 = vshll.u32 %v5847_v39, 16  ;;  %v4173_v13 = vcombine.low %v5915_v63, %v985_v50  ;;  %v4909_v35 = vld [vmem:[%s6658_s3 + $0x534] ss:$8 sps:$4 sm:$0xff]  }
  0x82   : > { %2701 = vmatprep.subr.bf16.mxu0 %v4888_v62  ;;  %1841 = vmatmul.mubr.bf16.gmra.mrb[12].mxu1 %v4067_v7  ;;  %v5921_v52 = vor.u32 %v912_v27, %v908_v26  ;;  %v4903_v62 = vld [vmem:[%s6658_s3 + $0x524] ss:$8 sps:$4 sm:$0xff]   ;;  %v5964_v11 = vcombine.low %v988_v21, %v990_v14  ;;  %v4057_v26 = vcombine.low %v5685_v54, %v5779_v25  ;;  %v4901_v27 = vld [vmem:[%s6658_s3 + $0x520] ss:$8 sps:$4 sm:$0xff]   ;;  %v943_v7 = vshrl.u32 %v5847_v39, 16 }
  0x83   : > { %2660 = vmatprep.mubr.bf16.mxu0 %v5912_v20  ;;  %1883 = vmatprep.mubr.bf16.mxu1 %v4052_v34  ;;  %v5924_v42 = vor.u32 %v926_v41, %v922_v59  ;;  %v4064_v34 = vcombine.low %v5743_v48, %v5866_v55  ;;  %v947_v59 = vrot.slane %v945_v46, 1  ;;  %v989_v54 = vrot.slane %v5653_v28, 1  ;;  %v4898_v25 = vld [vmem:[%s6658_s3 + $0x610] ss:$8 sps:$4 sm:$0xff]   ;;  %v4912_v46 = vld [vmem:[%s6658_s3 + $0x634] ss:$8 sps:$4 sm:$0xff]  }
  0x84   : > { %1882 = vmatpush1.bf16.msra.mxu1 %v4883_v51  ;;  %v4897_v51 = vld [vmem:[%s6658_s3 + $0x514] ss:$8 sps:$4 sm:$0xff]   ;;  %v992_v48 = vrot.slane %v5638_v19, 1  ;;  %v994_v55 = vrot.slane %v5707_v12, 1  ;;  %v938_v41 = vshll.u32 %v5895_v33, 16 }
  0x85   : > { %1924 = vmatprep.subr.bf16.mxu1 %v4891_v6  ;;  %2702 = vmatpush1.bf16.msra.mxu0 %v4886_v23  ;;  %v5933_v45 = vcombine.low %v5921_v52, %v5924_v42  ;;  %v4892_v6 = vld [vmem:[%s6658_s3 + $0x600] ss:$8 sps:$4 sm:$0xff]   ;;  %v987_v23 = vrot.slane %v5492_v9, 1  ;;  %v4993_v9 = vld [vmem:[%s6658_s3 + $0x14] ss:$8 sps:$4 sm:$0xff]  }
  0x86   : > { %3339 = vmatprep.subr.bf16.mxu0 %v4894_v37  ;;  %v4906_v37 = vld [vmem:[%s6658_s3 + $0x624] ss:$8 sps:$4 sm:$0xff]   ;;  %v4991_v17 = vld [vmem:[%s6658_s3 + $0x10] ss:$8 sps:$4 sm:$0xff]  }
  0x87   : > { %2661 = vmatmul.mubr.bf16.gmra.mrb[12].mxu0 %v5933_v45  ;;  %v4999_v19 = vld [vmem:[%s6658_s3 + $0x24] ss:$8 sps:$4 sm:$0xff]   ;;  %v4994_v28 = vld [vmem:[%s6658_s3 + $0x710] ss:$8 sps:$4 sm:$0xff]  }
  0x88   : > { %2703 = vmatprep.mubr.bf16.mxu0 %v4174_v43  ;;  %v4907_v43 = vld [vmem:[%s6658_s3 + $0x530] ss:$8 sps:$4 sm:$0xff]   ;;  %v5002_v12 = vld [vmem:[%s6658_s3 + $0x724] ss:$8 sps:$4 sm:$0xff]  }
  0x8a   : > { %1884 = vmatmul.mubr.bf16.vlgmr.msra.gmra.mrb[0].mxu1 %v4051_v44  ;;  %v5995_v44 = vor.u32 %v947_v59, %v943_v7  ;;  %v998_v7 = vrot.slane %v5843_v38, 1  ;;  %v4918_v59 = vld [vmem:[%s6658_s3 + $0x644] ss:$8 sps:$4 sm:$0xff]   ;;  %v999_v38 = vrot.slane %v5895_v33, 1 }
  0x8b   : > { %1925 = vmatpush1.bf16.msra.mxu1 %v4889_v47  ;;  %1893 = vmatprep.mubr.bf16.mxu1 %v4058_v49  ;;  %v4915_v47 = vld [vmem:[%s6658_s3 + $0x544] ss:$8 sps:$4 sm:$0xff]   ;;  %v6004_v49 = vcombine.low %v987_v23, %v989_v54 }
  0x8c   : > { %1926 = vmatprep.subr.bf16.mxu1 %v4897_v51  ;;  %v4904_v51 = vld [vmem:[%s6658_s3 + $0x620] ss:$8 sps:$4 sm:$0xff]  }
  0x8f   : > { %1927 = vmatpush1.bf16.msra.mxu1 %v4895_v57  ;;  %2704 = vmatmul.mubr.bf16.vlgmr.msra.gmra.mrb[0].mxu0 %v4173_v13  ;;  %v6013_v57 = vcombine.low %v992_v48, %v994_v55  ;;  %v4063_v13 = vcombine.low %v5789_v22, %v5921_v52  ;;  %v991_v22 = vrot.slane %v5663_v32, 1  ;;  %v993_v52 = vrot.slane %v5753_v56, 1  ;;  %v5005_v32 = vld [vmem:[%s6658_s3 + $0x34] ss:$8 sps:$4 sm:$0xff]   ;;  %v5006_v56 = vld [vmem:[%s6658_s3 + $0x730] ss:$8 sps:$4 sm:$0xff]  }
  0x90   : > { %1928 = vmatprep.subr.bf16.mxu1 %v4903_v62  ;;  %3340 = vmatpush1.bf16.msra.mxu0 %v4892_v6  ;;  %v936_v62 = vshrl.u32 %v5895_v33, 16  ;;  %v940_v6 = vrot.slane %v938_v41, 1 }
  0x91   : > { %2713 = vmatprep.mubr.bf16.mxu0 %v5964_v11  ;;  %3341 = vmatprep.subr.bf16.mxu0 %v4900_v16  ;;  %v4913_v16 = vld [vmem:[%s6658_s3 + $0x540] ss:$8 sps:$4 sm:$0xff]   ;;  %v6053_v41 = vcombine.low %v991_v22, %v993_v52 }
  0x92   : > { %1894 = vmatmul.mubr.bf16.gmra.mrb[4].mxu1 %v4057_v26  ;;  %v4070_v26 = vcombine.low %v5887_v29, %v5995_v44  ;;  %v996_v29 = vrot.slane %v5718_v24, 1  ;;  %v5003_v24 = vld [vmem:[%s6658_s3 + $0x30] ss:$8 sps:$4 sm:$0xff]  }
  0x93   : > { %1929 = vmatpush1.bf16.msra.mxu1 %v4901_v27  ;;  %1903 = vmatprep.mubr.bf16.mxu1 %v4064_v34  ;;  %v4921_v27 = vld [vmem:[%s6658_s3 + $0x554] ss:$8 sps:$4 sm:$0xff]   ;;  %v4910_v34 = vld [vmem:[%s6658_s3 + $0x630] ss:$8 sps:$4 sm:$0xff]  }
  0x94   : > { %1930 = vmatprep.subr.bf16.mxu1 %v4909_v35  ;;  %3342 = vmatpush1.bf16.msra.mxu0 %v4898_v25  ;;  %v6041_v35 = vor.u32 %v940_v6, %v936_v62  ;;  %v4919_v25 = vld [vmem:[%s6658_s3 + $0x550] ss:$8 sps:$4 sm:$0xff]   ;;  %v4054_v62 = vcombine.low %v986_v36, %v988_v21  ;;  %v4933_v6 = vld [vmem:[%s6658_s3 + $0x574] ss:$8 sps:$4 sm:$0xff]   ;;  %v4939_v21 = vld [vmem:[%s6658_s3 + $0x584] ss:$8 sps:$4 sm:$0xff]  }
  0x95   : > { %3343 = vmatprep.subr.bf16.mxu0 %v4906_v37  ;;  %v4927_v37 = vld [vmem:[%s6658_s3 + $0x564] ss:$8 sps:$4 sm:$0xff]   ;;  %v4931_v36 = vld [vmem:[%s6658_s3 + $0x570] ss:$8 sps:$4 sm:$0xff]  }
  0x97   : > { %1931 = vmatpush1.bf16.msra.mxu1 %v4907_v43  ;;  %2714 = vmatmul.mubr.bf16.gmra.mrb[4].mxu0 %v6004_v49  ;;  %v4916_v43 = vld [vmem:[%s6658_s3 + $0x640] ss:$8 sps:$4 sm:$0xff]  }
  0x98   : > { %1932 = vmatprep.subr.bf16.mxu1 %v4915_v47  ;;  %3344 = vmatpush1.bf16.msra.mxu0 %v4904_v51  ;;  %v6062_v47 = vcombine.low %v996_v29, %v998_v7  ;;  %v4924_v51 = vld [vmem:[%s6658_s3 + $0x654] ss:$8 sps:$4 sm:$0xff]  }
  0x99   : > { %2723 = vmatprep.mubr.bf16.mxu0 %v6013_v57  ;;  %3345 = vmatprep.subr.bf16.mxu0 %v4912_v46  ;;  %v4069_v46 = vcombine.low %v5924_v42, %v6041_v35  ;;  %v997_v42 = vrot.slane %v5891_v31, 1  ;;  %v5018_v31 = vld [vmem:[%s6658_s3 + $0x750] ss:$8 sps:$4 sm:$0xff]  }
  0x9a   : > { %1904 = vmatmul.mubr.bf16.gmra.mrb[8].mxu1 %v4063_v13  ;;  %v4925_v13 = vld [vmem:[%s6658_s3 + $0x560] ss:$8 sps:$4 sm:$0xff]  }
  0x9b   : > { %1933 = vmatpush1.bf16.msra.mxu1 %v4913_v16  ;;  %1913 = vmatprep.mubr.bf16.mxu1 %v4070_v26  ;;  %v995_v16 = vrot.slane %v5764_v53, 1  ;;  %v4922_v26 = vld [vmem:[%s6658_s3 + $0x650] ss:$8 sps:$4 sm:$0xff]   ;;  %v5014_v53 = vld [vmem:[%s6658_s3 + $0x744] ss:$8 sps:$4 sm:$0xff]  }
  0x9c   : > { %1934 = vmatprep.subr.bf16.mxu1 %v4921_v27  ;;  %3346 = vmatpush1.bf16.msra.mxu0 %v4910_v34  ;;  %v4928_v34 = vld [vmem:[%s6658_s3 + $0x660] ss:$8 sps:$4 sm:$0xff]  }
  0x9d   : > { %3347 = vmatprep.subr.bf16.mxu0 %v4918_v59  ;;  %v6099_v27 = vcombine.low %v995_v16, %v997_v42  ;;  %v4936_v59 = vld [vmem:[%s6658_s3 + $0x674] ss:$8 sps:$4 sm:$0xff]  }
  0x9f   : > { %1935 = vmatpush1.bf16.msra.mxu1 %v4919_v25  ;;  %2724 = vmatmul.mubr.bf16.gmra.mrb[8].mxu0 %v6053_v41  ;;  %v4937_v25 = vld [vmem:[%s6658_s3 + $0x580] ss:$8 sps:$4 sm:$0xff]  }
  0xa0   : > { %1936 = vmatprep.subr.bf16.mxu1 %v4927_v37  ;;  %3348 = vmatpush1.bf16.msra.mxu0 %v4916_v43  ;;  %v4945_v37 = vld [vmem:[%s6658_s3 + $0x594] ss:$8 sps:$4 sm:$0xff]   ;;  %v4934_v43 = vld [vmem:[%s6658_s3 + $0x670] ss:$8 sps:$4 sm:$0xff]  }
  0xa1   : > { %2733 = vmatprep.mubr.bf16.mxu0 %v6062_v47  ;;  %3349 = vmatprep.subr.bf16.mxu0 %v4924_v51  ;;  %v4942_v51 = vld [vmem:[%s6658_s3 + $0x684] ss:$8 sps:$4 sm:$0xff]  }
  0xa2   : > { %1914 = vmatmul.mubr.bf16.gmra.mrb[12].mxu1 %v4069_v46  ;;  %v4943_v46 = vld [vmem:[%s6658_s3 + $0x590] ss:$8 sps:$4 sm:$0xff]  }
  0xa3   : > { %1937 = vmatpush1.bf16.msra.mxu1 %v4925_v13  ;;  %1956 = vmatprep.mubr.bf16.mxu1 %v4054_v62  ;;  %v4951_v13 = vld [vmem:[%s6658_s3 + $0x5a4] ss:$8 sps:$4 sm:$0xff]   ;;  %v4940_v62 = vld [vmem:[%s6658_s3 + $0x680] ss:$8 sps:$4 sm:$0xff]  }
  0xa4   : > { %1938 = vmatprep.subr.bf16.mxu1 %v4933_v6  ;;  %3350 = vmatpush1.bf16.msra.mxu0 %v4922_v26  ;;  %v4948_v6 = vld [vmem:[%s6658_s3 + $0x694] ss:$8 sps:$4 sm:$0xff]   ;;  %v4949_v26 = vld [vmem:[%s6658_s3 + $0x5a0] ss:$8 sps:$4 sm:$0xff]  }
  0xa5   : > { %3351 = vmatprep.subr.bf16.mxu0 %v4930_v4  ;;  %v4957_v4 = vld [vmem:[%s6658_s3 + $0x5b4] ss:$8 sps:$4 sm:$0xff]  }
  0xa7   : > { %1939 = vmatpush1.bf16.msra.mxu1 %v4931_v36  ;;  %2734 = vmatmul.mubr.bf16.gmra.mrb[12].mxu0 %v6099_v27  ;;  %v4946_v36 = vld [vmem:[%s6658_s3 + $0x690] ss:$8 sps:$4 sm:$0xff]  }
  0xa8   : > { %1940 = vmatprep.subr.bf16.mxu1 %v4939_v21  ;;  %3352 = vmatpush1.bf16.msra.mxu0 %v4928_v34  ;;  %v4954_v21 = vld [vmem:[%s6658_s3 + $0x6a4] ss:$8 sps:$4 sm:$0xff]   ;;  %v4955_v34 = vld [vmem:[%s6658_s3 + $0x5b0] ss:$8 sps:$4 sm:$0xff]  }
  0xa9   : > { %3371 = vmatprep.mubr.bf16.mxu0 %v5820_v0  ;;  %3353 = vmatprep.subr.bf16.mxu0 %v4936_v59  ;;  %v4963_v59 = vld [vmem:[%s6658_s3 + $0x5c4] ss:$8 sps:$4 sm:$0xff]  }
  0xab   : > { %1941 = vmatpush1.bf16.msra.mxu1 %v4937_v25  ;;  %v4952_v25 = vld [vmem:[%s6658_s3 + $0x6a0] ss:$8 sps:$4 sm:$0xff]  }
  0xac   : > { %1942 = vmatprep.subr.bf16.mxu1 %v4945_v37  ;;  %3354 = vmatpush1.bf16.msra.mxu0 %v4934_v43  ;;  %v4960_v37 = vld [vmem:[%s6658_s3 + $0x6b4] ss:$8 sps:$4 sm:$0xff]   ;;  %v4961_v43 = vld [vmem:[%s6658_s3 + $0x5c0] ss:$8 sps:$4 sm:$0xff]  }
  0xad   : > { %3355 = vmatprep.subr.bf16.mxu0 %v4942_v51  ;;  %v4969_v51 = vld [vmem:[%s6658_s3 + $0x5d4] ss:$8 sps:$4 sm:$0xff]  }
  0xaf   : > { %1943 = vmatpush1.bf16.msra.mxu1 %v4943_v46  ;;  %v4958_v46 = vld [vmem:[%s6658_s3 + $0x6b0] ss:$8 sps:$4 sm:$0xff]  }
  0xb0   : > { %1944 = vmatprep.subr.bf16.mxu1 %v4951_v13  ;;  %3356 = vmatpush1.bf16.msra.mxu0 %v4940_v62  ;;  %v4966_v13 = vld [vmem:[%s6658_s3 + $0x6c4] ss:$8 sps:$4 sm:$0xff]   ;;  %v4967_v62 = vld [vmem:[%s6658_s3 + $0x5d0] ss:$8 sps:$4 sm:$0xff]  }
  0xb1   : > { %3357 = vmatprep.subr.bf16.mxu0 %v4948_v6  ;;  %v4975_v6 = vld [vmem:[%s6658_s3 + $0x5e4] ss:$8 sps:$4 sm:$0xff]  }
  0xb3   : > { %1945 = vmatpush1.bf16.msra.mxu1 %v4949_v26  ;;  %v4964_v26 = vld [vmem:[%s6658_s3 + $0x6c0] ss:$8 sps:$4 sm:$0xff]  }
  0xb4   : > { %1946 = vmatprep.subr.bf16.mxu1 %v4957_v4  ;;  %3358 = vmatpush1.bf16.msra.mxu0 %v4946_v36  ;;  %v4972_v4 = vld [vmem:[%s6658_s3 + $0x6d4] ss:$8 sps:$4 sm:$0xff]   ;;  %v4973_v36 = vld [vmem:[%s6658_s3 + $0x5e0] ss:$8 sps:$4 sm:$0xff]  }
  0xb5   : > { %3359 = vmatprep.subr.bf16.mxu0 %v4954_v21  ;;  %v4981_v21 = vld [vmem:[%s6658_s3 + $0x5f4] ss:$8 sps:$4 sm:$0xff]  }
  0xb7   : > { %1947 = vmatpush1.bf16.msra.mxu1 %v4955_v34  ;;  %v4970_v34 = vld [vmem:[%s6658_s3 + $0x6d0] ss:$8 sps:$4 sm:$0xff]  }
  0xb8   : > { %1948 = vmatprep.subr.bf16.mxu1 %v4963_v59  ;;  %3360 = vmatpush1.bf16.msra.mxu0 %v4952_v25  ;;  %v4978_v59 = vld [vmem:[%s6658_s3 + $0x6e4] ss:$8 sps:$4 sm:$0xff]   ;;  %v4979_v25 = vld [vmem:[%s6658_s3 + $0x5f0] ss:$8 sps:$4 sm:$0xff]  }
  0xb9   : > { %3361 = vmatprep.subr.bf16.mxu0 %v4960_v37  ;;  %v4987_v37 = vld [vmem:[%s6658_s3 + $0x4] ss:$8 sps:$4 sm:$0xff]  }
  0xbb   : > { %1949 = vmatpush1.bf16.msra.mxu1 %v4961_v43  ;;  %v4976_v43 = vld [vmem:[%s6658_s3 + $0x6e0] ss:$8 sps:$4 sm:$0xff]  }
  0xbc   : > { %1950 = vmatprep.subr.bf16.mxu1 %v4969_v51  ;;  %3362 = vmatpush1.bf16.msra.mxu0 %v4958_v46  ;;  %v4053_v51 = vcombine.low %v985_v50, %v987_v23  ;;  %v4984_v46 = vld [vmem:[%s6658_s3 + $0x6f4] ss:$8 sps:$4 sm:$0xff]   ;;  %v4982_v50 = vld [vmem:[%s6658_s3 + $0x6f0] ss:$8 sps:$4 sm:$0xff]   ;;  %v4990_v23 = vld [vmem:[%s6658_s3 + $0x704] ss:$8 sps:$4 sm:$0xff]  }
  0xbd   : > { %3363 = vmatprep.subr.bf16.mxu0 %v4966_v13  ;;  %v4985_v13 = vld [vmem:[%s6658_s3] ss:$8 sps:$4 sm:$0xff]  }
  0xbf   : > { %1951 = vmatpush1.bf16.msra.mxu1 %v4967_v62  ;;  %v4060_v62 = vcombine.low %v990_v14, %v992_v48  ;;  %v4988_v14 = vld [vmem:[%s6658_s3 + $0x700] ss:$8 sps:$4 sm:$0xff]   ;;  %v4996_v48 = vld [vmem:[%s6658_s3 + $0x714] ss:$8 sps:$4 sm:$0xff]  }
  0xc0   : > { %1952 = vmatprep.subr.bf16.mxu1 %v4975_v6  ;;  %3364 = vmatpush1.bf16.msra.mxu0 %v4964_v26  ;;  %v4059_v6 = vcombine.low %v989_v54, %v991_v22  ;;  %v4997_v26 = vld [vmem:[%s6658_s3 + $0x20] ss:$8 sps:$4 sm:$0xff]   ;;  %v1000_v54 = vrot.slane %v5847_v39, 1 }
  0xc1   : > { %3365 = vmatprep.subr.bf16.mxu0 %v4972_v4  ;;  %v4066_v4 = vcombine.low %v994_v55, %v996_v29  ;;  %v5011_v55 = vld [vmem:[%s6658_s3 + $0x44] ss:$8 sps:$4 sm:$0xff]   ;;  %v5000_v22 = vld [vmem:[%s6658_s3 + $0x720] ss:$8 sps:$4 sm:$0xff]   ;;  %v5008_v29 = vld [vmem:[%s6658_s3 + $0x734] ss:$8 sps:$4 sm:$0xff]  }
  0xc3   : > { %1953 = vmatpush1.bf16.msra.mxu1 %v4973_v36  ;;  %v4065_v36 = vcombine.low %v993_v52, %v995_v16  ;;  %v5015_v52 = vld [vmem:[%s6658_s3 + $0x50] ss:$8 sps:$4 sm:$0xff]   ;;  %v5012_v16 = vld [vmem:[%s6658_s3 + $0x740] ss:$8 sps:$4 sm:$0xff]  }
  0xc4   : > { %1954 = vmatprep.subr.bf16.mxu1 %v4981_v21  ;;  %3366 = vmatpush1.bf16.msra.mxu0 %v4970_v34  ;;  %v5009_v21 = vld [vmem:[%s6658_s3 + $0x40] ss:$8 sps:$4 sm:$0xff]   ;;  %v4072_v34 = vcombine.low %v998_v7, %v1000_v54  ;;  %v5023_v7 = vld [vmem:[%s6658_s3 + $0x64] ss:$8 sps:$4 sm:$0xff]  }
  0xc5   : > { %3367 = vmatprep.subr.bf16.mxu0 %v4978_v59  ;;  %v5017_v59 = vld [vmem:[%s6658_s3 + $0x54] ss:$8 sps:$4 sm:$0xff]  }
  0xc7   : > { %1955 = vmatpush1.bf16.msra.mxu1 %v4979_v25  ;;  %v4386_v25 = vcombine.low %v5847_v39, %v5440_v30 }
  0xc8   : > { %2525 = vmatprep.subr.bf16.mxu1 %v4987_v37  ;;  %3368 = vmatpush1.bf16.msra.mxu0 %v4976_v43  ;;  %v5020_v37 = vld [vmem:[%s6658_s3 + $0x754] ss:$8 sps:$4 sm:$0xff]   ;;  %v4071_v43 = vcombine.low %v997_v42, %v999_v38  ;;  %v5026_v42 = vld [vmem:[%s6658_s3 + $0x764] ss:$8 sps:$4 sm:$0xff]  }
  0xc9   : > { %3369 = vmatprep.subr.bf16.mxu0 %v4984_v46  ;;  %v4170_v46 = vcombine.low %v5440_v30, %v5473_v1  ;;  %v5027_v1 = vld [vmem:[%s6658_s3 + $0x70] ss:$8 sps:$4 sm:$0xff]  }
  0xca   : > { %1957 = vmatmul.mubr.bf16.vlgmr.msra.gmra.mrb[0].mxu1 %v4053_v51  ;;  %v5021_v51 = vld [vmem:[%s6658_s3 + $0x60] ss:$8 sps:$4 sm:$0xff]  }
  0xcb   : > { %2526 = vmatpush1.bf16.msra.mxu1 %v4985_v13  ;;  %1966 = vmatprep.mubr.bf16.mxu1 %v4060_v62  ;;  %v5029_v13 = vld [vmem:[%s6658_s3 + $0x74] ss:$8 sps:$4 sm:$0xff]   ;;  %v5035_v62 = vld [vmem:[%s6658_s3 + $0x84] ss:$8 sps:$4 sm:$0xff]  }
  0xcc   : > { %2527 = vmatprep.subr.bf16.mxu1 %v4993_v9  ;;  %3370 = vmatpush1.bf16.msra.mxu0 %v4982_v50  ;;  %v4385_v9 = vcombine.low %v5895_v33, %v5440_v30  ;;  %v5024_v50 = vld [vmem:[%s6658_s3 + $0x760] ss:$8 sps:$4 sm:$0xff]  }
  0xcd   : > { %3412 = vmatprep.subr.bf16.mxu0 %v4990_v23  ;;  %v5032_v23 = vld [vmem:[%s6658_s3 + $0x774] ss:$8 sps:$4 sm:$0xff]  }
  0xcf   : > { %2528 = vmatpush1.bf16.msra.mxu1 %v4991_v17  ;;  %3372 = vmatmul.mubr.bf16.vlgmr.msra.gmra.mrb[0].mxu0 %v5824_v2  ;;  %v5033_v17 = vld [vmem:[%s6658_s3 + $0x80] ss:$8 sps:$4 sm:$0xff]  }
  0xd0   : > { %2529 = vmatprep.subr.bf16.mxu1 %v4999_v19  ;;  %3413 = vmatpush1.bf16.msra.mxu0 %v4988_v14  ;;  %v5041_v19 = vld [vmem:[%s6658_s3 + $0x94] ss:$8 sps:$4 sm:$0xff]   ;;  %v5030_v14 = vld [vmem:[%s6658_s3 + $0x770] ss:$8 sps:$4 sm:$0xff]  }
  0xd1   : > { %3381 = vmatprep.mubr.bf16.mxu0 %v5864_v58  ;;  %3414 = vmatprep.subr.bf16.mxu0 %v4996_v48  ;;  %v5038_v48 = vld [vmem:[%s6658_s3 + $0x784] ss:$8 sps:$4 sm:$0xff]  }
  0xd2   : > { %1967 = vmatmul.mubr.bf16.gmra.mrb[4].mxu1 %v4059_v6  ;;  %v5039_v6 = vld [vmem:[%s6658_s3 + $0x90] ss:$8 sps:$4 sm:$0xff]  }
  0xd3   : > { %2530 = vmatpush1.bf16.msra.mxu1 %v4997_v26  ;;  %1976 = vmatprep.mubr.bf16.mxu1 %v4066_v4  ;;  %v5047_v26 = vld [vmem:[%s6658_s3 + $0xa4] ss:$8 sps:$4 sm:$0xff]   ;;  %v5044_v4 = vld [vmem:[%s6658_s3 + $0x794] ss:$8 sps:$4 sm:$0xff]  }
  0xd4   : > { %2531 = vmatprep.subr.bf16.mxu1 %v5005_v32  ;;  %3415 = vmatpush1.bf16.msra.mxu0 %v4994_v28  ;;  %v5045_v32 = vld [vmem:[%s6658_s3 + $0xa0] ss:$8 sps:$4 sm:$0xff]   ;;  %v5053_v28 = vld [vmem:[%s6658_s3 + $0xb4] ss:$8 sps:$4 sm:$0xff]  }
  0xd5   : > { %3416 = vmatprep.subr.bf16.mxu0 %v5002_v12  ;;  %v5042_v12 = vld [vmem:[%s6658_s3 + $0x790] ss:$8 sps:$4 sm:$0xff]  }
  0xd7   : > { %2532 = vmatpush1.bf16.msra.mxu1 %v5003_v24  ;;  %3382 = vmatmul.mubr.bf16.gmra.mrb[4].mxu0 %v5876_v8  ;;  %v5050_v24 = vld [vmem:[%s6658_s3 + $0x7a4] ss:$8 sps:$4 sm:$0xff]  }
  0xd8   : > { %2533 = vmatprep.subr.bf16.mxu1 %v5011_v55  ;;  %3417 = vmatpush1.bf16.msra.mxu0 %v5000_v22  ;;  %v5051_v55 = vld [vmem:[%s6658_s3 + $0xb0] ss:$8 sps:$4 sm:$0xff]   ;;  %v5059_v22 = vld [vmem:[%s6658_s3 + $0xc4] ss:$8 sps:$4 sm:$0xff]  }
  0xd9   : > { %3391 = vmatprep.mubr.bf16.mxu0 %v5880_v10  ;;  %3418 = vmatprep.subr.bf16.mxu0 %v5008_v29  ;;  %v5048_v29 = vld [vmem:[%s6658_s3 + $0x7a0] ss:$8 sps:$4 sm:$0xff]  }
  0xda   : > { %1977 = vmatmul.mubr.bf16.gmra.mrb[8].mxu1 %v4065_v36  ;;  %v5056_v36 = vld [vmem:[%s6658_s3 + $0x7b4] ss:$8 sps:$4 sm:$0xff]  }
  0xdb   : > { %2534 = vmatpush1.bf16.msra.mxu1 %v5009_v21  ;;  %1986 = vmatprep.mubr.bf16.mxu1 %v4072_v34  ;;  %v5057_v21 = vld [vmem:[%s6658_s3 + $0xc0] ss:$8 sps:$4 sm:$0xff]   ;;  %v5065_v34 = vld [vmem:[%s6658_s3 + $0xd4] ss:$8 sps:$4 sm:$0xff]  }
  0xdc   : > { %2535 = vmatprep.subr.bf16.mxu1 %v5017_v59  ;;  %3419 = vmatpush1.bf16.msra.mxu0 %v5006_v56  ;;  %v5054_v59 = vld [vmem:[%s6658_s3 + $0x7b0] ss:$8 sps:$4 sm:$0xff]   ;;  %v5062_v56 = vld [vmem:[%s6658_s3 + $0x7c4] ss:$8 sps:$4 sm:$0xff]  }
  0xdd   : > { %3420 = vmatprep.subr.bf16.mxu0 %v5014_v53  ;;  %v5063_v53 = vld [vmem:[%s6658_s3 + $0xd0] ss:$8 sps:$4 sm:$0xff]  }
  0xdf   : > { %2536 = vmatpush1.bf16.msra.mxu1 %v5015_v52  ;;  %3392 = vmatmul.mubr.bf16.gmra.mrb[8].mxu0 %v5908_v18  ;;  %v5071_v52 = vld [vmem:[%s6658_s3 + $0xe4] ss:$8 sps:$4 sm:$0xff]  }
  0xe0   : > { %2537 = vmatprep.subr.bf16.mxu1 %v5023_v7  ;;  %3421 = vmatpush1.bf16.msra.mxu0 %v5012_v16  ;;  %v5060_v7 = vld [vmem:[%s6658_s3 + $0x7c0] ss:$8 sps:$4 sm:$0xff]   ;;  %v5068_v16 = vld [vmem:[%s6658_s3 + $0x7d4] ss:$8 sps:$4 sm:$0xff]  }
  0xe1   : > { %3401 = vmatprep.mubr.bf16.mxu0 %v4386_v25  ;;  %3422 = vmatprep.subr.bf16.mxu0 %v5020_v37  ;;  %v5069_v25 = vld [vmem:[%s6658_s3 + $0xe0] ss:$8 sps:$4 sm:$0xff]   ;;  %v5077_v37 = vld [vmem:[%s6658_s3 + $0xf4] ss:$8 sps:$4 sm:$0xff]  }
  0xe2   : > { %1987 = vmatmul.mubr.bf16.gmra.mrb[12].mxu1 %v4071_v43  ;;  %v5066_v43 = vld [vmem:[%s6658_s3 + $0x7d0] ss:$8 sps:$4 sm:$0xff]  }
  0xe3   : > { %2538 = vmatpush1.bf16.msra.mxu1 %v5021_v51  ;;  %2557 = vmatprep.mubr.bf16.mxu1 %v4170_v46  ;;  %v5074_v51 = vld [vmem:[%s6658_s3 + $0x7e4] ss:$8 sps:$4 sm:$0xff]   ;;  %v5075_v46 = vld [vmem:[%s6658_s3 + $0xf0] ss:$8 sps:$4 sm:$0xff]  }
  0xe4   : > { %2539 = vmatprep.subr.bf16.mxu1 %v5029_v13  ;;  %3423 = vmatpush1.bf16.msra.mxu0 %v5018_v31  ;;  %v5083_v13 = vld [vmem:[%s6658_s3 + $0x804] ss:$8 sps:$4 sm:$0xff]   ;;  %v5072_v31 = vld [vmem:[%s6658_s3 + $0x7e0] ss:$8 sps:$4 sm:$0xff]  }
  0xe5   : > { %3424 = vmatprep.subr.bf16.mxu0 %v5026_v42  ;;  %v5080_v42 = vld [vmem:[%s6658_s3 + $0x7f4] ss:$8 sps:$4 sm:$0xff]  }
  0xe7   : > { %2540 = vmatpush1.bf16.msra.mxu1 %v5027_v1  ;;  %3402 = vmatmul.mubr.bf16.gmra.mrb[12].mxu0 %v4385_v9  ;;  %v4169_v1 = vcombine.low %v5440_v30, %v5479_v3  ;;  %v5086_v9 = vld [vmem:[%s6658_s3 + $0x814] ss:$8 sps:$4 sm:$0xff]   ;;  %v5084_v30 = vld [vmem:[%s6658_s3 + $0x810] ss:$8 sps:$4 sm:$0xff]   ;;  %v5089_v3 = vld [vmem:[%s6658_s3 + $0x824] ss:$8 sps:$4 sm:$0xff]  }
  0xe8   : > { %2541 = vmatprep.subr.bf16.mxu1 %v5035_v62  ;;  %3425 = vmatpush1.bf16.msra.mxu0 %v5024_v50  ;;  %v5081_v62 = vld [vmem:[%s6658_s3 + $0x800] ss:$8 sps:$4 sm:$0xff]   ;;  %v5078_v50 = vld [vmem:[%s6658_s3 + $0x7f0] ss:$8 sps:$4 sm:$0xff]  }
  0xe9   : > { %3444 = vmatprep.mubr.bf16.mxu0 %v5695_v61  ;;  %3426 = vmatprep.subr.bf16.mxu0 %v5032_v23  ;;  %v5036_v61 = vld [vmem:[%s6658_s3 + $0x780] ss:$8 sps:$4 sm:$0xff]  }
  0xea   : > { %v5087_v23 = vld [vmem:[%s6658_s3 + $0x820] ss:$8 sps:$4 sm:$0xff]  }
  0xeb   : > { %2542 = vmatpush1.bf16.msra.mxu1 %v5033_v17  ;;  %v5092_v17 = vld [vmem:[%s6658_s3 + $0x834] ss:$8 sps:$4 sm:$0xff]  }
  0xec   : > { %2543 = vmatprep.subr.bf16.mxu1 %v5041_v19  ;;  %3427 = vmatpush1.bf16.msra.mxu0 %v5030_v14  ;;  %v4388_v19 = vcombine.low %v5995_v44, %v5503_v15  ;;  %v5107_v44 = vld [vmem:[%s6658_s3 + $0x884] ss:$8 sps:$4 sm:$0xff]   ;;  %v5111_v14 = vld [vmem:[%s6658_s3 + $0x8a0] ss:$8 sps:$4 sm:$0xff]  }
  0xed   : > { %3428 = vmatprep.subr.bf16.mxu0 %v5038_v48  ;;  %v5114_v48 = vld [vmem:[%s6658_s3 + $0x8b0] ss:$8 sps:$4 sm:$0xff]  }
  0xef   : > { %2544 = vmatpush1.bf16.msra.mxu1 %v5039_v6  ;;  %v5119_v6 = vld [vmem:[%s6658_s3 + $0x8c4] ss:$8 sps:$4 sm:$0xff]  }
  0xf0   : > { %2545 = vmatprep.subr.bf16.mxu1 %v5047_v26  ;;  %3429 = vmatpush1.bf16.msra.mxu0 %v5036_v61  ;;  %v5117_v26 = vld [vmem:[%s6658_s3 + $0x8c0] ss:$8 sps:$4 sm:$0xff]   ;;  %v5122_v61 = vld [vmem:[%s6658_s3 + $0x8d4] ss:$8 sps:$4 sm:$0xff]  }
  0xf1   : > { %3430 = vmatprep.subr.bf16.mxu0 %v5044_v4  ;;  %v5120_v4 = vld [vmem:[%s6658_s3 + $0x8d0] ss:$8 sps:$4 sm:$0xff]  }
  0xf3   : > { %2546 = vmatpush1.bf16.msra.mxu1 %v5045_v32  ;;  %v5125_v32 = vld [vmem:[%s6658_s3 + $0x8e4] ss:$8 sps:$4 sm:$0xff]  }
  0xf4   : > { %2547 = vmatprep.subr.bf16.mxu1 %v5053_v28  ;;  %3431 = vmatpush1.bf16.msra.mxu0 %v5042_v12  ;;  %v5123_v28 = vld [vmem:[%s6658_s3 + $0x8e0] ss:$8 sps:$4 sm:$0xff]   ;;  %v5128_v12 = vld [vmem:[%s6658_s3 + $0x8f4] ss:$8 sps:$4 sm:$0xff]  }
  0xf5   : > { %3432 = vmatprep.subr.bf16.mxu0 %v5050_v24  ;;  %v5126_v24 = vld [vmem:[%s6658_s3 + $0x8f0] ss:$8 sps:$4 sm:$0xff]  }
  0xf7   : > { %2548 = vmatpush1.bf16.msra.mxu1 %v5051_v55  ;;  %v4390_v55 = vcombine.low %v1000_v54, %v5915_v63 }
  0xf8   : > { %2549 = vmatprep.subr.bf16.mxu1 %v5059_v22  ;;  %3433 = vmatpush1.bf16.msra.mxu0 %v5048_v29  ;;  %v4389_v22 = vcombine.low %v999_v38, %v5915_v63 }
  0xf9   : > { %3434 = vmatprep.subr.bf16.mxu0 %v5056_v36 }
  0xfb   : > { %2550 = vmatpush1.bf16.msra.mxu1 %v5057_v21 }
  0xfc   : > { %2551 = vmatprep.subr.bf16.mxu1 %v5065_v34  ;;  %3435 = vmatpush1.bf16.msra.mxu0 %v5054_v59 }
  0xfd   : > { %3436 = vmatprep.subr.bf16.mxu0 %v5062_v56 }
  0xff   : > { %2552 = vmatpush1.bf16.msra.mxu1 %v5063_v53 }
 0x100   : > { %2553 = vmatprep.subr.bf16.mxu1 %v5071_v52  ;;  %3437 = vmatpush1.bf16.msra.mxu0 %v5060_v7 }
 0x101   : > { %3438 = vmatprep.subr.bf16.mxu0 %v5068_v16 }
 0x103   : > { %2554 = vmatpush1.bf16.msra.mxu1 %v5069_v25 }
 0x104   : > { %2555 = vmatprep.subr.bf16.mxu1 %v5077_v37  ;;  %3439 = vmatpush1.bf16.msra.mxu0 %v5066_v43 }
 0x105   : > { %3440 = vmatprep.subr.bf16.mxu0 %v5074_v51 }
 0x107   : > { %2556 = vmatpush1.bf16.msra.mxu1 %v5075_v46 }
 0x108   : > { %4512 = vmatprep.subr.bf16.mxu1 %v5083_v13  ;;  %3441 = vmatpush1.bf16.msra.mxu0 %v5072_v31 }
 0x109   : > { %3442 = vmatprep.subr.bf16.mxu0 %v5080_v42 }
 0x10a   : > { %2558 = vmatmul.mubr.bf16.vlgmr.msra.gmra.mrb[0].mxu1 %v4169_v1 }
 0x10b   : > { %4528 = vmatpush1.bf16.msra.mxu1 %v5081_v62  ;;  %2567 = vmatprep.mubr.bf16.mxu1 %v5820_v0  ;;  %v5090_v0 = vld [vmem:[%s6658_s3 + $0x830] ss:$8 sps:$4 sm:$0xff]  }
 0x10c   : > { %4513 = vmatprep.subr.bf16.mxu1 %v5086_v9  ;;  %3443 = vmatpush1.bf16.msra.mxu0 %v5078_v50 }
 0x10d   : > { %3485 = vmatprep.subr.bf16.mxu0 %v5083_v13 }
 0x10f   : > { %4529 = vmatpush1.bf16.msra.mxu1 %v5084_v30  ;;  %3445 = vmatmul.mubr.bf16.vlgmr.msra.gmra.mrb[0].mxu0 %v5699_v5  ;;  %v5095_v5 = vld [vmem:[%s6658_s3 + $0x844] ss:$8 sps:$4 sm:$0xff]  }
 0x110   : > { %4514 = vmatprep.subr.bf16.mxu1 %v5089_v3  ;;  %3486 = vmatpush1.bf16.msra.mxu0 %v5081_v62 }
 0x111   : > { %3454 = vmatprep.mubr.bf16.mxu0 %v5760_v60  ;;  %3487 = vmatprep.subr.bf16.mxu0 %v5086_v9  ;;  %v5093_v60 = vld [vmem:[%s6658_s3 + $0x840] ss:$8 sps:$4 sm:$0xff]  }
 0x112   : > { %2568 = vmatmul.mubr.bf16.gmra.mrb[4].mxu1 %v5824_v2  ;;  %v5098_v2 = vld [vmem:[%s6658_s3 + $0x854] ss:$8 sps:$4 sm:$0xff]  }
 0x113   : > { %4530 = vmatpush1.bf16.msra.mxu1 %v5087_v23  ;;  %2577 = vmatprep.mubr.bf16.mxu1 %v5864_v58  ;;  %v5096_v58 = vld [vmem:[%s6658_s3 + $0x850] ss:$8 sps:$4 sm:$0xff]  }
 0x114   : > { %4515 = vmatprep.subr.bf16.mxu1 %v5092_v17  ;;  %3488 = vmatpush1.bf16.msra.mxu0 %v5084_v30 }
 0x115   : > { %3489 = vmatprep.subr.bf16.mxu0 %v5089_v3 }
 0x117   : > { %4531 = vmatpush1.bf16.msra.mxu1 %v5090_v0  ;;  %3455 = vmatmul.mubr.bf16.gmra.mrb[4].mxu0 %v5801_v40  ;;  %v5101_v40 = vld [vmem:[%s6658_s3 + $0x864] ss:$8 sps:$4 sm:$0xff]  }
 0x118   : > { %4516 = vmatprep.subr.bf16.mxu1 %v5095_v5  ;;  %3490 = vmatpush1.bf16.msra.mxu0 %v5087_v23 }
 0x119   : > { %3464 = vmatprep.mubr.bf16.mxu0 %v5912_v20  ;;  %3491 = vmatprep.subr.bf16.mxu0 %v5092_v17  ;;  %v5102_v20 = vld [vmem:[%s6658_s3 + $0x870] ss:$8 sps:$4 sm:$0xff]  }
 0x11a   : > { %2578 = vmatmul.mubr.bf16.gmra.mrb[8].mxu1 %v5876_v8  ;;  %v5099_v8 = vld [vmem:[%s6658_s3 + $0x860] ss:$8 sps:$4 sm:$0xff]  }
 0x11b   : > { %4532 = vmatpush1.bf16.msra.mxu1 %v5093_v60  ;;  %2587 = vmatprep.mubr.bf16.mxu1 %v5880_v10  ;;  %v5104_v10 = vld [vmem:[%s6658_s3 + $0x874] ss:$8 sps:$4 sm:$0xff]  }
 0x11c   : > { %4517 = vmatprep.subr.bf16.mxu1 %v5098_v2  ;;  %3492 = vmatpush1.bf16.msra.mxu0 %v5090_v0 }
 0x11d   : > { %3493 = vmatprep.subr.bf16.mxu0 %v5095_v5 }
 0x11f   : > { %4533 = vmatpush1.bf16.msra.mxu1 %v5096_v58  ;;  %3465 = vmatmul.mubr.bf16.gmra.mrb[8].mxu0 %v5933_v45  ;;  %v4387_v45 = vcombine.low %v6041_v35, %v5503_v15  ;;  %v5108_v15 = vld [vmem:[%s6658_s3 + $0x890] ss:$8 sps:$4 sm:$0xff]   ;;  %v5113_v35 = vld [vmem:[%s6658_s3 + $0x8a4] ss:$8 sps:$4 sm:$0xff]  }
 0x120   : > { %4518 = vmatprep.subr.bf16.mxu1 %v5101_v40  ;;  %3494 = vmatpush1.bf16.msra.mxu0 %v5093_v60 }
 0x121   : > { %3474 = vmatprep.mubr.bf16.mxu0 %v4388_v19  ;;  %3495 = vmatprep.subr.bf16.mxu0 %v5098_v2 }
 0x122   : > { %2588 = vmatmul.mubr.bf16.gmra.mrb[12].mxu1 %v5908_v18  ;;  %v5105_v18 = vld [vmem:[%s6658_s3 + $0x880] ss:$8 sps:$4 sm:$0xff]  }
 0x123   : > { %4534 = vmatpush1.bf16.msra.mxu1 %v5099_v8  ;;  %3537 = vmatprep.mubr.bf16.mxu1 %v6062_v47  ;;  %v5110_v47 = vld [vmem:[%s6658_s3 + $0x894] ss:$8 sps:$4 sm:$0xff]  }
 0x124   : > { %4519 = vmatprep.subr.bf16.mxu1 %v5104_v10  ;;  %3496 = vmatpush1.bf16.msra.mxu0 %v5096_v58 }
 0x125   : > { %3497 = vmatprep.subr.bf16.mxu0 %v5101_v40 }
 0x127   : > { %4535 = vmatpush1.bf16.msra.mxu1 %v5102_v20  ;;  %3475 = vmatmul.mubr.bf16.gmra.mrb[12].mxu0 %v4387_v45 }
 0x128   : > { %4520 = vmatprep.subr.bf16.mxu1 %v5107_v44  ;;  %3498 = vmatpush1.bf16.msra.mxu0 %v5099_v8 }
 0x129   : > { %3517 = vmatprep.mubr.bf16.mxu0 %v5964_v11  ;;  %3499 = vmatprep.subr.bf16.mxu0 %v5104_v10  ;;  %v5116_v11 = vld [vmem:[%s6658_s3 + $0x8b4] ss:$8 sps:$4 sm:$0xff]  }
 0x12b   : > { %4536 = vmatpush1.bf16.msra.mxu1 %v5105_v18 }
 0x12c   : > { %4521 = vmatprep.subr.bf16.mxu1 %v5110_v47  ;;  %3500 = vmatpush1.bf16.msra.mxu0 %v5102_v20 }
 0x12d   : > { %3501 = vmatprep.subr.bf16.mxu0 %v5107_v44 }
 0x12f   : > { %4537 = vmatpush1.bf16.msra.mxu1 %v5108_v15 }
 0x130   : > { %4522 = vmatprep.subr.bf16.mxu1 %v5113_v35  ;;  %3502 = vmatpush1.bf16.msra.mxu0 %v5105_v18 }
 0x131   : > { %3503 = vmatprep.subr.bf16.mxu0 %v5110_v47 }
 0x133   : > { %4538 = vmatpush1.bf16.msra.mxu1 %v5111_v14 }
 0x134   : > { %4523 = vmatprep.subr.bf16.mxu1 %v5116_v11  ;;  %3504 = vmatpush1.bf16.msra.mxu0 %v5108_v15 }
 0x135   : > { %3505 = vmatprep.subr.bf16.mxu0 %v5113_v35 }
 0x137   : > { %4539 = vmatpush1.bf16.msra.mxu1 %v5114_v48 }
 0x138   : > { %4524 = vmatprep.subr.bf16.mxu1 %v5119_v6  ;;  %3506 = vmatpush1.bf16.msra.mxu0 %v5111_v14 }
 0x139   : > { %3507 = vmatprep.subr.bf16.mxu0 %v5116_v11 }
 0x13b   : > { %4540 = vmatpush1.bf16.msra.mxu1 %v5117_v26 }
 0x13c   : > { %4525 = vmatprep.subr.bf16.mxu1 %v5122_v61  ;;  %3508 = vmatpush1.bf16.msra.mxu0 %v5114_v48 }
 0x13d   : > { %3509 = vmatprep.subr.bf16.mxu0 %v5119_v6 }
 0x13f   : > { %4541 = vmatpush1.bf16.msra.mxu1 %v5120_v4 }
 0x140   : > { %4526 = vmatprep.subr.bf16.mxu1 %v5125_v32  ;;  %3510 = vmatpush1.bf16.msra.mxu0 %v5117_v26 }
 0x141   : > { %3511 = vmatprep.subr.bf16.mxu0 %v5122_v61 }
 0x143   : > { %4542 = vmatpush1.bf16.msra.mxu1 %v5123_v28 }
 0x144   : > { %4527 = vmatprep.subr.bf16.mxu1 %v5128_v12  ;;  %3512 = vmatpush1.bf16.msra.mxu0 %v5120_v4 }
 0x145   : > { %3513 = vmatprep.subr.bf16.mxu0 %v5125_v32 }
 0x147   : > { %4543 = vmatpush1.bf16.msra.mxu1 %v5126_v24 }
 0x148   : > { %3514 = vmatpush1.bf16.msra.mxu0 %v5123_v28 }
 0x149   : > { %3515 = vmatprep.subr.bf16.mxu0 %v5128_v12 }
 0x14a   : > { %3538 = vmatmul.mubr.bf16.vlgmr.msra.gmra.mrb[16].mxu1 %v6099_v27 }
 0x14b   : > { %3547 = vmatprep.mubr.bf16.mxu1 %v4390_v55 }
 0x14c   : > { %3516 = vmatpush1.bf16.msra.mxu0 %v5126_v24 }
 0x14f   : > { %3518 = vmatmul.mubr.bf16.vlgmr.msra.gmra.mrb[0].mxu0 %v6004_v49 }
 0x150   : > { %3527 = vmatprep.mubr.bf16.mxu0 %v6013_v57 }
 0x152   : > { %3548 = vmatmul.mubr.bf16.gmra.mrb[20].mxu1 %v4389_v22 }
 0x157   : > { %3528 = vmatmul.mubr.bf16.gmra.mrb[4].mxu0 %v6053_v41 }
 0x1dd   : > { %v2559_v29 = vpop.f32.mrb[0].mxu1 }
 0x1de   : > { %v2561_v39 = vpop.f32.mrb[1].mxu1 }
 0x1df   : > { %v2563_v54 = vpop.f32.mrb[2].mxu1 }
 0x1e0   : > { %v2565_v36 = vpop.f32.mrb[3].mxu1 }
 0x1e5   : > { %v6564_v21 = vpop.f32.mrb[4].mxu1 }
 0x1e6   : > { %v6566_v27 = vpop.f32.mrb[5].mxu1 }
 0x1e7   : > { %v6568_v34 = vpop.f32.mrb[6].mxu1 }
 0x1e8   : > { %v6570_v59 = vpop.f32.mrb[7].mxu1 }
 0x1ed   : > { %v2579_v33 = vpop.f32.mrb[8].mxu1 }
 0x1ee   : > { %v2581_v63 = vpop.f32.mrb[9].mxu1 }
 0x1ef   : > { %v2583_v49 = vpop.f32.mrb[10].mxu1 }
 0x1f0   : > { %v2585_v38 = vpop.f32.mrb[11].mxu1 }
 0x1f2   : > { %v3466_v57 = vpop.f32.mrb[8].mxu0 }
 0x1f3   : > { %v4552_v56 = vadd.f32 %v3466_v57, %v2579_v33  ;;  %v3468_v53 = vpop.f32.mrb[9].mxu0 }
 0x1f4   : > { %v4554_v41 = vadd.f32 %v3468_v53, %v2581_v63  ;;  %v3470_v52 = vpop.f32.mrb[10].mxu0 }
 0x1f5   : > { %v2589_v7 = vpop.f32.mrb[12].mxu1  ;;  %v4556_v16 = vadd.f32 %v3470_v52, %v2583_v49  ;;  %v3472_v25 = vpop.f32.mrb[11].mxu0 }
 0x1f6   : > { %v2591_v37 = vpop.f32.mrb[13].mxu1  ;;  %v4558_v43 = vadd.f32 %v3472_v25, %v2585_v38 }
 0x1f7   : > { %v2593_v51 = vpop.f32.mrb[14].mxu1 }
 0x1f8   : > { %v2595_v46 = vpop.f32.mrb[15].mxu1 }
 0x1fa   : > { %v3476_v13 = vpop.f32.mrb[12].mxu0 }
 0x1fb   : > { %v4560_v31 = vadd.f32 %v3476_v13, %v2589_v7  ;;  %v3478_v42 = vpop.f32.mrb[13].mxu0 }
 0x1fc   : > { %v4562_v1 = vadd.f32 %v3478_v42, %v2591_v37  ;;  %v3480_v62 = vpop.f32.mrb[14].mxu0 }
 0x1fd   : > { %v4564_v9 = vadd.f32 %v3480_v62, %v2593_v51  ;;  %v3482_v50 = vpop.f32.mrb[15].mxu0 }
 0x1fe   : > { %v4566_v30 = vadd.f32 %v3482_v50, %v2595_v46 }
 0x21d   : > { %v3539_v3 = vpop.f32.mrb[16].mxu1 }
 0x21e   : > { %v6572_v23 = vadd.f32 %v4552_v56, %v3539_v3  ;;  %v3541_v17 = vpop.f32.mrb[17].mxu1 }
 0x21f   : > { %v6574_v0 = vadd.f32 %v4554_v41, %v3541_v17  ;;  %v3543_v5 = vpop.f32.mrb[18].mxu1 }
 0x220   : > { %v6583_v60 = vadd.f32 %v4556_v16, %v3543_v5  ;;  %v3545_v2 = vpop.f32.mrb[19].mxu1 }
 0x221   : > { %v4508_v58 = vpack.c.bf16 %v6574_v0, %v6572_v23  ;;  %v6587_v40 = vadd.f32 %v4558_v43, %v3545_v2 }
 0x222   : > { %v3519_v19 = vpop.f32.mrb[0].mxu0 }
 0x223   : > { %3642 = vst [vmem:[%s6581_s10 + $0x20] sm:$0xff] %v4508_v58  ;;  %v4509_v8 = vpack.c.bf16 %v6587_v40, %v6583_v60  ;;  %v6592_v10 = vadd.f32 %v3519_v19, %v2559_v29  ;;  %v3521_v20 = vpop.f32.mrb[1].mxu0 }
 0x224   : > { %v6594_v45 = vadd.f32 %v3521_v20, %v2561_v39  ;;  %v3523_v44 = vpop.f32.mrb[2].mxu0 }
 0x225   : > { %3643 = vst [vmem:[%s6581_s10 + $0x28] sm:$0xff] %v4509_v8  ;;  %v3549_v18 = vpop.f32.mrb[20].mxu1  ;;  %v4546_v47 = vadd.f32 %v3523_v44, %v2563_v54  ;;  %v3525_v15 = vpop.f32.mrb[3].mxu0 }
 0x226   : > { %v4561_v35 = vadd.f32 %v4560_v31, %v3549_v18  ;;  %v3551_v14 = vpop.f32.mrb[21].mxu1  ;;  %v4504_v11 = vpack.c.bf16 %v6594_v45, %v6592_v10  ;;  %v6599_v48 = vadd.f32 %v3525_v15, %v2565_v36 }
 0x227   : > { %v6601_v6 = vadd.f32 %v4562_v1, %v3551_v14  ;;  %v3553_v26 = vpop.f32.mrb[22].mxu1  ;;  %v3646_v61 = vadd.f32 %v4546_v47, %v6592_v10 }
 0x228   : > { %v4565_v4 = vadd.f32 %v4564_v9, %v3553_v26  ;;  %v3555_v32 = vpop.f32.mrb[23].mxu1  ;;  %3638 = vst [vmem:[%s6581_s10] sm:$0xff] %v4504_v11  ;;  %v4505_v28 = vpack.c.bf16 %v6599_v48, %v4546_v47  ;;  %v3659_v12 = vadd.f32 %v6599_v48, %v6594_v45 }
 0x229   : > { %v4510_v24 = vpack.c.bf16 %v6601_v6, %v4561_v35  ;;  %v6609_v55 = vadd.f32 %v4566_v30, %v3555_v32 }
 0x22a   : > { %3639 = vst [vmem:[%s6581_s10 + $0x8] sm:$0xff] %v4505_v28  ;;  %v3529_v22 = vpop.f32.mrb[4].mxu0 }
 0x22b   : > { %3644 = vst [vmem:[%s6581_s10 + $0x30] sm:$0xff] %v4510_v24  ;;  %v4511_v29 = vpack.c.bf16 %v6609_v55, %v4565_v4  ;;  %v4548_v39 = vadd.f32 %v3529_v22, %v6564_v21  ;;  %v3531_v54 = vpop.f32.mrb[5].mxu0 }
 0x22c   : > { %v4549_v36 = vadd.f32 %v3531_v54, %v6566_v27  ;;  %v3533_v33 = vpop.f32.mrb[6].mxu0 }
 0x22d   : > { %3645 = vst [vmem:[%s6581_s10 + $0x38] sm:$0xff] %v4511_v29  ;;  %v3647_v63 = vadd.f32 %v4548_v39, %v3646_v61  ;;  %v4550_v49 = vadd.f32 %v3533_v33, %v6568_v34  ;;  %v3535_v38 = vpop.f32.mrb[7].mxu0 }
 0x22e   : > { %v4506_v57 = vpack.c.bf16 %v4549_v36, %v4548_v39  ;;  %v3660_v56 = vadd.f32 %v4549_v36, %v3659_v12  ;;  %v4551_v53 = vadd.f32 %v3535_v38, %v6570_v59 }
 0x22f   : > { %v3648_v41 = vadd.f32 %v4550_v49, %v3647_v63 }
 0x230   : > { %3640 = vst [vmem:[%s6581_s10 + $0x10] sm:$0xff] %v4506_v57  ;;  %v4507_v52 = vpack.c.bf16 %v4551_v53, %v4550_v49  ;;  %v3661_v7 = vadd.f32 %v4551_v53, %v3660_v56 }
 0x231   : > { %v3649_v21 = vadd.f32 %v6572_v23, %v3648_v41 }
 0x232   : > { %3641 = vst [vmem:[%s6581_s10 + $0x18] sm:$0xff] %v4507_v52  ;;  %v3662_v16 = vadd.f32 %v6574_v0, %v3661_v7 }
 0x233   : > { %v3650_v27 = vadd.f32 %v6583_v60, %v3649_v21 }
 0x234   : > { %v3663_v25 = vadd.f32 %v6587_v40, %v3662_v16 }
 0x235   : > { %v3651_v37 = vadd.f32 %v4561_v35, %v3650_v27 }
 0x236   : > { %v3664_v34 = vadd.f32 %v6601_v6, %v3663_v25 }
 0x237   : > { %v3652_v43 = vadd.f32 %v4565_v4, %v3651_v37 }
 0x238   : > { %v3665_v51 = vadd.f32 %v6609_v55, %v3664_v34 }
 0x239   : > { %v3653_v59 = vrot.slane %v3652_v43, 4 }
 0x23a   : > { %v3666_v46 = vrot.slane %v3665_v51, 4 }
 0x23b   : > { %v3654_v13 = vadd.f32 %v3653_v59, %v3652_v43 }
 0x23c   : > { %v3667_v31 = vadd.f32 %v3666_v46, %v3665_v51 }
 0x23d   : > { %v3655_v42 = vrot.slane %v3654_v13, 2 }
 0x23e   : > { %v3668_v1 = vrot.slane %v3667_v31, 2 }
 0x23f   : > { %v3656_v62 = vadd.f32 %v3655_v42, %v3654_v13 }
 0x240   : > { %v3669_v9 = vadd.f32 %v3668_v1, %v3667_v31 }
 0x241   : > { %v3657_v50 = vrot.slane %v3656_v62, 1 }
 0x242   : > { %v3670_v30 = vrot.slane %v3669_v9, 1 }
 0x243   : > { %v3658_v3 = vadd.f32 %v3657_v50, %v3656_v62 }
 0x244   : > { %v6627_v17 = vadd.f32 %v3670_v30, %v3669_v9 }
 0x245   : > { %v3672_v5 = vmul.f32 0.015625, %v3658_v3 }
 0x246   : > { %v3673_v2 = vmul.f32 0.015625, %v6627_v17 }
 0x247   : > { %v3674_v58 = vsub.f32 %v6592_v10, %v3672_v5  ;;  %v3676_v19 = vsub.f32 %v4546_v47, %v3672_v5  ;;  %v3678_v8 = vsub.f32 %v4548_v39, %v3672_v5  ;;  %v3680_v20 = vsub.f32 %v4550_v49, %v3672_v5 }
 0x248   : > { %v3682_v44 = vsub.f32 %v6572_v23, %v3672_v5  ;;  %v3684_v18 = vsub.f32 %v6583_v60, %v3672_v5  ;;  %v3686_v15 = vsub.f32 %v4561_v35, %v3672_v5  ;;  %v3688_v14 = vsub.f32 %v4565_v4, %v3672_v5 }
 0x249   : > { %v3690_v11 = vmul.f32 %v3674_v58, %v3674_v58  ;;  %v3692_v26 = vmul.f32 %v3676_v19, %v3676_v19  ;;  %v3694_v61 = vmul.f32 %v3678_v8, %v3678_v8  ;;  %v3696_v32 = vmul.f32 %v3680_v20, %v3680_v20 }
 0x24a   : > { %v3675_v12 = vsub.f32 %v6594_v45, %v3673_v2  ;;  %v3677_v24 = vsub.f32 %v6599_v48, %v3673_v2  ;;  %v3679_v22 = vsub.f32 %v4549_v36, %v3673_v2  ;;  %v3681_v10 = vsub.f32 %v4551_v53, %v3673_v2 }
 0x24b   : > { %v3706_v28 = vadd.f32 %v3692_v26, %v3690_v11  ;;  %v3683_v47 = vsub.f32 %v6574_v0, %v3673_v2  ;;  %v3685_v29 = vsub.f32 %v6587_v40, %v3673_v2  ;;  %v3687_v23 = vsub.f32 %v6601_v6, %v3673_v2 }
 0x24c   : > { %v3689_v35 = vsub.f32 %v6609_v55, %v3673_v2  ;;  %v3691_v4 = vmul.f32 %v3675_v12, %v3675_v12  ;;  %v3693_v39 = vmul.f32 %v3677_v24, %v3677_v24  ;;  %v3698_v54 = vmul.f32 %v3682_v44, %v3682_v44 }
 0x24d   : > { %v3707_v60 = vadd.f32 %v3706_v28, %v3694_v61  ;;  %v3695_v63 = vmul.f32 %v3679_v22, %v3679_v22  ;;  %v3700_v45 = vmul.f32 %v3684_v18, %v3684_v18  ;;  %v3697_v48 = vmul.f32 %v3681_v10, %v3681_v10 }
 0x24e   : > { %v3719_v49 = vadd.f32 %v3693_v39, %v3691_v4  ;;  %v3702_v57 = vmul.f32 %v3686_v15, %v3686_v15  ;;  %v3699_v0 = vmul.f32 %v3683_v47, %v3683_v47  ;;  %v3704_v40 = vmul.f32 %v3688_v14, %v3688_v14 }
 0x24f   : > { %v3708_v33 = vadd.f32 %v3707_v60, %v3696_v32  ;;  %v3701_v6 = vmul.f32 %v3685_v29, %v3685_v29  ;;  %v3703_v55 = vmul.f32 %v3687_v23, %v3687_v23  ;;  %v3705_v27 = vmul.f32 %v3689_v35, %v3689_v35 }
 0x250   : > { %v3720_v36 = vadd.f32 %v3719_v49, %v3695_v63 }
 0x251   : > { %v3709_v38 = vadd.f32 %v3708_v33, %v3698_v54 }
 0x252   : > { %v3721_v53 = vadd.f32 %v3720_v36, %v3697_v48 }
 0x253   : > { %v3710_v56 = vadd.f32 %v3709_v38, %v3700_v45 }
 0x254   : > { %v3722_v52 = vadd.f32 %v3721_v53, %v3699_v0 }
 0x255   : > { %v3711_v41 = vadd.f32 %v3710_v56, %v3702_v57 }
 0x256   : > { %v3723_v21 = vadd.f32 %v3722_v52, %v3701_v6 }
 0x257   : > { %v3712_v7 = vadd.f32 %v3711_v41, %v3704_v40 }
 0x258   : > { %v3724_v25 = vadd.f32 %v3723_v21, %v3703_v55 }
 0x259   : > { %v3713_v16 = vrot.slane %v3712_v7, 4 }
 0x25a   : > { %v3725_v34 = vadd.f32 %v3724_v25, %v3705_v27 }
 0x25b   : > { %v3714_v37 = vadd.f32 %v3713_v16, %v3712_v7 }
 0x25c   : > { %v3726_v51 = vrot.slane %v3725_v34, 4 }
 0x25d   : > { %v3715_v43 = vrot.slane %v3714_v37, 2 }
 0x25e   : > { %v3727_v46 = vadd.f32 %v3726_v51, %v3725_v34 }
 0x25f   : > { %v3716_v59 = vadd.f32 %v3715_v43, %v3714_v37 }
 0x260   : > { %v3728_v31 = vrot.slane %v3727_v46, 2 }
 0x261   : > { %v3717_v13 = vrot.slane %v3716_v59, 1 }
 0x262   : > { %v3729_v1 = vadd.f32 %v3728_v31, %v3727_v46 }
 0x263   : > { %v3718_v42 = vadd.f32 %v3717_v13, %v3716_v59 }
 0x264   : > { %v3730_v9 = vrot.slane %v3729_v1, 1 }
 0x265   : > { %v3733_v62 = vsel %vm777_vm1, %v3658_v3, %v3718_v42 }
 0x266   : > { %v3731_v50 = vadd.f32 %v3730_v9, %v3729_v1 }
 0x268   : > { %v3734_v30 = vsel %vm777_vm1, %v6627_v17, %v3731_v50 }
 0x269   : > { %v3737_v5 = vcombine.low %v3733_v62, %v3734_v30 }
 0x26b   : > { %4495 = vst.sshfl [vmem:[%s469_s14] sm:$0x33 pattern:$0x76325410] %v3737_v5 }
 0x26c PF: > { %s18_s2 = sadd.s32 1, %s5151_s2   ;;  %s6667_s23 = smov %s5147_s24 }
 0x26d   : > { %p15_p5 = scmp.ge.s32.totalorder %s18_s2, 4   ;;  %s6668_s24 = smov %s6670_s25 }
 0x26f   :  { %17 = sbr.rel (!%p15_p5) target bundleno = 2 (0x2), region = 94 }

</bundles_post_ra>
